<compile_context>
chip_gen: v6e
topology: v6e:2x2x1
jax: 0.10.0
libtpu: 0.0.40
codegen_flags: <defaults>
</compile_context>

<pallas_src>
import functools
import math

import jax
import jax.numpy as jnp
from jax.experimental import pallas as pl
from jax.experimental.pallas import tpu as pltpu

K = 7        # SAM conv kernel size (fixed by the module)
PAD = 3      # SAM conv padding


# --------------------------------------------------------------------------
# Kernel bodies
# --------------------------------------------------------------------------
def _cam_attention(x, w1_ref, b1_ref, w2_ref, b2_ref):
    """Channel attention: sigmoid(MLP(maxpool) + MLP(avgpool)), fused branches."""
    Bt, C, HW = x.shape
    mx = jnp.max(x, axis=-1)                               # (Bt, C)  lane reduce
    av = jnp.sum(x, axis=-1) * (1.0 / float(HW))           # (Bt, C)
    # Both pooled vectors through the shared MLP in one pass (2*Bt rows).
    # NOTE: at toy C the two small matmuls underfill the MXU rows; they ride
    # along with the SAM conv matmul and are negligible vs the HBM traffic.
    pooled = jnp.concatenate([mx, av], axis=0)             # (2*Bt, C)
    hid = jnp.dot(pooled, w1_ref[...], preferred_element_type=jnp.float32)
    hid = jnp.maximum(hid + b1_ref[...], 0.0)              # (2*Bt, Cr)
    z = jnp.dot(hid, w2_ref[...], preferred_element_type=jnp.float32) + b2_ref[...]
    return jax.nn.sigmoid(z[:Bt] + z[Bt:])                 # (Bt, C)


def _cbam_matconv_kernel(x_ref, w1_ref, b1_ref, w2_ref, b2_ref, cm_ref, o_ref):
    """MXU path: SAM 7x7 conv folded into a dense (2*HW, HW) operator."""
    Bt, C, HW = x_ref.shape
    x = x_ref[...]                                          # (Bt, C, HW)

    attn_c = _cam_attention(x, w1_ref, b1_ref, w2_ref, b2_ref)
    cam = x * attn_c[:, :, None]                            # (Bt, C, HW)

    ch_max = jnp.max(cam, axis=1)                           # (Bt, HW) sublane reduce
    ch_avg = jnp.sum(cam, axis=1) * (1.0 / float(C))        # (Bt, HW)
    pooled_sp = jnp.concatenate([ch_max, ch_avg], axis=-1)  # (Bt, 2*HW) lane concat

    # Zero-padded 7x7 conv as a single MXU matmul (HIGHEST => true f32 result).
    sa = jnp.dot(pooled_sp, cm_ref[...],
                 precision=jax.lax.Precision.HIGHEST,
                 preferred_element_type=jnp.float32)        # (Bt, HW)

    # Single fused store: sigmoid(conv) * cam + residual x.
    o_ref[...] = (cam * jax.nn.sigmoid(sa)[:, None, :] + x).astype(o_ref.dtype)


def _cbam_roll_kernel(x_ref, w1_ref, b1_ref, w2_ref, b2_ref, cw_ref, o_ref, *, H, W):
    """VPU fallback for large H*W: masked lane/sublane rolls for the 7x7 conv."""
    Bt, C, HW = x_ref.shape
    x = x_ref[...]

    attn_c = _cam_attention(x, w1_ref, b1_ref, w2_ref, b2_ref)
    cam = x * attn_c[:, :, None]

    ch_max = jnp.max(cam, axis=1)                           # (Bt, HW)
    ch_avg = jnp.sum(cam, axis=1) * (1.0 / float(C))        # (Bt, HW)

    # Single-sublane (1, HW) masks; jnp.where broadcasts them along sublanes.
    lane = jax.lax.broadcasted_iota(jnp.int32, (1, HW), 1)
    col = lane % W
    row = lane // W
    col_ok = [None] * K
    row_ok = [None] * K
    for d in range(-PAD, PAD + 1):
        if d != 0:
            col_ok[d + PAD] = (col + d >= 0) & (col + d < W)
            row_ok[d + PAD] = (row + d >= 0) & (row + d < H)

    # Column shifts (masked circular lane rolls), hoisted out of the row loop.
    # Circular rolls are exact: every wrapped lane is masked off.
    shifted = []
    for m in (ch_max, ch_avg):
        per_c = []
        for kj in range(K):
            dj = kj - PAD
            if dj == 0:
                per_c.append(m)
            else:
                r = pltpu.roll(m, shift=(-dj) % HW, axis=1)
                per_c.append(jnp.where(col_ok[kj], r, 0.0))
        shifted.append(per_c)

    # Row offsets: both channels are combined *before* the row roll, so only
    # 7 row rolls/masks are needed (was 14).
    sa = jnp.zeros((Bt, HW), dtype=jnp.float32)
    for ki in range(K):
        di = ki - PAD
        tmp = (cw_ref[ki * K] * shifted[0][0]
               + cw_ref[K * K + ki * K] * shifted[1][0])
        for kj in range(1, K):
            tmp = tmp + cw_ref[ki * K + kj] * shifted[0][kj]
            tmp = tmp + cw_ref[K * K + ki * K + kj] * shifted[1][kj]
        if di == 0:
            sa = sa + tmp
        else:
            r = pltpu.roll(tmp, shift=(-di * W) % HW, axis=1)
            sa = sa + jnp.where(row_ok[ki], r, 0.0)

    o_ref[...] = (cam * jax.nn.sigmoid(sa)[:, None, :] + x).astype(o_ref.dtype)


# --------------------------------------------------------------------------
# Wrapper
# --------------------------------------------------------------------------
def _vmem_capacity_bytes():
    """Physical VMEM of the current generation (v7x: 64 MiB, v5e/v6e: 128 MiB)."""
    try:
        cap = int(pltpu.get_tpu_info().vmem_capacity_bytes)
        if cap > 0:
            return cap
    except Exception:
        pass
    return 64 << 20          # conservative default if the query is unavailable


def _conv_operator(conv_w_flat, H, W):
    """Fold the zero-padded 7x7 conv (2 -> 1 channels, no bias) into a dense
    (2*H*W, H*W) banded-Toeplitz matrix so the SAM conv runs on the MXU."""
    HW = H * W
    w = conv_w_flat.reshape(2, K, K).astype(jnp.float32)
    idx = jnp.arange(HW)
    r_i, c_i = idx // W, idx % W            # input coords  (matrix rows)
    r_o, c_o = idx // W, idx % W            # output coords (matrix cols)
    ki = r_i[:, None] - r_o[None, :] + PAD  # (HW_in, HW_out)
    kj = c_i[:, None] - c_o[None, :] + PAD
    valid = (ki >= 0) & (ki < K) & (kj >= 0) & (kj < K)
    ki_c = jnp.clip(ki, 0, K - 1)
    kj_c = jnp.clip(kj, 0, K - 1)
    m_max = jnp.where(valid, w[0][ki_c, kj_c], 0.0)         # (HW, HW)
    m_avg = jnp.where(valid, w[1][ki_c, kj_c], 0.0)         # (HW, HW)
    return jnp.concatenate([m_max, m_avg], axis=0)          # (2*HW, HW)


def cbam_forward(x_nchw, w1, b1, w2, b2, conv_w_flat):
    B, C, H, W = x_nchw.shape
    Cr = w1.shape[1]
    HW = H * W
    f32 = 4
    itemsize = x_nchw.dtype.itemsize
    x_flat = x_nchw.reshape(B, C, HW)       # metadata-only reshape, no HBM pass

    # ---- generation-aware VMEM budget ------------------------------------
    vmem_cap = _vmem_capacity_bytes()
    vmem_limit = min(int(vmem_cap * 0.85), vmem_cap - (8 << 20))   # explicit request
    budget = int(vmem_cap * 0.70)            # tiles + in-kernel temporaries

    # Use the dense MXU conv operator only while it fits comfortably in VMEM.
    conv_mat_bytes = 2 * HW * HW * f32
    use_matconv = conv_mat_bytes <= min(8 << 20, budget // 8)

    # ---- batch-tile sizing against the real per-step working set ---------
    per_elem_io = C * HW * itemsize
    # 2x double-buffered input + 2x output tiles, plus ~3 C*HW f32 temporaries
    # (x value, cam, result) and ~24 (HW,) f32 spatial maps/masks (worst case
    # is the roll fallback path).
    per_elem_ws = 4 * per_elem_io + 3 * C * HW * f32 + 24 * HW * f32
    mlp_bytes = (C * Cr + Cr + Cr * C + C) * f32
    fixed = (2 * conv_mat_bytes if use_matconv else 0) + 2 * mlp_bytes + (2 << 20)
    bt = max(1, min(B, (budget - fixed) // per_elem_ws))

    # ---- grid-step policy -------------------------------------------------
    # Prefer ~4 pipelined steps if each step still moves >= ~0.5 MiB of HBM
    # traffic; otherwise fall back to >= 2 steps whenever B >= 2 so the
    # "parallel" axis can be sharded across v7x's two TensorCores.
    min_bt_dma = max(1, (512 * 1024 + per_elem_io - 1) // per_elem_io)
    if B // 4 >= min_bt_dma:
        bt = min(bt, max(1, B // 4))
    elif B >= 2:
        bt = min(bt, max(1, B // 2))

    # ---- pad non-divisible batches (instead of shrinking the tile) -------
    n_steps = pl.cdiv(B, bt)
    Bp = n_steps * bt
    if Bp != B:
        x_flat = jnp.pad(x_flat, ((0, Bp - B), (0, 0), (0, 0)))

    common_in_specs = [
        pl.BlockSpec((bt, C, HW), lambda g: (g, 0, 0)),
        pl.BlockSpec((C, Cr), lambda g: (0, 0)),
        pl.BlockSpec((1, Cr), lambda g: (0, 0)),
        pl.BlockSpec((Cr, C), lambda g: (0, 0)),
        pl.BlockSpec((1, C), lambda g: (0, 0)),
    ]

    if use_matconv:
        kernel = _cbam_matconv_kernel
        extra_spec = pl.BlockSpec((2 * HW, HW), lambda g: (0, 0))
        extra_arg = _conv_operator(conv_w_flat, H, W)   # built once, resident in VMEM
    else:
        kernel = functools.partial(_cbam_roll_kernel, H=H, W=W)
        extra_spec = pl.BlockSpec(memory_space=pltpu.MemorySpace.SMEM)
        extra_arg = conv_w_flat

    out_flat = pl.pallas_call(
        kernel,
        out_shape=jax.ShapeDtypeStruct((Bp, C, HW), x_flat.dtype),
        grid_spec=pltpu.PrefetchScalarGridSpec(
            num_scalar_prefetch=0,
            grid=(n_steps,),
            in_specs=common_in_specs + [extra_spec],
            out_specs=pl.BlockSpec((bt, C, HW), lambda g: (g, 0, 0)),
        ),
        compiler_params=pltpu.CompilerParams(
            dimension_semantics=("parallel",),          # batch tiles independent
            vmem_limit_bytes=int(vmem_limit)),
    )(x_flat, w1, b1, w2, b2, extra_arg)

    if Bp != B:
        out_flat = out_flat[:B]
    return out_flat.reshape(B, C, H, W)


# --------------------------------------------------------------------------
# Pure-JAX reference (same math as the PyTorch module), NCHW.
# --------------------------------------------------------------------------
def cbam_reference(x, w1, b1, w2, b2, conv_w_flat):
    B, C, H, W = x.shape
    mx = jnp.max(x, axis=(2, 3))
    av = jnp.mean(x, axis=(2, 3))

    def mlp(v):
        return jnp.maximum(v @ w1 + b1, 0.0) @ w2 + b2

    attn = jax.nn.sigmoid(mlp(mx) + mlp(av))[:, :, None, None]
    cam = x * attn
    chm = jnp.max(cam, axis=1, keepdims=True)
    cha = jnp.mean(cam, axis=1, keepdims=True)
    cc = jnp.concatenate([chm, cha], axis=1)             # (B, 2, H, W)
    sa = jax.lax.conv_general_dilated(
        cc, conv_w_flat.reshape(1, 2, K, K), (1, 1),
        ((PAD, PAD), (PAD, PAD)),
        dimension_numbers=("NCHW", "OIHW", "NCHW"),
        precision=jax.lax.Precision.HIGHEST)
    return cam * jax.nn.sigmoid(sa) + x


if __name__ == "__main__":
    B, C, H, W = 2, 4, 16, 16
    r = 2
    Cr = C // r

    key = jax.random.PRNGKey(0)
    k1, k2, k3, k4, k5, kx = jax.random.split(key, 6)

    # Deterministic parameter init (PyTorch-style uniform(-1/sqrt(fan_in), ...)).
    b1_bound = 1.0 / math.sqrt(C)
    w1 = jax.random.uniform(k1, (C, Cr), jnp.float32, -b1_bound, b1_bound)   # Linear1 W^T
    b1 = jax.random.uniform(k2, (1, Cr), jnp.float32, -b1_bound, b1_bound)
    b2_bound = 1.0 / math.sqrt(Cr)
    w2 = jax.random.uniform(k3, (Cr, C), jnp.float32, -b2_bound, b2_bound)   # Linear2 W^T
    b2 = jax.random.uniform(k4, (1, C), jnp.float32, -b2_bound, b2_bound)
    cw_bound = 1.0 / math.sqrt(2 * K * K)
    conv_w = jax.random.uniform(k5, (2 * K * K,), jnp.float32, -cw_bound, cw_bound)

    x = jax.random.normal(kx, (B, C, H, W), jnp.float32)

    out = cbam_forward(x, w1, b1, w2, b2, conv_w)
    out = jax.block_until_ready(out)

    ref = cbam_reference(x, w1, b1, w2, b2, conv_w)
    assert out.shape == x.shape
    assert jnp.allclose(out, ref, atol=5e-5, rtol=5e-5), "mismatch vs JAX reference"

    print("KERNEL_OK")
</pallas_src>

<mosaic_0001>
module attributes {stable_mosaic.version = 11 : i64} {
  func.func @_cbam_matconv_kernel(%arg0: i32, %arg1: memref<1x4x256xf32, #tpu.memory_space<vmem>>, %arg2: memref<4x2xf32, #tpu.memory_space<vmem>>, %arg3: memref<1x2xf32, #tpu.memory_space<vmem>>, %arg4: memref<2x4xf32, #tpu.memory_space<vmem>>, %arg5: memref<1x4xf32, #tpu.memory_space<vmem>>, %arg6: memref<512x256xf32, #tpu.memory_space<vmem>>, %arg7: memref<1x4x256xf32, #tpu.memory_space<vmem>>) attributes {dimension_semantics = [#tpu.dimension_semantics<parallel>], iteration_bounds = array<i64: 2>, scalar_prefetch = 0 : i64, scratch_operands = 0 : i64, tpu.core_type = #tpu.core_type<tc>, window_params = [{transform_indices = @transform_0, window_bounds = array<i64: 1, 4, 256>}, {pipeline_mode = #tpu.pipeline_mode<synchronous>, transform_indices = @transform_1, window_bounds = array<i64: 4, 2>}, {pipeline_mode = #tpu.pipeline_mode<synchronous>, transform_indices = @transform_2, window_bounds = array<i64: 1, 2>}, {pipeline_mode = #tpu.pipeline_mode<synchronous>, transform_indices = @transform_3, window_bounds = array<i64: 2, 4>}, {pipeline_mode = #tpu.pipeline_mode<synchronous>, transform_indices = @transform_4, window_bounds = array<i64: 1, 4>}, {pipeline_mode = #tpu.pipeline_mode<synchronous>, transform_indices = @transform_5, window_bounds = array<i64: 512, 256>}, {transform_indices = @transform_6, window_bounds = array<i64: 1, 4, 256>}]} {
    %c0 = arith.constant 0 : index
    %c0_0 = arith.constant 0 : index
    %c0_1 = arith.constant 0 : index
    %0 = vector.load %arg1[%c0, %c0_0, %c0_1] : memref<1x4x256xf32, #tpu.memory_space<vmem>>, vector<1x4x256xf32>
    %cst = arith.constant dense<0xFF800000> : vector<1x4xf32>
    %1 = vector.multi_reduction <maximumf>, %0, %cst [2] : vector<1x4x256xf32> to vector<1x4xf32>
    %cst_2 = arith.constant dense<0.000000e+00> : vector<1x4xf32>
    %2 = vector.multi_reduction <add>, %0, %cst_2 [2] : vector<1x4x256xf32> to vector<1x4xf32>
    %cst_3 = arith.constant 3.906250e-03 : f32
    %3 = vector.broadcast %cst_3 : f32 to vector<1x4xf32>
    %4 = arith.mulf %2, %3 : vector<1x4xf32>
    %5 = tpu.concatenate %1, %4 in 0 : vector<1x4xf32>, vector<1x4xf32> -> vector<2x4xf32>
    %c0_4 = arith.constant 0 : index
    %c0_5 = arith.constant 0 : index
    %6 = vector.load %arg2[%c0_4, %c0_5] : memref<4x2xf32, #tpu.memory_space<vmem>>, vector<4x2xf32>
    %cst_6 = arith.constant dense<0.000000e+00> : vector<2x2xf32>
    %7 = tpu.matmul %5, %6, %cst_6 {dimension_numbers = #tpu.dot_dimension_numbers<[1], [0], [0], [1], [0, 0, 1, 1], [], []>} : vector<2x4xf32>, vector<4x2xf32>, vector<2x2xf32> -> vector<2x2xf32>
    %c0_7 = arith.constant 0 : index
    %c0_8 = arith.constant 0 : index
    %8 = vector.load %arg3[%c0_7, %c0_8] : memref<1x2xf32, #tpu.memory_space<vmem>>, vector<1x2xf32>
    %9 = vector.broadcast %8 : vector<1x2xf32> to vector<2x2xf32>
    %10 = arith.addf %7, %9 : vector<2x2xf32>
    %cst_9 = arith.constant 0.000000e+00 : f32
    %11 = vector.broadcast %cst_9 : f32 to vector<2x2xf32>
    %12 = arith.maximumf %10, %11 : vector<2x2xf32>
    %c0_10 = arith.constant 0 : index
    %c0_11 = arith.constant 0 : index
    %13 = vector.load %arg4[%c0_10, %c0_11] : memref<2x4xf32, #tpu.memory_space<vmem>>, vector<2x4xf32>
    %cst_12 = arith.constant dense<0.000000e+00> : vector<2x4xf32>
    %14 = tpu.matmul %12, %13, %cst_12 {dimension_numbers = #tpu.dot_dimension_numbers<[1], [0], [0], [1], [0, 0, 1, 1], [], []>} : vector<2x2xf32>, vector<2x4xf32>, vector<2x4xf32> -> vector<2x4xf32>
    %c0_13 = arith.constant 0 : index
    %c0_14 = arith.constant 0 : index
    %15 = vector.load %arg5[%c0_13, %c0_14] : memref<1x4xf32, #tpu.memory_space<vmem>>, vector<1x4xf32>
    %16 = vector.broadcast %15 : vector<1x4xf32> to vector<2x4xf32>
    %17 = arith.addf %14, %16 : vector<2x4xf32>
    %18 = vector.extract_strided_slice %17 {offsets = [0, 0], sizes = [1, 4], strides = [1, 1]} : vector<2x4xf32> to vector<1x4xf32>
    %19 = vector.extract_strided_slice %17 {offsets = [1, 0], sizes = [1, 4], strides = [1, 1]} : vector<2x4xf32> to vector<1x4xf32>
    %20 = arith.addf %18, %19 : vector<1x4xf32>
    %21 = arith.negf %20 : vector<1x4xf32>
    %22 = math.exp %21 : vector<1x4xf32>
    %cst_15 = arith.constant 1.000000e+00 : f32
    %23 = vector.broadcast %cst_15 : f32 to vector<1x4xf32>
    %24 = arith.addf %23, %22 : vector<1x4xf32>
    %25 = arith.divf %23, %24 : vector<1x4xf32>
    %26 = vector.shape_cast %25 : vector<1x4xf32> to vector<1x4x1xf32>
    %27 = vector.broadcast %26 : vector<1x4x1xf32> to vector<1x4x256xf32>
    %28 = arith.mulf %0, %27 : vector<1x4x256xf32>
    %cst_16 = arith.constant dense<0xFF800000> : vector<1x256xf32>
    %29 = vector.multi_reduction <maximumf>, %28, %cst_16 [1] : vector<1x4x256xf32> to vector<1x256xf32>
    %cst_17 = arith.constant dense<0.000000e+00> : vector<1x256xf32>
    %30 = vector.multi_reduction <add>, %28, %cst_17 [1] : vector<1x4x256xf32> to vector<1x256xf32>
    %cst_18 = arith.constant 2.500000e-01 : f32
    %31 = vector.broadcast %cst_18 : f32 to vector<1x256xf32>
    %32 = arith.mulf %30, %31 : vector<1x256xf32>
    %33 = tpu.concatenate %29, %32 in 1 : vector<1x256xf32>, vector<1x256xf32> -> vector<1x512xf32>
    %c0_19 = arith.constant 0 : index
    %c0_20 = arith.constant 0 : index
    %34 = vector.load %arg6[%c0_19, %c0_20] : memref<512x256xf32, #tpu.memory_space<vmem>>, vector<512x256xf32>
    %cst_21 = arith.constant dense<0.000000e+00> : vector<1x256xf32>
    %35 = tpu.matmul %33, %34, %cst_21 {dimension_numbers = #tpu.dot_dimension_numbers<[1], [0], [0], [1], [0, 0, 1, 1], [], []>, precision = #tpu.contract_precision<fp32>} : vector<1x512xf32>, vector<512x256xf32>, vector<1x256xf32> -> vector<1x256xf32>
    %36 = arith.negf %35 : vector<1x256xf32>
    %37 = math.exp %36 : vector<1x256xf32>
    %cst_22 = arith.constant 1.000000e+00 : f32
    %38 = vector.broadcast %cst_22 : f32 to vector<1x256xf32>
    %39 = arith.addf %38, %37 : vector<1x256xf32>
    %40 = arith.divf %38, %39 : vector<1x256xf32>
    %41 = vector.shape_cast %40 : vector<1x256xf32> to vector<1x1x256xf32>
    %42 = vector.broadcast %41 : vector<1x1x256xf32> to vector<1x4x256xf32>
    %43 = arith.mulf %28, %42 : vector<1x4x256xf32>
    %44 = arith.addf %43, %0 : vector<1x4x256xf32>
    %c0_23 = arith.constant 0 : index
    %c0_24 = arith.constant 0 : index
    %c0_25 = arith.constant 0 : index
    %45 = vector.load %arg7[%c0_23, %c0_24, %c0_25] : memref<1x4x256xf32, #tpu.memory_space<vmem>>, vector<1x4x256xf32>
    tpu.vector_store %arg7[%c0_23, %c0_24, %c0_25], %44 {strides = array<i32>} : memref<1x4x256xf32, #tpu.memory_space<vmem>>, vector<1x4x256xf32>,
    return
  }
  func.func @transform_0(%arg0: i32) -> (i32, i32, i32) {
    %c0_i32 = arith.constant 0 : i32
    %c0_i32_0 = arith.constant 0 : i32
    %c0_i32_1 = arith.constant 0 : i32
    return %arg0, %c0_i32, %c0_i32_0 : i32, i32, i32
  }
  func.func @transform_1(%arg0: i32) -> (i32, i32) {
    %c0_i32 = arith.constant 0 : i32
    %c0_i32_0 = arith.constant 0 : i32
    %c0_i32_1 = arith.constant 0 : i32
    return %c0_i32, %c0_i32_0 : i32, i32
  }
  func.func @transform_2(%arg0: i32) -> (i32, i32) {
    %c0_i32 = arith.constant 0 : i32
    %c0_i32_0 = arith.constant 0 : i32
    %c0_i32_1 = arith.constant 0 : i32
    return %c0_i32, %c0_i32_0 : i32, i32
  }
  func.func @transform_3(%arg0: i32) -> (i32, i32) {
    %c0_i32 = arith.constant 0 : i32
    %c0_i32_0 = arith.constant 0 : i32
    %c0_i32_1 = arith.constant 0 : i32
    return %c0_i32, %c0_i32_0 : i32, i32
  }
  func.func @transform_4(%arg0: i32) -> (i32, i32) {
    %c0_i32 = arith.constant 0 : i32
    %c0_i32_0 = arith.constant 0 : i32
    %c0_i32_1 = arith.constant 0 : i32
    return %c0_i32, %c0_i32_0 : i32, i32
  }
  func.func @transform_5(%arg0: i32) -> (i32, i32) {
    %c0_i32 = arith.constant 0 : i32
    %c0_i32_0 = arith.constant 0 : i32
    %c0_i32_1 = arith.constant 0 : i32
    return %c0_i32, %c0_i32_0 : i32, i32
  }
  func.func @transform_6(%arg0: i32) -> (i32, i32, i32) {
    %c0_i32 = arith.constant 0 : i32
    %c0_i32_0 = arith.constant 0 : i32
    %c0_i32_1 = arith.constant 0 : i32
    return %arg0, %c0_i32, %c0_i32_0 : i32, i32, i32
  }
}

</mosaic_0001>

<bundles_post_ra>
// kernel: tpu_custom_call.1
= control target key start
LH: loop header
LB: loop body
LE: loop exit
PB: predicated region body
PF: predicated region fallthrough
CT: control target
= control target key end

     0   :  { %s6044_s0 = inlined_call_operand.hbm [shape: f32[2,4,256], index: 0, kind: input, shape index: {}]   ;;  %s6045_s1 = inlined_call_operand.vmem [shape: f32[4,2], index: 1, kind: input, shape index: {}]   ;;  %s6046_s2 = inlined_call_operand.vmem [shape: f32[1,2], index: 2, kind: input, shape index: {}]   ;;  %s6047_s3 = inlined_call_operand.vmem [shape: f32[2,4], index: 3, kind: input, shape index: {}]   ;;  %s6048_s4 = inlined_call_operand.vmem [shape: f32[1,4], index: 4, kind: input, shape index: {}]   ;;  %s6049_s5 = inlined_call_operand.hbm [shape: f32[512,256], index: 5, kind: input, shape index: {}]   ;;  %s6050_s6 = inlined_call_operand.hbm [shape: f32[2,4,256], index: 6, kind: output, shape index: {}]  }
   0x1   :  { %6477 = sst [smem:[#allocation119_spill]] %s6049_s5 }
   0x2   :  { %11 = vsyncpa [#allocation3], 0 }
   0x3   :  { %13 = vsyncpa [#allocation3 + $0x1], 0 }
   0x4   :  { %14 = vsyncpa [#allocation6], 0 }
   0x5   :  { %15 = vsyncpa [#allocation4], 0 }
   0x6   :  { %17 = vsyncpa [#allocation4 + $0x1], 0  ;;  %s3650_s21 = smov 0   ;;  %s3652_s22 = smov 0  }
   0x7   :  { %s3654_s23 = smov 0   ;;  %s3656_s24 = smov 0  }
   0x8 LB: > { %s3671_s25 = sadd.s32 4294967295, %s3605_s24   ;;  %s3365_s26 = sadd.s32 4294967294, %s3605_s24   ;;  %s3605_s24 = sphi %s3656_s24, %s7245_s24   ;;  %s3601_s23 = sphi %s3654_s23, %s7244_s23   ;;  %s3597_s22 = sphi %s3652_s22, %s7243_s22   ;;  %s3593_s21 = sphi %s3650_s21, %s7242_s21  }
   0x9   : > { %p43_p0 = scmp.ne.s32.totalorder %s3597_s22, %s3593_s21  ;;  %p6051_p1 = scmp.eq.s32.totalorder %s3671_s25, 0 }
   0xa   : > { %p178_p3 = scmp.eq.s32.totalorder %s3365_s26, 1  ;;  %p3366_p5 = scmp.ge.s32.totalorder %s3605_s24, 1 }
   0xb   : > { %p3680_p4 = por %p6051_p1, %p43_p0  ;;  %p185_p7 = scmp.lt.s32.totalorder %s3605_s24, 3 }
   0xc   : > { %p3685_p6 = por %p178_p3, %p43_p0  ;;  %s3607_s30 = smov [#allocation5]  }
   0xd   : > { %s6478_s27 = scalar_select %p3680_p4, 1, 0 }
   0xe   : > { %s6479_s28 = scalar_select %p3685_p6, 1, 0 }
   0xf   : > { %p3690_p8 = pnand %p3366_p5, %p185_p7  ;;  %s209_s7 = sshll.u32 %s3607_s30, 4  ;;  %s210_s7 = int_to_ptr.vmem [resolvable:$true] %s209_s7 }
  0x10   : > { %s3704_s9 = sadd.s32 1, %s3605_s24   ;;  %s30_s10 = sadd.s32 1, %s3601_s23 }
  0x11   : > { %s6480_s29 = scalar_select %p3690_p8, 1, 0 }
  0x12   : > { %p3414_p9 = pneg %p3690_p8  ;;  %s27_s11 = ssub.s32 %s3605_s24, %s3704_s9 }
  0x13   : > { %s3494_s12 = scalar_lea.vmem %s210_s7, 16384  ;;  %p3502_p5 = scmp.lt.s32.totalorder %s210_s7, %s210_s7 }
  0x14   : > { %p3699_p11 = pnand %p3414_p9, %p6051_p1  ;;  %p3495_p13 = scmp.ne.s32.totalorder %s210_s7, %s3494_s12 }
  0x15   : > { %p3503_p7 = scmp.lt.s32.totalorder %s3494_s12, %s3494_s12 }
  0x16   : > { %p3485_p12 = pneg %p3699_p11 }
  0x17   : > { %p3504_p10 = por %p3503_p7, %p3502_p5 }
  0x18   : > { %p3497_p0 = pnand %p3495_p13, %p3485_p12 }
  0x1a   : > { %p3498_p3 = pneg %p3497_p0 }
  0x1c   : > { %p3505_p2 = pnand %p3504_p10, %p3498_p3 }
  0x1e   : > { %3508 = shalt.err (!%p3505_p2)
}
  0x1f   : > { %s3608_s13 = smov 256   ;;  %s3609_s14 = smov 16  }
  0x20   : > { %s6482_s5 = sld [smem:[#allocation119_spill]]  ;;  %p28_p9 = scmp.eq.s32.totalorder %s27_s11, 0 }
  0x21   : > { %p37_p12 = scmp.ne.s32.totalorder %s3601_s23, %s3597_s22  ;;  %p38_p10 = scmp.eq.s32.totalorder %s3605_s24, 0 }
  0x22   : > { %p3427_p2 = scmp.lt.s32.totalorder %s3605_s24, 2  ;;  %p6483_p0 = scmp.eq.s32.totalorder %s3671_s25, 1 }
  0x23   : > { %s3721_s17 = scalar_select %p28_p9, %s3601_s23, %s30_s10  }
  0x24   : > { %p39_p13 = por %p38_p10, %p37_p12  ;;  %p3725_p3 = por %p6483_p0, %p37_p12 }
  0x25   : > { %s223_s19 = sand.u32 1, %s3601_s23   ;;  %s3390_s20 = sshll.u32 %s3605_s24, 7 }
  0x26   : > { %3417 = dma.hbm_to_vmem [thread:$0]  (!%p3699_p11), %s6482_s5, 16384, %s210_s7, [#allocation6], %s3608_s13, %s3608_s13, %s3609_s14  }
  0x27   : > { %s6484_s18 = scalar_select %p3725_p3, 1, 0 }
  0x28   : > { %s3369_s26 = sshll.u32 %s223_s19, 3  ;;  %s3734_s12 = scalar_lea.hbm %s6044_s0, %s3390_s20 }
  0x29   : > { %s227_s7 = scalar_lea.vmem [#allocation2], %s3369_s26  ;;  %p3736_p11 = pnand %p3427_p2, %p39_p13 }
  0x2a   : > { %s235_s10 = sshll.u32 %s227_s7, 4  ;;  %s224_s13 = scalar_lea.sflag [#allocation3], %s223_s19  ;;  %s236_s10 = int_to_ptr.vmem [resolvable:$true] %s235_s10 }
  0x2b   : > { %s3509_s14 = scalar_lea.hbm %s3734_s12, 128  ;;  %p3511_p7 = pneg %p3736_p11 }
  0x2c   : > { %p3510_p5 = scmp.ne.s32.totalorder %s3734_s12, %s3509_s14  ;;  %s3514_s20 = scalar_lea.hbm %s6044_s0, 256 }
  0x2d   : > { %p3515_p10 = scmp.lt.s32.totalorder %s3734_s12, %s6044_s0  ;;  %p3516_p2 = scmp.lt.s32.totalorder %s3514_s20, %s3509_s14 }
  0x2e   : > { %p3512_p9 = pnand %p3511_p7, %p3510_p5 }
  0x2f   : > { %p3517_p13 = por %p3516_p2, %p3515_p10 }
  0x30   : > { %p3513_p12 = pneg %p3512_p9 }
  0x32   : > { %p3518_p0 = pnand %p3517_p13, %p3513_p12 }
  0x34   : > { %3521 = shalt.err (!%p3518_p0)
}
  0x35   : > { %s3522_s8 = scalar_lea.vmem %s236_s10, 128  ;;  %s3610_s19 = smov [#allocation2]  }
  0x36   : > { %p3523_p1 = scmp.ne.s32.totalorder %s236_s10, %s3522_s8  ;;  %s3527_s7 = sshll.u32 %s3610_s19, 4  ;;  %s3528_s7 = int_to_ptr.vmem [resolvable:$false] %s3527_s7 }
  0x37   : > { %s3529_s5 = scalar_lea.vmem %s3528_s7, 256  ;;  %p3530_p5 = scmp.lt.s32.totalorder %s236_s10, %s3528_s7 }
  0x38   : > { %p3525_p6 = pnand %p3523_p1, %p3511_p7  ;;  %p3531_p9 = scmp.lt.s32.totalorder %s3529_s5, %s3522_s8 }
  0x3a   : > { %p3526_p3 = pneg %p3525_p6  ;;  %p3532_p4 = por %p3531_p9, %p3530_p5 }
  0x3c   : > { %p3533_p8 = pnand %p3532_p4, %p3526_p3 }
  0x3e   : > { %3536 = shalt.err (!%p3533_p8)
}
  0x3f   : > { %3421 = dma.hbm_to_vmem [thread:$0]  (!%p3736_p11), %s3734_s12, 128, %s236_s10, %s224_s13  }
  0x40   : > { %p6486_p12 = scmp.ne.s32.totalorder %s6480_s29, 0 }
  0x42   : > { %244 = sbr.rel (%p6486_p12) target bundleno = 1394 (0x572), region = 44 }
  0x47   : > { %s3757_s14 = sand.u32 1, %s3597_s22   ;;  %p6487_p1 = scmp.ne.s32.totalorder %s6478_s27, 0 }
  0x48   : > { %s3373_s15 = sshll.u32 %s3757_s14, 3  ;;  %s247_s16 = scalar_lea.sflag [#allocation3], %s3757_s14 }
  0x49   : > { %s3763_s5 = scalar_lea.vmem [#allocation2], %s3373_s15 }
  0x4a   : > { %3580 = dma.done.wait (%p6487_p1), %s247_s16, 128  }
  0x4b   : > { %3582 = vsyncadd (%p6487_p1), %s247_s16, 4294967168  ;;  %p6488_p4 = scmp.eq.s32.totalorder %s3671_s25, 0 }
  0x4d   : > { %3584 = dma.done.wait (%p6488_p4), [#allocation6], 16384   ;;  %p6489_p6 = pmov %p6488_p4 }
  0x4e   : > { %vm287_vm0 = vcmask 1043456   ;;  %v283_v0 = vld [vmem:[%s3763_s5] sm:$0xff]  ;;  %v3611_v9 = vmov 0.0   ;;  %vm3612_vm1 = vmmov 0   ;;  %v300_v10 = vlaneseq  ;;  %v576_v28 = vld [vmem:[#allocation5 + $0xe8] sm:$0xff]  ;;  %v575_v32 = vld [vmem:[#allocation5 + $0xe0] sm:$0xff] }
  0x4f   : > { %3586 = vsyncadd (%p6489_p6), [#allocation6], 4294950912  ;;  %v285_v1 = vcombine.high %v283_v0, %v283_v0  ;;  %v293_v2 = vsel %vm287_vm0, %v283_v0, 0.0  ;;  %v288_v4 = vsel %vm287_vm0, %v283_v0, -inf  ;;  %v315_v8 = vld [vmem:[%s6045_s1] sm:$0xf]  ;;  %3396 = vmatprep.subr.mxu0 %v3611_v9  ;;  %3398 = vmatprep.mubr.msk.f32.mxu0 %vm3612_vm1, %v3611_v9 }
  0x50   : > { %3397 = vmatpush3.msk.msra.mxu0 %vm287_vm0, %v315_v8  ;;  %3401 = vmatprep.subr.mxu1 %v3611_v9  ;;  %v301_v11 = vand.u32 127, %v300_v10  ;;  %v3782_v12 = vshrl.u32 %v300_v10, 7  ;;  %vm313_vm2 = vcmask 1040384   ;;  %vm323_vm3 = vcmask 31744   ;;  %v401_v20 = vld [vmem:[%s6047_s3] sm:$0x3] }
  0x51   : > { %v294_v3 = vsel %vm287_vm0, %v285_v1, 0.0  ;;  %v289_v5 = vsel %vm287_vm0, %v285_v1, -inf  ;;  %3403 = vmatprep.mubr.msk.f32.mxu1 %vm3612_vm1, %v3611_v9  ;;  %vm413_vm4 = vcmask 1041408   ;;  %v3376_v21 = vld [vmem:[%s6046_s2] ss:$0 sm:$0xff]  ;;  %vm409_vm5 = vcmask 15360  }
  0x52   : > { %v295_v6 = vadd.f32 %v294_v3, %v293_v2  ;;  %v290_v7 = vmax.f32 %v288_v4, %v289_v5  ;;  %v304_v14 = vsub.s32 %v301_v11, %v3782_v12  ;;  %3402 = vmatpush3.msk.msra.mxu1 %vm413_vm4, %v401_v20  ;;  %v578_v26 = vld [vmem:[#allocation5 + $0xf8] sm:$0xff]  ;;  %v577_v27 = vld [vmem:[#allocation5 + $0xf0] sm:$0xff]  ;;  %v3795_v31 = vand.u32 4294901760, %v576_v28  ;;  %v572_v38 = vld [vmem:[#allocation5 + $0xc8] sm:$0xff]  ;;  %s3391_s26 = sshll.u32 %s3671_s25, 7  ;;  %s282_s8 = scalar_lea.vmem [#allocation7], %s3373_s15 }
  0x53   : > { %v3791_v29 = vand.u32 4294901760, %v578_v26  ;;  %v3793_v30 = vand.u32 4294901760, %v577_v27  ;;  %v574_v33 = vld [vmem:[#allocation5 + $0xd8] sm:$0xff]  ;;  %v573_v34 = vld [vmem:[#allocation5 + $0xd0] sm:$0xff]  ;;  %v3797_v35 = vand.u32 4294901760, %v575_v32  ;;  %v571_v39 = vld [vmem:[#allocation5 + $0xc0] sm:$0xff]  ;;  %s3283_s27 = scalar_lea.hbm %s6050_s6, %s3391_s26 }
  0x54   : > { %296 = vadd.xlane.f32.xlu0 %v295_v6  ;;  %v3799_v36 = vand.u32 4294901760, %v574_v33  ;;  %v3801_v37 = vand.u32 4294901760, %v573_v34  ;;  %v3810_v42 = vsub.f32 %v576_v28, %v3795_v31  ;;  %v3812_v43 = vand.u32 4294901760, %v572_v38  ;;  %v570_v0 = vld [vmem:[#allocation5 + $0xb8] sm:$0xff]  ;;  %v569_v1 = vld [vmem:[#allocation5 + $0xb0] sm:$0xff]  ;;  %v568_v2 = vld [vmem:[#allocation5 + $0xa8] sm:$0xff] }
  0x55   : > { %v3804_v40 = vsub.f32 %v578_v26, %v3791_v29  ;;  %v3807_v41 = vsub.f32 %v577_v27, %v3793_v30  ;;  %676 = vmatprep.subr.mxu0 %v3791_v29  ;;  %v3816_v44 = vsub.f32 %v575_v32, %v3797_v35  ;;  %v3824_v47 = vand.u32 4294901760, %v571_v39  ;;  %v566_v8 = vld [vmem:[#allocation5 + $0x98] sm:$0xff]  ;;  %v565_v9 = vld [vmem:[#allocation5 + $0x90] sm:$0xff]  ;;  %v563_v20 = vld [vmem:[#allocation5 + $0x80] sm:$0xff]  ;;  %s3285_s19 = sshll.u32 %s282_s8, 4  ;;  %s3271_s29 = scalar_lea.sflag [#allocation4], %s3757_s14  ;;  %s3286_s19 = int_to_ptr.vmem [resolvable:$true] %s3285_s19 }
  0x56   : > { %v3819_v45 = vsub.f32 %v574_v33, %v3799_v36  ;;  %v3822_v46 = vsub.f32 %v573_v34, %v3801_v37  ;;  %v6068_v50 = vand.u32 4294901760, %v3810_v42  ;;  %v3831_v51 = vsub.f32 %v572_v38, %v3812_v43  ;;  %s3537_s12 = scalar_lea.vmem %s3286_s19, 128  ;;  %p7239_p3 = scmp.ne.s32.totalorder %s6484_s18, 0 }
  0x57   : > { %6490 = vst [vmem:[#allocation11_spill] sm:$0xff] %v3804_v40  ;;  %v6073_v48 = vand.u32 4294901760, %v3804_v40  ;;  %v6072_v49 = vand.u32 4294901760, %v3807_v41  ;;  %v6067_v52 = vand.u32 4294901760, %v3816_v44  ;;  %v3838_v55 = vsub.f32 %v571_v39, %v3824_v47  ;;  %p3538_p8 = scmp.ne.s32.totalorder %s3286_s19, %s3537_s12  ;;  %s3614_s25 = smov [#allocation7]  }
  0x58   : > { %291 = vmax.xlane.f32.xlu0 %v290_v7  ;;  %v6066_v53 = vand.u32 4294901760, %v3819_v45  ;;  %v6065_v54 = vand.u32 4294901760, %v3822_v46  ;;  %v835_v58 = vsub.f32 %v3810_v42, %v6068_v50  ;;  %v6063_v59 = vand.u32 4294901760, %v3831_v51  ;;  %v567_v7 = vld [vmem:[#allocation5 + $0xa0] sm:$0xff]  ;;  %s3541_s10 = sshll.u32 %s3614_s25, 4  ;;  %s3542_s10 = int_to_ptr.vmem [resolvable:$false] %s3541_s10 }
  0x59   : > { %v823_v56 = vsub.f32 %v3804_v40, %v6073_v48  ;;  %v829_v57 = vsub.f32 %v3807_v41, %v6072_v49  ;;  %v841_v60 = vsub.f32 %v3816_v44, %v6067_v52  ;;  %v6062_v63 = vand.u32 4294901760, %v3838_v55  ;;  %v553_v49 = vld [vmem:[#allocation5 + $0x30] sm:$0xff]  ;;  %v552_v48 = vld [vmem:[#allocation5 + $0x28] sm:$0xff]  ;;  %p3539_p11 = pnand %p3538_p8, %p7239_p3  ;;  %s3543_s15 = scalar_lea.vmem %s3542_s10, 256 }
  0x5a   : > { %v847_v61 = vsub.f32 %v3819_v45, %v6066_v53  ;;  %v853_v62 = vsub.f32 %v3822_v46, %v6065_v54  ;;  %v836_v5 = vand.u32 4294901760, %v835_v58  ;;  %v859_v6 = vsub.f32 %v3831_v51, %v6063_v59  ;;  %p3544_p10 = scmp.lt.s32.totalorder %s3286_s19, %s3542_s10  ;;  %p3545_p2 = scmp.lt.s32.totalorder %s3543_s15, %s3537_s12 }
  0x5b   : > { %v824_v3 = vand.u32 4294901760, %v823_v56  ;;  %v830_v4 = vand.u32 4294901760, %v829_v57  ;;  %v842_v10 = vand.u32 4294901760, %v841_v60  ;;  %v3904_v38 = vand.u32 4294901760, %v563_v20  ;;  %p3540_p7 = pneg %p3539_p11 }
  0x5c   : > { %v848_v11 = vand.u32 4294901760, %v847_v61  ;;  %p3546_p13 = por %p3545_p2, %p3544_p10 }
  0x5d   : > { %825 = vmatprep.subr.mxu1 %v824_v3 }
  0x5e   : > { %p3547_p0 = pnand %p3546_p13, %p3540_p7 }
  0xdd   : > { %v297_v13 = vpop.xlane.xlu0 %296 }
  0xde   : > { %v298_v15 = vmul.f32 0.00390625, %v297_v13  ;;  %v854_v13 = vand.u32 4294901760, %v853_v62 }
  0xe0   : > { %v311_v17 = vrot.slane %v298_v15, %v304_v14  ;;  %v564_v15 = vld [vmem:[#allocation5 + $0x88] sm:$0xff] }
  0xe1   : > { %v292_v16 = vpop.xlane.xlu0 %291  ;;  %v3892_v28 = vand.u32 4294901760, %v564_v15 }
  0xe2   : > { %v305_v18 = vrot.slane %v292_v16, %v304_v14  ;;  %v865_v14 = vsub.f32 %v3838_v55, %v6062_v63  ;;  %v860_v16 = vand.u32 4294901760, %v859_v6  ;;  %v555_v63 = vld [vmem:[#allocation5 + $0x40] sm:$0xff] }
  0xe3   : > { %v3911_v58 = vsub.f32 %v564_v15, %v3892_v28 }
  0xe4   : > { %v314_v19 = vsel %vm313_vm2, %v305_v18, %v311_v17  ;;  %v3871_v17 = vand.u32 4294901760, %v570_v0  ;;  %v3873_v18 = vand.u32 4294901760, %v569_v1 }
  0xe5   : > { %3399 = vmatmul.mubr.msk.f32.vlgmr.msra.gmra.mxu0 %vm323_vm3, %v314_v19  ;;  %v3875_v19 = vand.u32 4294901760, %v568_v2  ;;  %6491 = vst [vmem:[#allocation12_spill] sm:$0xff] %v3911_v58 }
  0xe6   : > { %678 = vmatpush1.msra.mxu0 %v3793_v30  ;;  %v3887_v26 = vsub.f32 %v569_v1, %v3873_v18 }
  0xe7   : > { %680 = vmatprep.subr.mxu0 %v3795_v31  ;;  %v3890_v27 = vsub.f32 %v568_v2, %v3875_v19 }
  0xe8   : > { %682 = vmatpush1.msra.mxu0 %v3797_v35  ;;  %v6059_v56 = vand.u32 4294901760, %v3887_v26 }
  0xe9   : > { %684 = vmatprep.subr.mxu0 %v3799_v36  ;;  %v6058_v57 = vand.u32 4294901760, %v3890_v27 }
  0xea   : > { %686 = vmatpush1.msra.mxu0 %v3801_v37  ;;  %v877_v2 = vsub.f32 %v3887_v26, %v6059_v56 }
  0xeb   : > { %688 = vmatprep.subr.mxu0 %v3812_v43  ;;  %v883_v3 = vsub.f32 %v3890_v27, %v6058_v57 }
  0xec   : > { %690 = vmatpush1.msra.mxu0 %v3824_v47 }
  0xed   : > { %692 = vmatprep.subr.mxu0 %v3871_v17  ;;  %v884_v15 = vand.u32 4294901760, %v883_v3 }
  0xee   : > { %694 = vmatpush1.msra.mxu0 %v3873_v18 }
  0xef   : > { %696 = vmatprep.subr.mxu0 %v3875_v19 }
 0x1a5   : > { %v396_v22 = vpop.f32.mrf.mxu0 }
 0x1a6   : > { %v397_v23 = vadd.f32 %v3376_v21, %v396_v22  ;;  %v866_v21 = vand.u32 4294901760, %v865_v14  ;;  %v3877_v22 = vand.u32 4294901760, %v567_v7  ;;  %v878_v14 = vand.u32 4294901760, %v877_v2 }
 0x1a7   : > { %v3400_v24 = vpop.f32.mrf.mxu0 }
 0x1a8   : > { %v400_v25 = vmax.f32 %v397_v23, 0.0  ;;  %v3879_v23 = vand.u32 4294901760, %v566_v8  ;;  %v3881_v24 = vand.u32 4294901760, %v565_v9  ;;  %v3896_v32 = vsub.f32 %v567_v7, %v3877_v22  ;;  %698 = vmatpush1.msra.mxu0 %v3877_v22 }
 0x1aa   : > { %3404 = vmatmul.mubr.msk.f32.vlgmr.msra.gmra.mxu1 %vm409_vm5, %v400_v25  ;;  %v3884_v25 = vsub.f32 %v570_v0, %v3871_v17  ;;  %v3899_v33 = vsub.f32 %v566_v8, %v3879_v23  ;;  %v3902_v34 = vsub.f32 %v565_v9, %v3881_v24  ;;  %v6057_v60 = vand.u32 4294901760, %v3896_v32  ;;  %700 = vmatprep.subr.mxu0 %v3879_v23  ;;  %v562_v9 = vld [vmem:[#allocation5 + $0x78] sm:$0xff] }
 0x1ab   : > { %831 = vmatpush1.msra.mxu1 %v830_v4  ;;  %v3918_v0 = vsub.f32 %v563_v20, %v3904_v38  ;;  %v6061_v4 = vand.u32 4294901760, %v3911_v58  ;;  %702 = vmatpush1.msra.mxu0 %v3881_v24  ;;  %v559_v20 = vld [vmem:[#allocation5 + $0x60] sm:$0xff]  ;;  %v3951_v2 = vand.u32 4294901760, %v562_v9 }
 0x1ac   : > { %837 = vmatprep.subr.mxu1 %v836_v5  ;;  %v6060_v39 = vand.u32 4294901760, %v3884_v25  ;;  %v6055_v61 = vand.u32 4294901760, %v3899_v33  ;;  %v6056_v62 = vand.u32 4294901760, %v3902_v34  ;;  %v889_v5 = vsub.f32 %v3896_v32, %v6057_v60  ;;  %704 = vmatprep.subr.mxu0 %v3892_v28 }
 0x1ad   : > { %843 = vmatpush1.msra.mxu1 %v842_v10  ;;  %6492 = vst [vmem:[#allocation13_spill] sm:$0xff] %v3918_v0  ;;  %v6064_v8 = vand.u32 4294901760, %v3918_v0  ;;  %v561_v10 = vld [vmem:[#allocation5 + $0x70] sm:$0xff]  ;;  %706 = vmatpush1.msra.mxu0 %v3904_v38 }
 0x1ae   : > { %849 = vmatprep.subr.mxu1 %v848_v11  ;;  %v871_v1 = vsub.f32 %v3884_v25, %v6060_v39  ;;  %v895_v6 = vsub.f32 %v3899_v33, %v6055_v61  ;;  %v901_v7 = vsub.f32 %v3902_v34, %v6056_v62  ;;  %v560_v11 = vld [vmem:[#allocation5 + $0x68] sm:$0xff]  ;;  %v557_v61 = vld [vmem:[#allocation5 + $0x50] sm:$0xff]  ;;  %v890_v62 = vand.u32 4294901760, %v889_v5  ;;  %708 = vmatprep.subr.mxu0 %v3951_v2 }
 0x1af   : > { %855 = vmatpush1.msra.mxu1 %v854_v13  ;;  %v913_v56 = vsub.f32 %v3918_v0, %v6064_v8  ;;  %v556_v39 = vld [vmem:[#allocation5 + $0x48] sm:$0xff]  ;;  %v3953_v3 = vand.u32 4294901760, %v561_v10  ;;  %v3961_v59 = vand.u32 4294901760, %v557_v61  ;;  %v3964_v8 = vsub.f32 %v562_v9, %v3951_v2 }
 0x1b0   : > { %861 = vmatprep.subr.mxu1 %v860_v16  ;;  %v872_v13 = vand.u32 4294901760, %v871_v1  ;;  %v907_v16 = vsub.f32 %v3911_v58, %v6061_v4  ;;  %v896_v60 = vand.u32 4294901760, %v895_v6  ;;  %v902_v57 = vand.u32 4294901760, %v901_v7  ;;  %v548_v58 = vld [vmem:[#allocation5 + $0x8] sm:$0xff] }
 0x1b1   : > { %867 = vmatpush1.msra.mxu1 %v866_v21  ;;  %v558_v21 = vld [vmem:[#allocation5 + $0x58] sm:$0xff]  ;;  %v3955_v4 = vand.u32 4294901760, %v560_v11  ;;  %v914_v5 = vand.u32 4294901760, %v913_v56  ;;  %v3957_v6 = vand.u32 4294901760, %v559_v20  ;;  %6493 = vst [vmem:[#allocation14_spill] sm:$0xff] %v3964_v8  ;;  %v3972_v54 = vand.u32 4294901760, %v556_v39  ;;  %710 = vmatpush1.msra.mxu0 %v3953_v3 }
 0x1b2   : > { %873 = vmatprep.subr.mxu1 %v872_v13  ;;  %v908_v1 = vand.u32 4294901760, %v907_v16  ;;  %v3959_v7 = vand.u32 4294901760, %v558_v21  ;;  %v3967_v13 = vsub.f32 %v561_v10, %v3953_v3  ;;  %v3982_v9 = vsub.f32 %v557_v61, %v3961_v59 }
 0x1b3   : > { %879 = vmatpush1.msra.mxu1 %v878_v14  ;;  %v3970_v16 = vsub.f32 %v560_v11, %v3955_v4  ;;  %6496 = vst [vmem:[#allocation17_spill] sm:$0xff] %v3972_v54  ;;  %v3976_v56 = vsub.f32 %v559_v20, %v3957_v6  ;;  %v6070_v10 = vand.u32 4294901760, %v3964_v8  ;;  %v3991_v20 = vsub.f32 %v556_v39, %v3972_v54 }
 0x1b4   : > { %885 = vmatprep.subr.mxu1 %v884_v15  ;;  %6494 = vst [vmem:[#allocation15_spill] sm:$0xff] %v3967_v13  ;;  %v3979_v14 = vsub.f32 %v558_v21, %v3959_v7  ;;  %6499 = vst [vmem:[#allocation20_spill] sm:$0xff] %v3982_v9  ;;  %v3984_v15 = vand.u32 4294901760, %v555_v63  ;;  %v6069_v11 = vand.u32 4294901760, %v3967_v13  ;;  %712 = vmatprep.subr.mxu0 %v3955_v4  ;;  %v6084_v53 = vand.u32 4294901760, %v3982_v9 }
 0x1b5   : > { %6495 = vst [vmem:[#allocation16_spill] sm:$0xff] %v3970_v16  ;;  %891 = vmatpush1.msra.mxu1 %v890_v62  ;;  %6497 = vst [vmem:[#allocation18_spill] sm:$0xff] %v3976_v56  ;;  %v6071_v62 = vand.u32 4294901760, %v3970_v16  ;;  %v6076_v61 = vand.u32 4294901760, %v3976_v56  ;;  %714 = vmatpush1.msra.mxu0 %v3957_v6  ;;  %v919_v39 = vsub.f32 %v3964_v8, %v6070_v10 }
 0x1b6   : > { %6498 = vst [vmem:[#allocation19_spill] sm:$0xff] %v3979_v14  ;;  %6500 = vst [vmem:[#allocation21_spill] sm:$0xff] %v3984_v15  ;;  %897 = vmatprep.subr.mxu1 %v896_v60  ;;  %v6081_v21 = vand.u32 4294901760, %v3979_v14  ;;  %v3998_v60 = vsub.f32 %v555_v63, %v3984_v15  ;;  %716 = vmatprep.subr.mxu0 %v3959_v7 }
 0x1b7   : > { %6501 = vst [vmem:[#allocation22_spill] sm:$0xff] %v3991_v20  ;;  %903 = vmatpush1.msra.mxu1 %v902_v57  ;;  %v925_v57 = vsub.f32 %v3967_v13, %v6069_v11  ;;  %v931_v52 = vsub.f32 %v3970_v16, %v6071_v62  ;;  %v937_v63 = vsub.f32 %v3976_v56, %v6076_v61  ;;  %v554_v62 = vld [vmem:[#allocation5 + $0x38] sm:$0xff]  ;;  %v6503_v61 = vand.u32 4294901760, %v3991_v20  ;;  %v551_v13 = vld [vmem:[#allocation5 + $0x20] sm:$0xff] }
 0x1b8   : > { %6502 = vst [vmem:[#allocation23_spill] sm:$0xff] %v3998_v60  ;;  %909 = vmatprep.subr.mxu1 %v908_v1  ;;  %v943_v1 = vsub.f32 %v3979_v14, %v6081_v21  ;;  %v949_v11 = vsub.f32 %v3982_v9, %v6084_v53  ;;  %718 = vmatpush1.msra.mxu0 %v3961_v59  ;;  %v550_v21 = vld [vmem:[#allocation5 + $0x18] sm:$0xff]  ;;  %v549_v14 = vld [vmem:[#allocation5 + $0x10] sm:$0xff]  ;;  %v6504_v8 = vand.u32 4294901760, %v3998_v60 }
 0x1b9   : > { %915 = vmatpush1.msra.mxu1 %v914_v5  ;;  %v920_v5 = vand.u32 4294901760, %v919_v39  ;;  %v926_v50 = vand.u32 4294901760, %v925_v57  ;;  %v932_v16 = vand.u32 4294901760, %v931_v52  ;;  %v955_v56 = vsub.f32 %v3991_v20, %v6503_v61  ;;  %720 = vmatprep.subr.mxu0 %v3972_v54  ;;  %v547_v20 = vld [vmem:[#allocation5] sm:$0xff] }
 0x1ba   : > { %v938_v53 = vand.u32 4294901760, %v937_v63  ;;  %v944_v9 = vand.u32 4294901760, %v943_v1  ;;  %v950_v10 = vand.u32 4294901760, %v949_v11  ;;  %v961_v0 = vsub.f32 %v3998_v60, %v6504_v8  ;;  %722 = vmatpush1.msra.mxu0 %v3984_v15 }
 0x1bb   : > { %921 = vmatprep.subr.mxu1 %v920_v5  ;;  %v956_v52 = vand.u32 4294901760, %v955_v56  ;;  %v4031_v39 = vand.u32 4294901760, %v554_v62  ;;  %v4033_v61 = vand.u32 4294901760, %v553_v49  ;;  %v4035_v57 = vand.u32 4294901760, %v552_v48 }
 0x1bc   : > { %927 = vmatpush1.msra.mxu1 %v926_v50  ;;  %v962_v63 = vand.u32 4294901760, %v961_v0  ;;  %v4037_v1 = vand.u32 4294901760, %v551_v13  ;;  %v4039_v11 = vand.u32 4294901760, %v550_v21  ;;  %v4041_v54 = vand.u32 4294901760, %v549_v14 }
 0x1bd   : > { %6505 = vst [vmem:[#allocation24_spill] sm:$0xff] %v4031_v39  ;;  %6506 = vst [vmem:[#allocation25_spill] sm:$0xff] %v4033_v61  ;;  %933 = vmatprep.subr.mxu1 %v932_v16  ;;  %v4044_v8 = vsub.f32 %v554_v62, %v4031_v39  ;;  %v4047_v56 = vsub.f32 %v553_v49, %v4033_v61  ;;  %v4050_v5 = vsub.f32 %v552_v48, %v4035_v57 }
 0x1be   : > { %6507 = vst [vmem:[#allocation26_spill] sm:$0xff] %v4035_v57  ;;  %6508 = vst [vmem:[#allocation27_spill] sm:$0xff] %v4037_v1  ;;  %v4052_v60 = vand.u32 4294901760, %v548_v58  ;;  %724 = vmatprep.subr.mxu0 %v4031_v39  ;;  %939 = vmatpush1.msra.mxu1 %v938_v53  ;;  %v4056_v50 = vsub.f32 %v551_v13, %v4037_v1  ;;  %v4059_v0 = vsub.f32 %v550_v21, %v4039_v11  ;;  %v608_v39 = vld [vmem:[#allocation5 + $0x1e8] sm:$0xff] }
 0x1bf   : > { %6509 = vst [vmem:[#allocation28_spill] sm:$0xff] %v4039_v11  ;;  %6510 = vst [vmem:[#allocation29_spill] sm:$0xff] %v4041_v54  ;;  %v4062_v16 = vsub.f32 %v549_v14, %v4041_v54  ;;  %v4064_v62 = vand.u32 4294901760, %v547_v20  ;;  %726 = vmatpush1.msra.mxu0 %v4033_v61  ;;  %945 = vmatprep.subr.mxu1 %v944_v9  ;;  %v6101_v48 = vand.u32 4294901760, %v4044_v8  ;;  %v6104_v49 = vand.u32 4294901760, %v4047_v56 }
 0x1c0   : > { %6511 = vst [vmem:[#allocation30_spill] sm:$0xff] %v4044_v8  ;;  %6512 = vst [vmem:[#allocation31_spill] sm:$0xff] %v4047_v56  ;;  %v6107_v53 = vand.u32 4294901760, %v4050_v5  ;;  %v4071_v13 = vsub.f32 %v548_v58, %v4052_v60  ;;  %728 = vmatprep.subr.mxu0 %v4035_v57  ;;  %951 = vmatpush1.msra.mxu1 %v950_v10  ;;  %v6114_v14 = vand.u32 4294901760, %v4056_v50  ;;  %v607_v57 = vld [vmem:[#allocation5 + $0x1e0] sm:$0xff] }
 0x1c1   : > { %6513 = vst [vmem:[#allocation32_spill] sm:$0xff] %v4050_v5  ;;  %6514 = vst [vmem:[#allocation33_spill] sm:$0xff] %v4052_v60  ;;  %v4078_v9 = vsub.f32 %v547_v20, %v4064_v62  ;;  %730 = vmatpush1.msra.mxu0 %v4037_v1  ;;  %957 = vmatprep.subr.mxu1 %v956_v52  ;;  %v967_v58 = vsub.f32 %v4044_v8, %v6101_v48  ;;  %v6521_v52 = vand.u32 4294901760, %v4059_v0 }
 0x1c2   : > { %6515 = vst [vmem:[#allocation34_spill] sm:$0xff] %v4056_v50  ;;  %6516 = vst [vmem:[#allocation35_spill] sm:$0xff] %v4059_v0  ;;  %v973_v10 = vsub.f32 %v4047_v56, %v6104_v49  ;;  %v979_v21 = vsub.f32 %v4050_v5, %v6107_v53  ;;  %732 = vmatprep.subr.mxu0 %v4039_v11  ;;  %963 = vmatpush1.msra.mxu1 %v962_v63  ;;  %v6522_v8 = vand.u32 4294901760, %v4062_v16  ;;  %v610_v53 = vld [vmem:[#allocation5 + $0x1f8] sm:$0xff]  ;;  %v609_v5 = vld [vmem:[#allocation5 + $0x1f0] sm:$0xff] }
 0x1c3   : > { %6517 = vst [vmem:[#allocation36_spill] sm:$0xff] %v4062_v16  ;;  %6518 = vst [vmem:[#allocation37_spill] sm:$0xff] %v4064_v62  ;;  %v985_v20 = vsub.f32 %v4056_v50, %v6114_v14  ;;  %v991_v48 = vsub.f32 %v4059_v0, %v6521_v52  ;;  %734 = vmatpush1.msra.mxu0 %v4041_v54  ;;  %v968_v63 = vand.u32 4294901760, %v967_v58  ;;  %v6523_v14 = vand.u32 4294901760, %v4071_v13  ;;  %v606_v52 = vld [vmem:[#allocation5 + $0x1d8] sm:$0xff]  ;;  %v605_v0 = vld [vmem:[#allocation5 + $0x1d0] sm:$0xff] }
 0x1c4   : > { %6519 = vst [vmem:[#allocation38_spill] sm:$0xff] %v4071_v13  ;;  %6520 = vst [vmem:[#allocation39_spill] sm:$0xff] %v4078_v9  ;;  %v997_v49 = vsub.f32 %v4062_v16, %v6522_v8  ;;  %v974_v11 = vand.u32 4294901760, %v973_v10  ;;  %v980_v1 = vand.u32 4294901760, %v979_v21  ;;  %736 = vmatprep.subr.mxu0 %v4052_v60  ;;  %v6524_v61 = vand.u32 4294901760, %v4078_v9  ;;  %v604_v54 = vld [vmem:[#allocation5 + $0x1c8] sm:$0xff] }
 0x1c5   : > { %v1003_v50 = vsub.f32 %v4071_v13, %v6523_v14  ;;  %v986_v8 = vand.u32 4294901760, %v985_v20  ;;  %v992_v16 = vand.u32 4294901760, %v991_v48  ;;  %738 = vmatpush1.msra.mxu0 %v4064_v62  ;;  %969 = vmatprep.subr.mxu1 %v968_v63  ;;  %v4111_v58 = vand.u32 4294901760, %v610_v53  ;;  %v603_v13 = vld [vmem:[#allocation5 + $0x1c0] sm:$0xff] }
 0x1c6   : > { %v998_v56 = vand.u32 4294901760, %v997_v49  ;;  %v1009_v15 = vsub.f32 %v4078_v9, %v6524_v61  ;;  %v4113_v14 = vand.u32 4294901760, %v609_v5  ;;  %v4115_v10 = vand.u32 4294901760, %v608_v39  ;;  %975 = vmatpush1.msra.mxu1 %v974_v11 }
 0x1c7   : > { %v1004_v21 = vand.u32 4294901760, %v1003_v50  ;;  %6525 = vst [vmem:[#allocation40_spill] sm:$0xff] %v4111_v58  ;;  %v4117_v48 = vand.u32 4294901760, %v607_v57  ;;  %v4119_v49 = vand.u32 4294901760, %v606_v52  ;;  %v4121_v60 = vand.u32 4294901760, %v605_v0  ;;  %981 = vmatprep.subr.mxu1 %v980_v1  ;;  %740 = vmatprep.subr.mxu0 %v4111_v58 }
 0x1c8   : > { %6526 = vst [vmem:[#allocation41_spill] sm:$0xff] %v4113_v14  ;;  %6527 = vst [vmem:[#allocation42_spill] sm:$0xff] %v4115_v10  ;;  %v1010_v20 = vand.u32 4294901760, %v1009_v15  ;;  %v4124_v61 = vsub.f32 %v610_v53, %v4111_v58  ;;  %v4127_v50 = vsub.f32 %v609_v5, %v4113_v14  ;;  %v4130_v63 = vsub.f32 %v608_v39, %v4115_v10  ;;  %v600_v58 = vld [vmem:[#allocation5 + $0x1a8] sm:$0xff] }
 0x1c9   : > { %6528 = vst [vmem:[#allocation43_spill] sm:$0xff] %v4117_v48  ;;  %6529 = vst [vmem:[#allocation44_spill] sm:$0xff] %v4119_v49  ;;  %v4132_v9 = vand.u32 4294901760, %v604_v54  ;;  %987 = vmatpush1.msra.mxu1 %v986_v8  ;;  %v4136_v15 = vsub.f32 %v607_v57, %v4117_v48  ;;  %v4139_v11 = vsub.f32 %v606_v52, %v4119_v49  ;;  %v4144_v53 = vand.u32 4294901760, %v603_v13 }
 0x1ca   : > { %6530 = vst [vmem:[#allocation45_spill] sm:$0xff] %v4121_v60  ;;  %6531 = vst [vmem:[#allocation46_spill] sm:$0xff] %v4124_v61  ;;  %v4142_v1 = vsub.f32 %v605_v0, %v4121_v60  ;;  %742 = vmatpush2.msra.mxu0 %v4113_v14  ;;  %993 = vmatprep.subr.mxu1 %v992_v16  ;;  %v6137_v39 = vand.u32 4294901760, %v4124_v61  ;;  %v6140_v5 = vand.u32 4294901760, %v4127_v50  ;;  %v6143_v8 = vand.u32 4294901760, %v4130_v63 }
 0x1cb   : > { %6532 = vst [vmem:[#allocation47_spill] sm:$0xff] %v4127_v50  ;;  %6533 = vst [vmem:[#allocation48_spill] sm:$0xff] %v4130_v63  ;;  %v4151_v57 = vsub.f32 %v604_v54, %v4132_v9  ;;  %744 = vmatprep.subr.mxu0 %v4115_v10  ;;  %999 = vmatpush1.msra.mxu1 %v998_v56  ;;  %v6150_v0 = vand.u32 4294901760, %v4136_v15  ;;  %v4158_v16 = vsub.f32 %v603_v13, %v4144_v53 }
 0x1cc   : > { %6534 = vst [vmem:[#allocation49_spill] sm:$0xff] %v4132_v9  ;;  %6535 = vst [vmem:[#allocation50_spill] sm:$0xff] %v4136_v15  ;;  %746 = vmatpush2.msra.mxu0 %v4117_v48  ;;  %1005 = vmatprep.subr.mxu1 %v1004_v21  ;;  %v1015_v54 = vsub.f32 %v4124_v61, %v6137_v39  ;;  %v1021_v56 = vsub.f32 %v4127_v50, %v6140_v5  ;;  %v6541_v21 = vand.u32 4294901760, %v4139_v11 }
 0x1cd   : > { %6536 = vst [vmem:[#allocation51_spill] sm:$0xff] %v4139_v11  ;;  %6537 = vst [vmem:[#allocation52_spill] sm:$0xff] %v4142_v1  ;;  %v1027_v52 = vsub.f32 %v4130_v63, %v6143_v8  ;;  %748 = vmatprep.subr.mxu0 %v4119_v49  ;;  %1011 = vmatpush1.msra.mxu1 %v1010_v20  ;;  %v1033_v13 = vsub.f32 %v4136_v15, %v6150_v0  ;;  %v6542_v61 = vand.u32 4294901760, %v4142_v1  ;;  %v602_v8 = vld [vmem:[#allocation5 + $0x1b8] sm:$0xff]  ;;  %v601_v63 = vld [vmem:[#allocation5 + $0x1b0] sm:$0xff] }
 0x1ce   : > { %6538 = vst [vmem:[#allocation53_spill] sm:$0xff] %v4144_v53  ;;  %6539 = vst [vmem:[#allocation54_spill] sm:$0xff] %v4151_v57  ;;  %v1039_v39 = vsub.f32 %v4139_v11, %v6541_v21  ;;  %v6159_v50 = vand.u32 4294901760, %v4158_v16  ;;  %750 = vmatpush2.msra.mxu0 %v4121_v60  ;;  %v1016_v20 = vand.u32 4294901760, %v1015_v54  ;;  %v1022_v49 = vand.u32 4294901760, %v1021_v56 }
 0x1cf   : > { %6540 = vst [vmem:[#allocation55_spill] sm:$0xff] %v4158_v16  ;;  %v1045_v5 = vsub.f32 %v4142_v1, %v6542_v61  ;;  %v1028_v48 = vand.u32 4294901760, %v1027_v52  ;;  %v6543_v0 = vand.u32 4294901760, %v4151_v57  ;;  %752 = vmatprep.subr.mxu0 %v4132_v9  ;;  %v1034_v21 = vand.u32 4294901760, %v1033_v13 }
 0x1d0   : > { %v1057_v61 = vsub.f32 %v4158_v16, %v6159_v50  ;;  %754 = vmatpush2.msra.mxu0 %v4144_v53  ;;  %1017 = vmatprep.subr.mxu1 %v1016_v20  ;;  %v1040_v1 = vand.u32 4294901760, %v1039_v39  ;;  %v4191_v11 = vand.u32 4294901760, %v602_v8  ;;  %v4193_v54 = vand.u32 4294901760, %v601_v63  ;;  %v590_v53 = vld [vmem:[#allocation5 + $0x158] sm:$0xff] }
 0x1d1   : > { %v1051_v15 = vsub.f32 %v4151_v57, %v6543_v0  ;;  %v4195_v52 = vand.u32 4294901760, %v600_v58  ;;  %1023 = vmatpush2.msra.mxu1 %v1022_v49  ;;  %v1046_v56 = vand.u32 4294901760, %v1045_v5 }
 0x1d2   : > { %6544 = vst [vmem:[#allocation56_spill] sm:$0xff] %v4191_v11  ;;  %6545 = vst [vmem:[#allocation57_spill] sm:$0xff] %v4193_v54  ;;  %1029 = vmatprep.subr.mxu1 %v1028_v48  ;;  %v4198_v13 = vsub.f32 %v602_v8, %v4191_v11  ;;  %v4201_v57 = vsub.f32 %v601_v63, %v4193_v54  ;;  %756 = vmatprep.subr.mxu0 %v4191_v11  ;;  %v1058_v39 = vand.u32 4294901760, %v1057_v61 }
 0x1d3   : > { %6546 = vst [vmem:[#allocation58_spill] sm:$0xff] %v4195_v52  ;;  %v1052_v0 = vand.u32 4294901760, %v1051_v15  ;;  %v4204_v50 = vsub.f32 %v600_v58, %v4195_v52  ;;  %1035 = vmatpush2.msra.mxu1 %v1034_v21  ;;  %758 = vmatpush2.msra.mxu0 %v4193_v54  ;;  %v3379_v21 = vld [vmem:[%s6048_s4] ss:$0 sm:$0xff] }
 0x1d4   : > { %6547 = vst [vmem:[#allocation59_spill] sm:$0xff] %v4198_v13  ;;  %6548 = vst [vmem:[#allocation60_spill] sm:$0xff] %v4201_v57  ;;  %1041 = vmatprep.subr.mxu1 %v1040_v1  ;;  %v6160_v49 = vand.u32 4294901760, %v4198_v13  ;;  %v6161_v48 = vand.u32 4294901760, %v4201_v57  ;;  %760 = vmatprep.subr.mxu0 %v4195_v52 }
 0x1d5   : > { %6549 = vst [vmem:[#allocation61_spill] sm:$0xff] %v4204_v50  ;;  %v6166_v15 = vand.u32 4294901760, %v4204_v50  ;;  %1047 = vmatpush2.msra.mxu1 %v1046_v56 }
 0x1d6   : > { %1053 = vmatprep.subr.mxu1 %v1052_v0  ;;  %v1063_v58 = vsub.f32 %v4198_v13, %v6160_v49  ;;  %v1069_v63 = vsub.f32 %v4201_v57, %v6161_v48  ;;  %v599_v13 = vld [vmem:[#allocation5 + $0x1a0] sm:$0xff] }
 0x1d7   : > { %v1075_v1 = vsub.f32 %v4204_v50, %v6166_v15  ;;  %1059 = vmatpush2.msra.mxu1 %v1058_v39  ;;  %v4224_v15 = vand.u32 4294901760, %v599_v13  ;;  %v598_v39 = vld [vmem:[#allocation5 + $0x198] sm:$0xff]  ;;  %v592_v50 = vld [vmem:[#allocation5 + $0x168] sm:$0xff] }
 0x1d8   : > { %v1064_v5 = vand.u32 4294901760, %v1063_v58  ;;  %v1070_v8 = vand.u32 4294901760, %v1069_v63  ;;  %v4226_v58 = vand.u32 4294901760, %v598_v39  ;;  %v597_v63 = vld [vmem:[#allocation5 + $0x190] sm:$0xff] }
 0x1d9   : > { %v1076_v20 = vand.u32 4294901760, %v1075_v1  ;;  %6550 = vst [vmem:[#allocation62_spill] sm:$0xff] %v4224_v15  ;;  %v4229_v1 = vsub.f32 %v599_v13, %v4224_v15  ;;  %762 = vmatpush2.msra.mxu0 %v4224_v15  ;;  %v593_v15 = vld [vmem:[#allocation5 + $0x170] sm:$0xff] }
 0x1da   : > { %1065 = vmatprep.subr.mxu1 %v1064_v5  ;;  %6551 = vst [vmem:[#allocation63_spill] sm:$0xff] %v4226_v58  ;;  %v4231_v5 = vand.u32 4294901760, %v597_v63  ;;  %764 = vmatprep.subr.mxu0 %v4226_v58 }
 0x1db   : > { %1071 = vmatpush2.msra.mxu1 %v1070_v8  ;;  %6552 = vst [vmem:[#allocation64_spill] sm:$0xff] %v4229_v1  ;;  %v596_v8 = vld [vmem:[#allocation5 + $0x188] sm:$0xff]  ;;  %v6185_v13 = vand.u32 4294901760, %v4229_v1 }
 0x1dc   : > { %1077 = vmatprep.subr.mxu1 %v1076_v20  ;;  %6553 = vst [vmem:[#allocation65_spill] sm:$0xff] %v4231_v5  ;;  %v4235_v20 = vsub.f32 %v598_v39, %v4226_v58  ;;  %766 = vmatpush2.msra.mxu0 %v4231_v5 }
 0x1de   : > { %6554 = vst [vmem:[#allocation66_spill] sm:$0xff] %v4235_v20 }
 0x26a   : > { %v483_v61 = vpop.f32.mrf.mxu1 }
 0x26b   : > { %v484_v56 = vadd.f32 %v3379_v21, %v483_v61  ;;  %v4241_v21 = vsub.s32 0, %v3782_v12  ;;  %v4245_v61 = vsub.f32 %v597_v63, %v4231_v5  ;;  %v1081_v63 = vsub.f32 %v4229_v1, %v6185_v13  ;;  %v591_v13 = vld [vmem:[#allocation5 + $0x160] sm:$0xff] }
 0x26c   : > { %v3405_v0 = vpop.f32.mrf.mxu1  ;;  %v4293_v9 = vand.u32 4294901760, %v591_v13 }
 0x26d   : > { %v488_v49 = vrot.slane %v484_v56, 1  ;;  %6556 = vst [vmem:[#allocation68_spill] sm:$0xff] %v4241_v21  ;;  %6557 = vst [vmem:[#allocation69_spill] sm:$0xff] %v4245_v61  ;;  %v594_v0 = vld [vmem:[#allocation5 + $0x178] sm:$0xff]  ;;  %v6196_v52 = vand.u32 4294901760, %v4245_v61 }
 0x26e   : > { %v4254_v58 = vand.u32 4294901760, %v594_v0  ;;  %6567 = vst [vmem:[#allocation78_spill] sm:$0xff] %v4293_v9 }
 0x26f   : > { %v490_v48 = vadd.f32 %v488_v49, %v484_v56  ;;  %v4237_v49 = vand.u32 4294901760, %v596_v8  ;;  %v1093_v1 = vsub.f32 %v4245_v61, %v6196_v52 }
 0x270   : > { %6560 = vst [vmem:[#allocation72_spill] sm:$0xff] %v4254_v58  ;;  %v4272_v11 = vsub.f32 %v594_v0, %v4254_v58 }
 0x271   : > { %v3382_v57 = vmul.f32 -1.442695, %v490_v48  ;;  %6555 = vst [vmem:[#allocation67_spill] sm:$0xff] %v4237_v49  ;;  %v4252_v16 = vsub.f32 %v596_v8, %v4237_v49  ;;  %768 = vmatprep.subr.mxu0 %v4237_v49  ;;  %v6563_v8 = vand.u32 4294901760, %v4235_v20  ;;  %v1094_v52 = vand.u32 4294901760, %v1093_v1  ;;  %v587_v1 = vld [vmem:[#allocation5 + $0x140] sm:$0xff] }
 0x272   : > { %6564 = vst [vmem:[#allocation75_spill] sm:$0xff] %v4272_v11 }
 0x273   : > { %3469 = vpow2.f32 %v3382_v57  ;;  %v595_v57 = vld [vmem:[#allocation5 + $0x180] sm:$0xff]  ;;  %6559 = vst [vmem:[#allocation71_spill] sm:$0xff] %v4252_v16  ;;  %v1087_v5 = vsub.f32 %v4235_v20, %v6563_v8  ;;  %v6203_v49 = vand.u32 4294901760, %v4252_v16  ;;  %v6209_v20 = vand.u32 4294901760, %v4272_v11 }
 0x274   : > { %v4247_v56 = vand.u32 4294901760, %v595_v57 }
 0x275   : > { %v1088_v8 = vand.u32 4294901760, %v1087_v5  ;;  %v1099_v0 = vsub.f32 %v4252_v16, %v6203_v49  ;;  %v588_v5 = vld [vmem:[#allocation5 + $0x148] sm:$0xff]  ;;  %v1111_v49 = vsub.f32 %v4272_v11, %v6209_v20  ;;  %v586_v20 = vld [vmem:[#allocation5 + $0x138] sm:$0xff] }
 0x276   : > { %6558 = vst [vmem:[#allocation70_spill] sm:$0xff] %v4247_v56  ;;  %v4262_v54 = vsub.f32 %v595_v57, %v4247_v56  ;;  %770 = vmatpush2.msra.mxu0 %v4247_v56  ;;  %v1082_v57 = vand.u32 4294901760, %v1081_v63  ;;  %v4287_v63 = vand.u32 4294901760, %v592_v50 }
 0x277   : > { %772 = vmatprep.subr.mxu0 %v4254_v58  ;;  %v589_v58 = vld [vmem:[#allocation5 + $0x150] sm:$0xff] }
 0x278   : > { %6561 = vst [vmem:[#allocation73_spill] sm:$0xff] %v4262_v54  ;;  %v6206_v56 = vand.u32 4294901760, %v4262_v54  ;;  %6566 = vst [vmem:[#allocation77_spill] sm:$0xff] %v4287_v63  ;;  %1083 = vmatpush2.msra.mxu1 %v1082_v57  ;;  %v4299_v16 = vsub.f32 %v592_v50, %v4287_v63  ;;  %v4301_v57 = vand.u32 4294901760, %v590_v53  ;;  %v1112_v50 = vand.u32 4294901760, %v1111_v49  ;;  %v584_v49 = vld [vmem:[#allocation5 + $0x128] sm:$0xff] }
 0x279   : > { %1089 = vmatprep.subr.mxu1 %v1088_v8  ;;  %v4308_v8 = vsub.f32 %v591_v13, %v4293_v9 }
 0x27a   : > { %6568 = vst [vmem:[#allocation79_spill] sm:$0xff] %v4299_v16  ;;  %6569 = vst [vmem:[#allocation80_spill] sm:$0xff] %v4301_v57  ;;  %1095 = vmatpush2.msra.mxu1 %v1094_v52  ;;  %v6219_v11 = vand.u32 4294901760, %v4299_v16  ;;  %v4317_v52 = vand.u32 4294901760, %v588_v5 }
 0x27b   : > { %6570 = vst [vmem:[#allocation81_spill] sm:$0xff] %v4308_v8 }
 0x27c   : > { %6573 = vst [vmem:[#allocation84_spill] sm:$0xff] %v4317_v52 }
 0x280   : > { %v3470_v48 = vpop.eup %3469 }
 0x281   : > { %v494_v39 = vadd.f32 1.0, %v3470_v48  ;;  %v4264_v48 = vand.u32 4294901760, %v593_v15 }
 0x283   : > { %6562 = vst [vmem:[#allocation74_spill] sm:$0xff] %v4264_v48  ;;  %3471 = vrcp.f32 %v494_v39  ;;  %v4280_v39 = vsub.f32 %v593_v15, %v4264_v48  ;;  %774 = vmatpush2.msra.mxu0 %v4264_v48  ;;  %v1105_v15 = vsub.f32 %v4262_v54, %v6206_v56  ;;  %v1100_v48 = vand.u32 4294901760, %v1099_v0 }
 0x284   : > { %776 = vmatprep.subr.mxu0 %v4287_v63  ;;  %v4310_v0 = vand.u32 4294901760, %v589_v58  ;;  %v4315_v63 = vsub.f32 %v590_v53, %v4301_v57  ;;  %v1123_v53 = vsub.f32 %v4299_v16, %v6219_v11 }
 0x285   : > { %6565 = vst [vmem:[#allocation76_spill] sm:$0xff] %v4280_v39  ;;  %v6214_v61 = vand.u32 4294901760, %v4280_v39  ;;  %v1106_v56 = vand.u32 4294901760, %v1105_v15  ;;  %778 = vmatpush2.msra.mxu0 %v4293_v9  ;;  %1101 = vmatprep.subr.mxu1 %v1100_v48  ;;  %v585_v15 = vld [vmem:[#allocation5 + $0x130] sm:$0xff]  ;;  %v4324_v9 = vand.u32 4294901760, %v587_v1  ;;  %v4332_v48 = vsub.f32 %v588_v5, %v4317_v52 }
 0x286   : > { %6571 = vst [vmem:[#allocation82_spill] sm:$0xff] %v4310_v0  ;;  %6572 = vst [vmem:[#allocation83_spill] sm:$0xff] %v4315_v63  ;;  %780 = vmatprep.subr.mxu0 %v4301_v57  ;;  %v4344_v11 = vand.u32 4294901760, %v585_v15  ;;  %v1124_v5 = vand.u32 4294901760, %v1123_v53  ;;  %v6580_v16 = vand.u32 4294901760, %v4315_v63 }
 0x287   : > { %v1117_v54 = vsub.f32 %v4280_v39, %v6214_v61  ;;  %1107 = vmatpush2.msra.mxu1 %v1106_v56  ;;  %v6226_v61 = vand.u32 4294901760, %v4308_v8  ;;  %v4322_v39 = vsub.f32 %v589_v58, %v4310_v0  ;;  %6575 = vst [vmem:[#allocation86_spill] sm:$0xff] %v4324_v9  ;;  %782 = vmatpush2.msra.mxu0 %v4310_v0  ;;  %6576 = vst [vmem:[#allocation87_spill] sm:$0xff] %v4332_v48 }
 0x288   : > { %1113 = vmatprep.subr.mxu1 %v1112_v50  ;;  %784 = vmatprep.subr.mxu0 %v4317_v52  ;;  %v4342_v50 = vsub.f32 %v587_v1, %v4324_v9  ;;  %6579 = vst [vmem:[#allocation90_spill] sm:$0xff] %v4344_v11  ;;  %v1135_v52 = vsub.f32 %v4315_v63, %v6580_v16 }
 0x289   : > { %v1118_v13 = vand.u32 4294901760, %v1117_v54  ;;  %6574 = vst [vmem:[#allocation85_spill] sm:$0xff] %v4322_v39  ;;  %v4334_v54 = vand.u32 4294901760, %v586_v20  ;;  %v1129_v58 = vsub.f32 %v4308_v8, %v6226_v61  ;;  %v6237_v56 = vand.u32 4294901760, %v4322_v39  ;;  %786 = vmatpush2.msra.mxu0 %v4324_v9  ;;  %v583_v61 = vld [vmem:[#allocation5 + $0x120] sm:$0xff] }
 0x28a   : > { %6578 = vst [vmem:[#allocation89_spill] sm:$0xff] %v4342_v50  ;;  %v6247_v9 = vand.u32 4294901760, %v4342_v50  ;;  %v4360_v53 = vsub.f32 %v585_v15, %v4344_v11  ;;  %v1136_v16 = vand.u32 4294901760, %v1135_v52  ;;  %v581_v52 = vld [vmem:[#allocation5 + $0x110] sm:$0xff] }
 0x28b   : > { %6577 = vst [vmem:[#allocation88_spill] sm:$0xff] %v4334_v54  ;;  %1119 = vmatpush2.msra.mxu1 %v1118_v13  ;;  %v6242_v13 = vand.u32 4294901760, %v4332_v48  ;;  %v4352_v0 = vsub.f32 %v586_v20, %v4334_v54  ;;  %788 = vmatprep.subr.mxu0 %v4334_v54  ;;  %v1130_v1 = vand.u32 4294901760, %v1129_v58  ;;  %v1141_v8 = vsub.f32 %v4322_v39, %v6237_v56  ;;  %v582_v54 = vld [vmem:[#allocation5 + $0x118] sm:$0xff] }
 0x28c   : > { %790 = vmatpush2.msra.mxu0 %v4344_v11  ;;  %1125 = vmatprep.subr.mxu1 %v1124_v5  ;;  %v4367_v58 = vand.u32 4294901760, %v584_v49  ;;  %v1153_v15 = vsub.f32 %v4342_v50, %v6247_v9  ;;  %v6250_v39 = vand.u32 4294901760, %v4360_v53  ;;  %v4373_v5 = vand.u32 4294901760, %v583_v61  ;;  %v580_v11 = vld [vmem:[#allocation5 + $0x108] sm:$0xff] }
 0x28d   : > { %6581 = vst [vmem:[#allocation91_spill] sm:$0xff] %v4352_v0  ;;  %v1147_v20 = vsub.f32 %v4332_v48, %v6242_v13  ;;  %1131 = vmatpush2.msra.mxu1 %v1130_v1  ;;  %v1142_v56 = vand.u32 4294901760, %v1141_v8  ;;  %v6583_v48 = vand.u32 4294901760, %v4352_v0  ;;  %v579_v1 = vld [vmem:[#allocation5 + $0x100] sm:$0xff] }
 0x28e   : > { %6582 = vst [vmem:[#allocation92_spill] sm:$0xff] %v4373_v5  ;;  %1137 = vmatprep.subr.mxu1 %v1136_v16  ;;  %v4380_v8 = vsub.f32 %v584_v49, %v4367_v58  ;;  %792 = vmatprep.subr.mxu0 %v4367_v58  ;;  %v1154_v9 = vand.u32 4294901760, %v1153_v15  ;;  %v1165_v50 = vsub.f32 %v4360_v53, %v6250_v39  ;;  %v4389_v16 = vand.u32 4294901760, %v582_v54 }
 0x28f   : > { %v1148_v63 = vand.u32 4294901760, %v1147_v20  ;;  %v1159_v60 = vsub.f32 %v4352_v0, %v6583_v48  ;;  %1143 = vmatpush2.msra.mxu1 %v1142_v56  ;;  %794 = vmatpush2.msra.mxu0 %v4373_v5  ;;  %v4393_v20 = vand.u32 4294901760, %v581_v52  ;;  %v4395_v56 = vand.u32 4294901760, %v580_v11 }
 0x290   : > { %v3472_v57 = vpop.eup %3471  ;;  %6584 = vst [vmem:[#allocation93_spill] sm:$0xff] %v4380_v8  ;;  %v6253_v48 = vand.u32 4294901760, %v4380_v8  ;;  %v1166_v15 = vand.u32 4294901760, %v1165_v50  ;;  %796 = vmatprep.subr.mxu0 %v4389_v16 }
 0x291   : > { %v500_v13 = vrot.slane %v3472_v57, %v4241_v21  ;;  %v4387_v57 = vsub.f32 %v583_v61, %v4373_v5  ;;  %1149 = vmatprep.subr.mxu1 %v1148_v63  ;;  %v1160_v49 = vand.u32 4294901760, %v1159_v60  ;;  %v4399_v61 = vsub.f32 %v582_v54, %v4389_v16  ;;  %798 = vmatpush2.msra.mxu0 %v4393_v20 }
 0x292   : > { %1155 = vmatpush2.msra.mxu1 %v1154_v9  ;;  %v4401_v21 = vand.u32 4294901760, %v579_v1  ;;  %v1171_v60 = vsub.f32 %v4380_v8, %v6253_v48  ;;  %v4408_v63 = vsub.f32 %v581_v52, %v4393_v20  ;;  %v4411_v9 = vsub.f32 %v580_v11, %v4395_v56  ;;  %800 = vmatprep.subr.mxu0 %v4395_v56 }
 0x293   : > { %6585 = vst [vmem:[#allocation94_spill] sm:$0xff] %v4387_v57  ;;  %502 = vbcast.lane.b32.xlu1 %v500_v13, 256  ;;  %v6254_v39 = vand.u32 4294901760, %v4387_v57  ;;  %6586 = vst [vmem:[#allocation95_spill] sm:$0xff] %v4399_v61  ;;  %1161 = vmatprep.subr.mxu1 %v1160_v49  ;;  %v6257_v50 = vand.u32 4294901760, %v4399_v61 }
 0x294   : > { %6587 = vst [vmem:[#allocation96_spill] sm:$0xff] %v4408_v63  ;;  %6588 = vst [vmem:[#allocation97_spill] sm:$0xff] %v4411_v9  ;;  %1167 = vmatpush2.msra.mxu1 %v1166_v15  ;;  %v4419_v13 = vsub.f32 %v579_v1, %v4401_v21  ;;  %v1172_v49 = vand.u32 4294901760, %v1171_v60  ;;  %v6261_v52 = vand.u32 4294901760, %v4408_v63  ;;  %v6264_v11 = vand.u32 4294901760, %v4411_v9  ;;  %802 = vmatpush2.msra.mxu0 %v4401_v21 }
 0x295   : > { %v1177_v54 = vsub.f32 %v4387_v57, %v6254_v39  ;;  %v1183_v15 = vsub.f32 %v4399_v61, %v6257_v50  ;;  %1215 = vmatprep.subr.mxu0 %v3804_v40 }
 0x296   : > { %6589 = vst [vmem:[#allocation98_spill] sm:$0xff] %v4419_v13  ;;  %v6269_v39 = vand.u32 4294901760, %v4419_v13  ;;  %1173 = vmatprep.subr.mxu1 %v1172_v49  ;;  %v1189_v1 = vsub.f32 %v4408_v63, %v6261_v52  ;;  %v1195_v60 = vsub.f32 %v4411_v9, %v6264_v11  ;;  %v3613_v49 = vmov 839922192   ;;  %v3481_v9 = vld [vmem:[%s3763_s5] sm:$0xff] }
 0x297   : > { %v1178_v48 = vand.u32 4294901760, %v1177_v54  ;;  %v1184_v57 = vand.u32 4294901760, %v1183_v15  ;;  %v506_v52 = vunpack.c.l.s4 %v3613_v49 }
 0x298   : > { %v1201_v54 = vsub.f32 %v4419_v13, %v6269_v39  ;;  %v1190_v50 = vand.u32 4294901760, %v1189_v1  ;;  %v1196_v61 = vand.u32 4294901760, %v1195_v60 }
 0x299   : > { %1179 = vmatpush2.msra.mxu1 %v1178_v48  ;;  %v507_v63 = vunpack.c.0.s8 %v506_v52 }
 0x29a   : > { %1185 = vmatprep.subr.mxu1 %v1184_v57  ;;  %v1202_v40 = vand.u32 4294901760, %v1201_v54 }
 0x29b   : > { %1191 = vmatpush2.msra.mxu1 %v1190_v50  ;;  %v510_v48 = vsub.s32 %v507_v63, %v3782_v12 }
 0x29c   : > { %1197 = vmatprep.subr.mxu1 %v1196_v61 }
 0x29d   : > { %1203 = vmatpush2.msra.mxu1 %v1202_v40 }
 0x29e   : > { %1417 = vmatprep.subr.mxu1 %v3791_v29 }
 0x305   : > { %v503_v15 = vpop.permute.xlu1 %502 }
 0x306   : > { %v511_v11 = vrot.slane %v503_v15, %v510_v48 }
 0x308   : > { %v4442_v8 = vmul.f32 %v3481_v9, %v511_v11 }
 0x30a   : > { %6590 = vst [vmem:[#allocation99_spill] sm:$0xff] %v4442_v8  ;;  %v4446_v1 = vcombine.high %v4442_v8, %v4442_v8  ;;  %v517_v57 = vsel %vm287_vm0, %v4442_v8, -inf }
 0x30b   : > { %v518_v40 = vrot.slane %v517_v57, 4 }
 0x30c   : > { %v524_v61 = vsel %vm287_vm0, %v4446_v1, -inf }
 0x30d   : > { %v519_v50 = vmax.f32 %v517_v57, %v518_v40  ;;  %v525_v52 = vrot.slane %v524_v61, 4 }
 0x30f   : > { %v526_v60 = vmax.f32 %v524_v61, %v525_v52  ;;  %v520_v12 = vrot.slane %v519_v50, 2 }
 0x311   : > { %v527_v63 = vrot.slane %v526_v60, 2  ;;  %v521_v54 = vmax.f32 %v519_v50, %v520_v12 }
 0x313   : > { %v528_v49 = vmax.f32 %v526_v60, %v527_v63  ;;  %v522_v9 = vrot.slane %v521_v54, 1  ;;  %v6592_v63 = vld [vmem:[#allocation12_spill] sm:$0xff] }
 0x315   : > { %v529_v11 = vrot.slane %v528_v49, 1  ;;  %v523_v48 = vmax.f32 %v521_v54, %v522_v9  ;;  %v6593_v54 = vld [vmem:[#allocation17_spill] sm:$0xff] }
 0x316   : > { %v6595_v9 = vld [vmem:[#allocation21_spill] sm:$0xff] }
 0x317   : > { %v530_v15 = vmax.f32 %v528_v49, %v529_v11  ;;  %v4452_v39 = vand.u32 4294901760, %v523_v48  ;;  %v6594_v49 = vld [vmem:[#allocation13_spill] sm:$0xff]  ;;  %v6596_v11 = vld [vmem:[#allocation14_spill] sm:$0xff] }
 0x319   : > { %6591 = vst [vmem:[#allocation100_spill] sm:$0xff] %v4452_v39  ;;  %v4454_v13 = vand.u32 4294901760, %v530_v15  ;;  %v4457_v8 = vsub.f32 %v523_v48, %v4452_v39  ;;  %v6597_v48 = vld [vmem:[#allocation24_spill] sm:$0xff] }
 0x31b   : > { %1205 = vmatprep.mubr.f32.mxu1 %v4454_v13  ;;  %v804_v57 = vsub.f32 %v530_v15, %v4454_v13  ;;  %v6274_v40 = vand.u32 4294901760, %v4457_v8  ;;  %v6598_v15 = vld [vmem:[#allocation15_spill] sm:$0xff] }
 0x31c   : > { %1207 = vmatmul.mubr.f32.vlgmr.msra.gmra.mxu1 %v4452_v39  ;;  %v6606_v39 = vld [vmem:[#allocation20_spill] sm:$0xff] }
 0x31d   : > { %1419 = vmatpush1.msra.mxu1 %v3793_v30  ;;  %v805_v61 = vand.u32 4294901760, %v804_v57  ;;  %v812_v50 = vsub.f32 %v4457_v8, %v6274_v40  ;;  %v6605_v40 = vld [vmem:[#allocation28_spill] sm:$0xff] }
 0x31e   : > { %1421 = vmatprep.subr.mxu1 %v3795_v31 }
 0x31f   : > { %1423 = vmatpush1.msra.mxu1 %v3797_v35  ;;  %1547 = vmatprep.mubr.f32.mxu1 %v805_v61  ;;  %v806_v52 = vsub.f32 %v804_v57, %v805_v61  ;;  %v813_v12 = vand.u32 4294901760, %v812_v50  ;;  %v6600_v61 = vld [vmem:[#allocation16_spill] sm:$0xff]  ;;  %v6601_v50 = vld [vmem:[#allocation26_spill] sm:$0xff] }
 0x320   : > { %1425 = vmatprep.subr.mxu1 %v3799_v36 }
 0x321   : > { %1427 = vmatpush1.msra.mxu1 %v3801_v37  ;;  %v807_v60 = vand.u32 4294901760, %v806_v52  ;;  %v6602_v52 = vld [vmem:[#allocation18_spill] sm:$0xff] }
 0x322   : > { %1429 = vmatprep.subr.mxu1 %v3812_v43 }
 0x323   : > { %1431 = vmatpush1.msra.mxu1 %v3824_v47  ;;  %808 = vmatprep.mubr.f32.mxu0 %v807_v60  ;;  %v6603_v60 = vld [vmem:[#allocation27_spill] sm:$0xff] }
 0x324   : > { %1433 = vmatprep.subr.mxu1 %v3871_v17  ;;  %814 = vmatmul.mubr.f32.vlgmr.msra.gmra.mxu0 %v813_v12  ;;  %v6604_v12 = vld [vmem:[#allocation19_spill] sm:$0xff] }
 0x325   : > { %1218 = vmatpush1.msra.mxu0 %v3807_v41  ;;  %1435 = vmatpush1.msra.mxu1 %v3873_v18 }
 0x326   : > { %1221 = vmatprep.subr.mxu0 %v3810_v42  ;;  %1407 = vmatprep.mubr.f32.mxu0 %v804_v57  ;;  %v6599_v57 = vld [vmem:[#allocation25_spill] sm:$0xff] }
 0x327   : > { %1437 = vmatprep.subr.mxu1 %v3875_v19  ;;  %1224 = vmatpush1.msra.mxu0 %v3816_v44 }
 0x328   : > { %1439 = vmatpush1.msra.mxu1 %v3877_v22  ;;  %1227 = vmatprep.subr.mxu0 %v3819_v45 }
 0x329   : > { %1441 = vmatprep.subr.mxu1 %v3879_v23  ;;  %1230 = vmatpush1.msra.mxu0 %v3822_v46 }
 0x32a   : > { %1443 = vmatpush1.msra.mxu1 %v3881_v24  ;;  %1233 = vmatprep.subr.mxu0 %v3831_v51 }
 0x32b   : > { %1445 = vmatprep.subr.mxu1 %v3892_v28  ;;  %1236 = vmatpush1.msra.mxu0 %v3838_v55 }
 0x32c   : > { %1447 = vmatpush1.msra.mxu1 %v3904_v38  ;;  %1239 = vmatprep.subr.mxu0 %v3884_v25 }
 0x32d   : > { %1449 = vmatprep.subr.mxu1 %v3951_v2  ;;  %1242 = vmatpush1.msra.mxu0 %v3887_v26 }
 0x32e   : > { %1451 = vmatpush1.msra.mxu1 %v3953_v3  ;;  %1245 = vmatprep.subr.mxu0 %v3890_v27 }
 0x32f   : > { %1453 = vmatprep.subr.mxu1 %v3955_v4  ;;  %1248 = vmatpush1.msra.mxu0 %v3896_v32 }
 0x330   : > { %1455 = vmatpush1.msra.mxu1 %v3957_v6  ;;  %1251 = vmatprep.subr.mxu0 %v3899_v33 }
 0x331   : > { %1457 = vmatprep.subr.mxu1 %v3959_v7  ;;  %1254 = vmatpush1.msra.mxu0 %v3902_v34 }
 0x332   : > { %1459 = vmatpush1.msra.mxu1 %v3961_v59  ;;  %1257 = vmatprep.subr.mxu0 %v6592_v63 }
 0x333   : > { %1461 = vmatprep.subr.mxu1 %v6593_v54  ;;  %1260 = vmatpush1.msra.mxu0 %v6594_v49 }
 0x334   : > { %1463 = vmatpush1.msra.mxu1 %v6595_v9  ;;  %1263 = vmatprep.subr.mxu0 %v6596_v11  ;;  %v6607_v11 = vld [vmem:[#allocation29_spill] sm:$0xff] }
 0x335   : > { %1465 = vmatprep.subr.mxu1 %v6597_v48  ;;  %1266 = vmatpush1.msra.mxu0 %v6598_v15  ;;  %v6608_v48 = vld [vmem:[#allocation22_spill] sm:$0xff]  ;;  %v6609_v15 = vld [vmem:[#allocation33_spill] sm:$0xff] }
 0x336   : > { %1467 = vmatpush1.msra.mxu1 %v6599_v57  ;;  %1269 = vmatprep.subr.mxu0 %v6600_v61  ;;  %v6610_v57 = vld [vmem:[#allocation23_spill] sm:$0xff] }
 0x337   : > { %1469 = vmatprep.subr.mxu1 %v6601_v50  ;;  %1272 = vmatpush1.msra.mxu0 %v6602_v52  ;;  %v6611_v50 = vld [vmem:[#allocation30_spill] sm:$0xff]  ;;  %v6612_v52 = vld [vmem:[#allocation40_spill] sm:$0xff] }
 0x338   : > { %1471 = vmatpush1.msra.mxu1 %v6603_v60  ;;  %1275 = vmatprep.subr.mxu0 %v6604_v12  ;;  %v6613_v60 = vld [vmem:[#allocation31_spill] sm:$0xff] }
 0x339   : > { %1473 = vmatprep.subr.mxu1 %v6605_v40  ;;  %1278 = vmatpush1.msra.mxu0 %v6606_v39  ;;  %v6614_v40 = vld [vmem:[#allocation32_spill] sm:$0xff] }
 0x33a   : > { %1475 = vmatpush1.msra.mxu1 %v6607_v11  ;;  %1281 = vmatprep.subr.mxu0 %v6608_v48  ;;  %v6615_v11 = vld [vmem:[#allocation34_spill] sm:$0xff]  ;;  %v6616_v48 = vld [vmem:[#allocation43_spill] sm:$0xff] }
 0x33b   : > { %1477 = vmatprep.subr.mxu1 %v6609_v15  ;;  %1284 = vmatpush1.msra.mxu0 %v6610_v57  ;;  %v6617_v15 = vld [vmem:[#allocation35_spill] sm:$0xff]  ;;  %v6618_v57 = vld [vmem:[#allocation44_spill] sm:$0xff] }
 0x33c   : > { %1479 = vmatpush1.msra.mxu1 %v4064_v62  ;;  %1287 = vmatprep.subr.mxu0 %v6611_v50  ;;  %v6619_v62 = vld [vmem:[#allocation36_spill] sm:$0xff]  ;;  %v6620_v50 = vld [vmem:[#allocation45_spill] sm:$0xff] }
 0x33d   : > { %1481 = vmatprep.subr.mxu1 %v6612_v52  ;;  %1290 = vmatpush1.msra.mxu0 %v6613_v60  ;;  %v6621_v52 = vld [vmem:[#allocation38_spill] sm:$0xff]  ;;  %v6622_v60 = vld [vmem:[#allocation49_spill] sm:$0xff] }
 0x33e   : > { %1483 = vmatpush2.msra.mxu1 %v4113_v14  ;;  %1293 = vmatprep.subr.mxu0 %v6614_v40  ;;  %v6623_v14 = vld [vmem:[#allocation39_spill] sm:$0xff]  ;;  %v6624_v40 = vld [vmem:[#allocation53_spill] sm:$0xff] }
 0x33f   : > { %1485 = vmatprep.subr.mxu1 %v4115_v10  ;;  %1296 = vmatpush1.msra.mxu0 %v6615_v11  ;;  %v6625_v10 = vld [vmem:[#allocation46_spill] sm:$0xff]  ;;  %v6626_v11 = vld [vmem:[#allocation56_spill] sm:$0xff] }
 0x340   : > { %1487 = vmatpush2.msra.mxu1 %v6616_v48  ;;  %1299 = vmatprep.subr.mxu0 %v6617_v15  ;;  %v6627_v48 = vld [vmem:[#allocation47_spill] sm:$0xff]  ;;  %v6628_v15 = vld [vmem:[#allocation57_spill] sm:$0xff] }
 0x341   : > { %1489 = vmatprep.subr.mxu1 %v6618_v57  ;;  %1302 = vmatpush1.msra.mxu0 %v6619_v62  ;;  %v6629_v57 = vld [vmem:[#allocation48_spill] sm:$0xff]  ;;  %v6630_v62 = vld [vmem:[#allocation58_spill] sm:$0xff] }
 0x342   : > { %1491 = vmatpush2.msra.mxu1 %v6620_v50  ;;  %1305 = vmatprep.subr.mxu0 %v6621_v52  ;;  %v6631_v50 = vld [vmem:[#allocation50_spill] sm:$0xff] }
 0x343   : > { %1493 = vmatprep.subr.mxu1 %v6622_v60  ;;  %1308 = vmatpush1.msra.mxu0 %v6623_v14  ;;  %v6632_v52 = vld [vmem:[#allocation62_spill] sm:$0xff]  ;;  %v6633_v60 = vld [vmem:[#allocation51_spill] sm:$0xff] }
 0x344   : > { %1495 = vmatpush2.msra.mxu1 %v6624_v40  ;;  %1311 = vmatprep.subr.mxu0 %v6625_v10  ;;  %v6634_v14 = vld [vmem:[#allocation63_spill] sm:$0xff]  ;;  %v6635_v40 = vld [vmem:[#allocation52_spill] sm:$0xff]  ;;  %v6636_v10 = vld [vmem:[#allocation65_spill] sm:$0xff] }
 0x345   : > { %1497 = vmatprep.subr.mxu1 %v6626_v11  ;;  %1314 = vmatpush2.msra.mxu0 %v6627_v48  ;;  %v6637_v11 = vld [vmem:[#allocation54_spill] sm:$0xff]  ;;  %v6638_v48 = vld [vmem:[#allocation67_spill] sm:$0xff] }
 0x346   : > { %1499 = vmatpush2.msra.mxu1 %v6628_v15  ;;  %1317 = vmatprep.subr.mxu0 %v6629_v57  ;;  %v6639_v15 = vld [vmem:[#allocation55_spill] sm:$0xff]  ;;  %v6640_v57 = vld [vmem:[#allocation70_spill] sm:$0xff] }
 0x347   : > { %1501 = vmatprep.subr.mxu1 %v6630_v62  ;;  %1320 = vmatpush2.msra.mxu0 %v6631_v50  ;;  %v6641_v62 = vld [vmem:[#allocation59_spill] sm:$0xff]  ;;  %v6642_v50 = vld [vmem:[#allocation72_spill] sm:$0xff] }
 0x348   : > { %1503 = vmatpush2.msra.mxu1 %v6632_v52  ;;  %1323 = vmatprep.subr.mxu0 %v6633_v60  ;;  %v6643_v52 = vld [vmem:[#allocation60_spill] sm:$0xff]  ;;  %v6644_v60 = vld [vmem:[#allocation74_spill] sm:$0xff] }
 0x349   : > { %1505 = vmatprep.subr.mxu1 %v6634_v14  ;;  %1326 = vmatpush2.msra.mxu0 %v6635_v40  ;;  %v6645_v14 = vld [vmem:[#allocation61_spill] sm:$0xff] }
 0x34a   : > { %1507 = vmatpush2.msra.mxu1 %v6636_v10  ;;  %1329 = vmatprep.subr.mxu0 %v6637_v11  ;;  %v6646_v40 = vld [vmem:[#allocation77_spill] sm:$0xff]  ;;  %v6647_v10 = vld [vmem:[#allocation64_spill] sm:$0xff]  ;;  %v6648_v11 = vld [vmem:[#allocation78_spill] sm:$0xff] }
 0x34b   : > { %1509 = vmatprep.subr.mxu1 %v6638_v48  ;;  %1332 = vmatpush2.msra.mxu0 %v6639_v15  ;;  %v6649_v48 = vld [vmem:[#allocation66_spill] sm:$0xff]  ;;  %v6650_v15 = vld [vmem:[#allocation80_spill] sm:$0xff] }
 0x34c   : > { %1511 = vmatpush2.msra.mxu1 %v6640_v57  ;;  %1335 = vmatprep.subr.mxu0 %v6641_v62  ;;  %v6651_v57 = vld [vmem:[#allocation69_spill] sm:$0xff]  ;;  %v6652_v62 = vld [vmem:[#allocation82_spill] sm:$0xff] }
 0x34d   : > { %1513 = vmatprep.subr.mxu1 %v6642_v50  ;;  %1338 = vmatpush2.msra.mxu0 %v6643_v52  ;;  %v6653_v50 = vld [vmem:[#allocation71_spill] sm:$0xff]  ;;  %v6654_v52 = vld [vmem:[#allocation84_spill] sm:$0xff] }
 0x34e   : > { %1515 = vmatpush2.msra.mxu1 %v6644_v60  ;;  %1341 = vmatprep.subr.mxu0 %v6645_v14  ;;  %v6655_v60 = vld [vmem:[#allocation73_spill] sm:$0xff]  ;;  %v6656_v14 = vld [vmem:[#allocation86_spill] sm:$0xff] }
 0x34f   : > { %1517 = vmatprep.subr.mxu1 %v6646_v40  ;;  %1344 = vmatpush2.msra.mxu0 %v6647_v10  ;;  %v6657_v40 = vld [vmem:[#allocation75_spill] sm:$0xff]  ;;  %v6658_v10 = vld [vmem:[#allocation88_spill] sm:$0xff] }
 0x350   : > { %1519 = vmatpush2.msra.mxu1 %v6648_v11  ;;  %1347 = vmatprep.subr.mxu0 %v6649_v48  ;;  %v6659_v11 = vld [vmem:[#allocation76_spill] sm:$0xff]  ;;  %v6660_v48 = vld [vmem:[#allocation90_spill] sm:$0xff] }
 0x351   : > { %1521 = vmatprep.subr.mxu1 %v6650_v15  ;;  %1350 = vmatpush2.msra.mxu0 %v6651_v57  ;;  %v6661_v15 = vld [vmem:[#allocation79_spill] sm:$0xff] }
 0x352   : > { %1523 = vmatpush2.msra.mxu1 %v6652_v62  ;;  %1353 = vmatprep.subr.mxu0 %v6653_v50  ;;  %v6662_v62 = vld [vmem:[#allocation81_spill] sm:$0xff] }
 0x353   : > { %1525 = vmatprep.subr.mxu1 %v6654_v52  ;;  %1356 = vmatpush2.msra.mxu0 %v6655_v60  ;;  %v6663_v52 = vld [vmem:[#allocation83_spill] sm:$0xff] }
 0x354   : > { %1527 = vmatpush2.msra.mxu1 %v6656_v14  ;;  %1359 = vmatprep.subr.mxu0 %v6657_v40  ;;  %v6664_v14 = vld [vmem:[#allocation85_spill] sm:$0xff] }
 0x355   : > { %1529 = vmatprep.subr.mxu1 %v6658_v10  ;;  %1362 = vmatpush2.msra.mxu0 %v6659_v11  ;;  %v6665_v10 = vld [vmem:[#allocation87_spill] sm:$0xff] }
 0x356   : > { %1531 = vmatpush2.msra.mxu1 %v6660_v48  ;;  %1365 = vmatprep.subr.mxu0 %v6661_v15  ;;  %v6666_v48 = vld [vmem:[#allocation89_spill] sm:$0xff] }
 0x357   : > { %1533 = vmatprep.subr.mxu1 %v4367_v58  ;;  %1368 = vmatpush2.msra.mxu0 %v6662_v62 }
 0x358   : > { %1535 = vmatpush2.msra.mxu1 %v4373_v5  ;;  %1371 = vmatprep.subr.mxu0 %v6663_v52  ;;  %v6667_v5 = vand.u32 4294901760, %v4457_v8 }
 0x359   : > { %1537 = vmatprep.subr.mxu1 %v4389_v16  ;;  %1374 = vmatpush2.msra.mxu0 %v6664_v14 }
 0x35a   : > { %1539 = vmatpush2.msra.mxu1 %v4393_v20  ;;  %1377 = vmatprep.subr.mxu0 %v6665_v10  ;;  %v6668_v10 = vld [vmem:[#allocation93_spill] sm:$0xff] }
 0x35b   : > { %1541 = vmatprep.subr.mxu1 %v4395_v56  ;;  %1380 = vmatpush2.msra.mxu0 %v6666_v48  ;;  %v6669_v48 = vld [vmem:[#allocation94_spill] sm:$0xff] }
 0x35c   : > { %1543 = vmatpush2.msra.mxu1 %v4401_v21  ;;  %1383 = vmatprep.subr.mxu0 %v4352_v0  ;;  %v6670_v0 = vld [vmem:[#allocation95_spill] sm:$0xff] }
 0x35d   : > { %1551 = vmatmul.mubr.f32.vlgmr.msra.gmra.mxu1 %v6667_v5  ;;  %1823 = vmatprep.subr.mxu1 %v3791_v29  ;;  %v6671_v5 = vld [vmem:[#allocation96_spill] sm:$0xff]  ;;  %v6672_v29 = vld [vmem:[#allocation97_spill] sm:$0xff] }
 0x35e   : > { %1386 = vmatpush2.msra.mxu0 %v4360_v53  ;;  %1825 = vmatpush1.msra.mxu1 %v3793_v30  ;;  %v6673_v30 = vld [vmem:[#allocation98_spill] sm:$0xff] }
 0x35f   : > { %1951 = vmatprep.mubr.f32.mxu1 %v4454_v13  ;;  %1389 = vmatprep.subr.mxu0 %v6668_v10 }
 0x360   : > { %1827 = vmatprep.subr.mxu1 %v3795_v31  ;;  %1392 = vmatpush2.msra.mxu0 %v6669_v48  ;;  %v6674_v31 = vld [vmem:[#allocation11_spill] sm:$0xff] }
 0x361   : > { %1829 = vmatpush1.msra.mxu1 %v3797_v35  ;;  %1395 = vmatprep.subr.mxu0 %v6670_v0  ;;  %v6675_v35 = vand.u32 4294901760, %v6674_v31 }
 0x362   : > { %1831 = vmatprep.subr.mxu1 %v3799_v36  ;;  %1398 = vmatpush2.msra.mxu0 %v6671_v5  ;;  %v6676_v36 = vand.u32 4294901760, %v3807_v41  ;;  %v6679_v41 = vand.u32 4294901760, %v3819_v45  ;;  %v6683_v45 = vand.u32 4294901760, %v3884_v25 }
 0x363   : > { %1833 = vmatpush1.msra.mxu1 %v3801_v37  ;;  %1401 = vmatprep.subr.mxu0 %v6672_v29  ;;  %v6677_v37 = vand.u32 4294901760, %v3810_v42 }
 0x364   : > { %1835 = vmatprep.subr.mxu1 %v3812_v43  ;;  %1404 = vmatpush2.msra.mxu0 %v6673_v30  ;;  %v538_v43 = vsel %vm287_vm0, %v4446_v1, 0.0  ;;  %v6702_v1 = vld [vmem:[#allocation27_spill] sm:$0xff] }
 0x365   : > { %1837 = vmatpush1.msra.mxu1 %v3824_v47  ;;  %1410 = vmatmul.mubr.f32.vlgmr.msra.gmra.mxu0 %v4457_v8  ;;  %v6678_v47 = vand.u32 4294901760, %v3816_v44  ;;  %v539_v42 = vrot.slane %v538_v43, 4  ;;  %v6682_v44 = vand.u32 4294901760, %v3838_v55  ;;  %v6686_v55 = vand.u32 4294901760, %v3896_v32  ;;  %v6692_v32 = vld [vmem:[#allocation14_spill] sm:$0xff] }
 0x366   : > { %1560 = vmatprep.subr.mxu0 %v6675_v35  ;;  %1839 = vmatprep.subr.mxu1 %v3871_v17  ;;  %v6680_v17 = vand.u32 4294901760, %v3822_v46  ;;  %v6684_v46 = vand.u32 4294901760, %v3887_v26  ;;  %v6690_v26 = vld [vmem:[#allocation99_spill] sm:$0xff]  ;;  %v6700_v8 = vld [vmem:[#allocation18_spill] sm:$0xff] }
 0x367   : > { %1564 = vmatpush1.msra.mxu0 %v6676_v36  ;;  %1814 = vmatprep.mubr.f32.mxu0 %v4454_v13  ;;  %v6701_v13 = vand.u32 4294901760, %v6700_v8  ;;  %v6707_v35 = vld [vmem:[#allocation22_spill] sm:$0xff]  ;;  %v6728_v8 = vld [vmem:[#allocation44_spill] sm:$0xff] }
 0x368   : > { %1841 = vmatpush1.msra.mxu1 %v3873_v18  ;;  %1568 = vmatprep.subr.mxu0 %v6677_v37  ;;  %v6681_v18 = vand.u32 4294901760, %v3831_v51  ;;  %v6685_v51 = vand.u32 4294901760, %v3890_v27  ;;  %v531_v27 = vsel %vm287_vm0, %v6690_v26, 0.0  ;;  %v6708_v36 = vand.u32 4294901760, %v6707_v35  ;;  %v641_v37 = vld [vmem:[#allocation5 + $0x2f0] sm:$0xff] }
 0x369   : > { %1843 = vmatprep.subr.mxu1 %v3875_v19  ;;  %1572 = vmatpush1.msra.mxu0 %v6678_v47  ;;  %v540_v19 = vadd.f32 %v539_v42, %v538_v43  ;;  %v6709_v47 = vld [vmem:[#allocation33_spill] sm:$0xff]  ;;  %v6781_v26 = vld [vmem:[#allocation59_spill] sm:$0xff] }
 0x36a   : > { %1845 = vmatpush1.msra.mxu1 %v3877_v22  ;;  %1576 = vmatprep.subr.mxu0 %v6679_v41  ;;  %v6687_v22 = vand.u32 4294901760, %v3899_v33  ;;  %v6693_v33 = vand.u32 4294901760, %v6692_v32  ;;  %v6710_v41 = vld [vmem:[#allocation23_spill] sm:$0xff]  ;;  %v6712_v42 = vld [vmem:[#allocation37_spill] sm:$0xff]  ;;  %v6722_v32 = vld [vmem:[#allocation34_spill] sm:$0xff] }
 0x36b   : > { %1847 = vmatprep.subr.mxu1 %v3879_v23  ;;  %1580 = vmatpush1.msra.mxu0 %v6680_v17  ;;  %v6688_v23 = vand.u32 4294901760, %v3902_v34  ;;  %v541_v25 = vrot.slane %v540_v19, 2  ;;  %v6694_v34 = vld [vmem:[#allocation24_spill] sm:$0xff]  ;;  %v6711_v17 = vand.u32 4294901760, %v6710_v41  ;;  %v6735_v41 = vld [vmem:[#allocation49_spill] sm:$0xff] }
 0x36c   : > { %1849 = vmatpush1.msra.mxu1 %v3881_v24  ;;  %1584 = vmatprep.subr.mxu0 %v6681_v18  ;;  %v6689_v24 = vand.u32 4294901760, %v6592_v63  ;;  %v6703_v63 = vand.u32 4294901760, %v6604_v12  ;;  %v6713_v18 = vld [vmem:[#allocation30_spill] sm:$0xff] }
 0x36d   : > { %1851 = vmatprep.subr.mxu1 %v3892_v28  ;;  %1588 = vmatpush1.msra.mxu0 %v6682_v44  ;;  %v6691_v28 = vand.u32 4294901760, %v6594_v49  ;;  %v6704_v49 = vld [vmem:[#allocation28_spill] sm:$0xff] }
 0x36e   : > { %1853 = vmatpush1.msra.mxu1 %v3904_v38  ;;  %1592 = vmatprep.subr.mxu0 %v6683_v45  ;;  %v6715_v44 = vld [vmem:[#allocation40_spill] sm:$0xff]  ;;  %v6716_v45 = vld [vmem:[#allocation31_spill] sm:$0xff] }
 0x36f   : > { %1855 = vmatprep.subr.mxu1 %v3951_v2  ;;  %1596 = vmatpush1.msra.mxu0 %v6684_v46  ;;  %v6697_v2 = vld [vmem:[#allocation25_spill] sm:$0xff]  ;;  %v6717_v46 = vand.u32 4294901760, %v6716_v45 }
 0x370   : > { %1857 = vmatpush1.msra.mxu1 %v3953_v3  ;;  %1600 = vmatprep.subr.mxu0 %v6685_v51  ;;  %v6698_v3 = vand.u32 4294901760, %v6600_v61  ;;  %v6706_v61 = vld [vmem:[#allocation29_spill] sm:$0xff]  ;;  %v640_v51 = vld [vmem:[#allocation5 + $0x2e8] sm:$0xff] }
 0x371   : > { %1859 = vmatprep.subr.mxu1 %v3955_v4  ;;  %1604 = vmatpush1.msra.mxu0 %v6686_v55  ;;  %v532_v4 = vrot.slane %v531_v27, 4 }
 0x372   : > { %1861 = vmatpush1.msra.mxu1 %v3957_v6  ;;  %1608 = vmatprep.subr.mxu0 %v6687_v22  ;;  %v542_v6 = vadd.f32 %v541_v25, %v540_v19  ;;  %v4688_v19 = vand.u32 4294901760, %v641_v37  ;;  %v6718_v22 = vld [vmem:[#allocation41_spill] sm:$0xff] }
 0x373   : > { %1863 = vmatprep.subr.mxu1 %v3959_v7  ;;  %1612 = vmatpush1.msra.mxu0 %v6688_v23  ;;  %v6699_v7 = vld [vmem:[#allocation26_spill] sm:$0xff]  ;;  %v533_v31 = vadd.f32 %v532_v4, %v531_v27  ;;  %v6719_v23 = vld [vmem:[#allocation32_spill] sm:$0xff]  ;;  %v639_v27 = vld [vmem:[#allocation5 + $0x2e0] sm:$0xff] }
 0x374   : > { %1865 = vmatpush1.msra.mxu1 %v3961_v59  ;;  %1616 = vmatprep.subr.mxu0 %v6689_v24  ;;  %v6695_v59 = vld [vmem:[#allocation15_spill] sm:$0xff]  ;;  %v543_v43 = vrot.slane %v542_v6, 1  ;;  %v6720_v24 = vand.u32 4294901760, %v6719_v23 }
 0x375   : > { %1867 = vmatprep.subr.mxu1 %v6593_v54  ;;  %1620 = vmatpush1.msra.mxu0 %v6691_v28  ;;  %v6696_v38 = vand.u32 4294901760, %v6695_v59  ;;  %v642_v54 = vld [vmem:[#allocation5 + $0x2f8] sm:$0xff]  ;;  %v534_v55 = vrot.slane %v533_v31, 2  ;;  %v6721_v28 = vld [vmem:[#allocation42_spill] sm:$0xff]  ;;  %v6726_v4 = vld [vmem:[#allocation35_spill] sm:$0xff] }
 0x376   : > { %1869 = vmatpush1.msra.mxu1 %v6595_v9  ;;  %1624 = vmatprep.subr.mxu0 %v6693_v33  ;;  %v6705_v9 = vand.u32 4294901760, %v6606_v39  ;;  %v4680_v12 = vand.u32 4294901760, %v642_v54  ;;  %v6714_v39 = vand.u32 4294901760, %v6713_v18  ;;  %v544_v25 = vadd.f32 %v543_v43, %v542_v6  ;;  %v638_v59 = vld [vmem:[#allocation5 + $0x2d8] sm:$0xff]  ;;  %v635_v43 = vld [vmem:[#allocation5 + $0x2c0] sm:$0xff]  ;;  %v6745_v23 = vld [vmem:[#allocation47_spill] sm:$0xff] }
 0x377   : > { %1871 = vmatprep.subr.mxu1 %v6694_v34  ;;  %1628 = vmatpush1.msra.mxu0 %v6696_v38  ;;  %v6723_v33 = vand.u32 4294901760, %v6722_v32  ;;  %v6725_v38 = vld [vmem:[#allocation43_spill] sm:$0xff]  ;;  %v6729_v6 = vld [vmem:[#allocation36_spill] sm:$0xff]  ;;  %v4738_v32 = vand.u32 4294901760, %v635_v43 }
 0x378   : > { %1873 = vmatpush1.msra.mxu1 %v6697_v2  ;;  %1632 = vmatprep.subr.mxu0 %v6698_v3  ;;  %v4697_v34 = vsub.f32 %v642_v54, %v4680_v12  ;;  %v6727_v2 = vand.u32 4294901760, %v6726_v4  ;;  %v4702_v3 = vand.u32 4294901760, %v640_v51  ;;  %v636_v54 = vld [vmem:[#allocation5 + $0x2c8] sm:$0xff]  ;;  %v546_v35 = vmul.f32 0.25, %v544_v25 }
 0x379   : > { %1875 = vmatprep.subr.mxu1 %v6699_v7  ;;  %1636 = vmatpush1.msra.mxu0 %v6701_v13  ;;  %v637_v7 = vld [vmem:[#allocation5 + $0x2d0] sm:$0xff]  ;;  %v6730_v13 = vand.u32 4294901760, %v6729_v6  ;;  %6748 = vst [vmem:[#allocation20_spill] sm:$0xff] %v4738_v32  ;;  %v632_v6 = vld [vmem:[#allocation5 + $0x2a8] sm:$0xff] }
 0x37a   : > { %1877 = vmatpush1.msra.mxu1 %v6702_v1  ;;  %1640 = vmatprep.subr.mxu0 %v6703_v63  ;;  %6724 = vst [vmem:[#allocation12_spill] sm:$0xff] %v4697_v34  ;;  %v4708_v1 = vsub.f32 %v641_v37, %v4688_v19  ;;  %v4710_v63 = vand.u32 4294901760, %v639_v27  ;;  %v6283_v37 = vand.u32 4294901760, %v4697_v34  ;;  %v4721_v18 = vand.u32 4294901760, %v637_v7 }
 0x37b   : > { %1879 = vmatprep.subr.mxu1 %v6704_v49  ;;  %1644 = vmatpush1.msra.mxu0 %v6705_v9  ;;  %v6732_v49 = vld [vmem:[#allocation45_spill] sm:$0xff]  ;;  %v6733_v9 = vld [vmem:[#allocation38_spill] sm:$0xff] }
 0x37c   : > { %1881 = vmatpush1.msra.mxu1 %v6706_v61  ;;  %1648 = vmatprep.subr.mxu0 %v6708_v36  ;;  %6731 = vst [vmem:[#allocation17_spill] sm:$0xff] %v4708_v1  ;;  %v6734_v61 = vand.u32 4294901760, %v6733_v9  ;;  %v4715_v36 = vand.u32 4294901760, %v638_v59  ;;  %6738 = vst [vmem:[#allocation13_spill] sm:$0xff] %v4721_v18  ;;  %v6282_v25 = vand.u32 4294901760, %v4708_v1  ;;  %v6755_v9 = vld [vmem:[#allocation50_spill] sm:$0xff] }
 0x37d   : > { %1883 = vmatprep.subr.mxu1 %v6709_v47  ;;  %1652 = vmatpush1.msra.mxu0 %v6711_v17  ;;  %v535_v47 = vadd.f32 %v534_v55, %v533_v31  ;;  %v6736_v17 = vld [vmem:[#allocation39_spill] sm:$0xff]  ;;  %v634_v31 = vld [vmem:[#allocation5 + $0x2b8] sm:$0xff] }
 0x37e   : > { %1885 = vmatpush1.msra.mxu1 %v6712_v42  ;;  %1656 = vmatprep.subr.mxu0 %v6714_v39  ;;  %v6737_v42 = vand.u32 4294901760, %v6736_v17  ;;  %v6739_v39 = vld [vmem:[#allocation53_spill] sm:$0xff]  ;;  %v6744_v55 = vld [vmem:[#allocation56_spill] sm:$0xff]  ;;  %v4759_v17 = vand.u32 4294901760, %v634_v31 }
 0x37f   : > { %1887 = vmatprep.subr.mxu1 %v6715_v44  ;;  %1660 = vmatpush1.msra.mxu0 %v6717_v46  ;;  %v6740_v44 = vld [vmem:[#allocation46_spill] sm:$0xff]  ;;  %v4727_v46 = vsub.f32 %v640_v51, %v4702_v3  ;;  %v6750_v51 = vld [vmem:[#allocation48_spill] sm:$0xff] }
 0x380   : > { %1889 = vmatpush2.msra.mxu1 %v6718_v22  ;;  %1664 = vmatprep.subr.mxu0 %v6720_v24  ;;  %v6741_v45 = vand.u32 4294901760, %v6740_v44  ;;  %v4729_v22 = vand.u32 4294901760, %v636_v54  ;;  %v6746_v24 = vand.u32 4294901760, %v6745_v23  ;;  %v6751_v4 = vand.u32 4294901760, %v6750_v51  ;;  %6758 = vst [vmem:[#allocation75_spill] sm:$0xff] %v4759_v17 }
 0x381   : > { %1891 = vmatprep.subr.mxu1 %v6721_v28  ;;  %1668 = vmatpush1.msra.mxu0 %v6723_v33  ;;  %6742 = vst [vmem:[#allocation21_spill] sm:$0xff] %v4727_v46  ;;  %v4736_v28 = vsub.f32 %v639_v27, %v4710_v63  ;;  %v633_v33 = vld [vmem:[#allocation5 + $0x2b0] sm:$0xff]  ;;  %v6756_v27 = vand.u32 4294901760, %v6755_v9  ;;  %v4780_v9 = vsub.f32 %v635_v43, %v4738_v32 }
 0x382   : > { %1893 = vmatpush2.msra.mxu1 %v6725_v38  ;;  %1672 = vmatprep.subr.mxu0 %v6727_v2  ;;  %6743 = vst [vmem:[#allocation16_spill] sm:$0xff] %v4729_v22  ;;  %v6749_v38 = vld [vmem:[#allocation57_spill] sm:$0xff]  ;;  %v4743_v2 = vand.u32 4294901760, %v546_v35  ;;  %v4768_v23 = vand.u32 4294901760, %v633_v33  ;;  %v6776_v43 = vld [vmem:[#allocation55_spill] sm:$0xff] }
 0x383   : > { %1895 = vmatprep.subr.mxu1 %v6728_v8  ;;  %1676 = vmatpush1.msra.mxu0 %v6730_v13  ;;  %6747 = vst [vmem:[#allocation19_spill] sm:$0xff] %v4736_v28  ;;  %v4746_v8 = vsub.f32 %v638_v59, %v4715_v36  ;;  %v536_v13 = vrot.slane %v535_v47, 1  ;;  %v6759_v59 = vld [vmem:[#allocation62_spill] sm:$0xff]  ;;  %6767 = vst [vmem:[#allocation81_spill] sm:$0xff] %v4780_v9 }
 0x384   : > { %1897 = vmatpush2.msra.mxu1 %v6732_v49  ;;  %1680 = vmatprep.subr.mxu0 %v6734_v61  ;;  %6752 = vst [vmem:[#allocation69_spill] sm:$0xff] %v4743_v2  ;;  %v6754_v49 = vld [vmem:[#allocation58_spill] sm:$0xff]  ;;  %v4754_v61 = vsub.f32 %v4697_v34, %v6283_v37  ;;  %6763 = vst [vmem:[#allocation79_spill] sm:$0xff] %v4768_v23  ;;  %v6775_v37 = vld [vmem:[#allocation67_spill] sm:$0xff] }
 0x385   : > { %1899 = vmatprep.subr.mxu1 %v6735_v41  ;;  %1684 = vmatpush1.msra.mxu0 %v6737_v42  ;;  %6753 = vst [vmem:[#allocation71_spill] sm:$0xff] %v4746_v8  ;;  %v4757_v41 = vsub.f32 %v637_v7, %v4721_v18  ;;  %v631_v42 = vld [vmem:[#allocation5 + $0x2a0] sm:$0xff]  ;;  %v6765_v7 = vld [vmem:[#allocation52_spill] sm:$0xff] }
 0x386   : > { %1901 = vmatpush2.msra.mxu1 %v6739_v39  ;;  %1688 = vmatprep.subr.mxu0 %v6741_v45  ;;  %v6760_v39 = vld [vmem:[#allocation51_spill] sm:$0xff]  ;;  %v6766_v51 = vand.u32 4294901760, %v6765_v7  ;;  %v4789_v7 = vsub.f32 %v546_v35, %v4743_v2  ;;  %v628_v35 = vld [vmem:[#allocation5 + $0x288] sm:$0xff]  ;;  %v627_v45 = vld [vmem:[#allocation5 + $0x280] sm:$0xff] }
 0x387   : > { %1903 = vmatprep.subr.mxu1 %v6744_v55  ;;  %1692 = vmatpush2.msra.mxu0 %v6746_v24  ;;  %6757 = vst [vmem:[#allocation73_spill] sm:$0xff] %v4757_v41  ;;  %v6761_v44 = vand.u32 4294901760, %v6760_v39  ;;  %v4766_v55 = vsub.f32 %v636_v54, %v4729_v22  ;;  %v630_v24 = vld [vmem:[#allocation5 + $0x298] sm:$0xff]  ;;  %v4782_v54 = vand.u32 4294901760, %v632_v6  ;;  %v6770_v39 = vld [vmem:[#allocation54_spill] sm:$0xff]  ;;  %v6792_v34 = vld [vmem:[#allocation61_spill] sm:$0xff] }
 0x388   : > { %1905 = vmatpush2.msra.mxu1 %v6749_v38  ;;  %1696 = vmatprep.subr.mxu0 %v6751_v4  ;;  %v6764_v38 = vld [vmem:[#allocation63_spill] sm:$0xff]  ;;  %v4776_v4 = vsub.f32 %v4708_v1, %v6282_v25  ;;  %6772 = vst [vmem:[#allocation85_spill] sm:$0xff] %v4789_v7  ;;  %v4793_v25 = vadd.f32 %v536_v13, %v535_v47  ;;  %v6782_v47 = vand.u32 4294901760, %v6781_v26  ;;  %v6787_v1 = vld [vmem:[#allocation60_spill] sm:$0xff]  ;;  %v4844_v26 = vand.u32 4294901760, %v628_v35 }
 0x389   : > { %1907 = vmatprep.subr.mxu1 %v6754_v49  ;;  %1700 = vmatpush2.msra.mxu0 %v6756_v27  ;;  %6762 = vst [vmem:[#allocation76_spill] sm:$0xff] %v4766_v55  ;;  %6768 = vst [vmem:[#allocation83_spill] sm:$0xff] %v4782_v54  ;;  %v629_v27 = vld [vmem:[#allocation5 + $0x290] sm:$0xff]  ;;  %v6777_v49 = vand.u32 4294901760, %v6776_v43  ;;  %v4815_v43 = vsub.f32 %v633_v33, %v4768_v23  ;;  %v4830_v33 = vsub.f32 %v632_v6, %v4782_v54  ;;  %v6797_v6 = vld [vmem:[#allocation77_spill] sm:$0xff] }
 0x38a   : > { %1909 = vmatpush2.msra.mxu1 %v6759_v59  ;;  %1704 = vmatprep.subr.mxu0 %v6761_v44  ;;  %v6769_v59 = vld [vmem:[#allocation65_spill] sm:$0xff]  ;;  %v6771_v44 = vand.u32 4294901760, %v6770_v39  ;;  %6774 = vst [vmem:[#allocation94_spill] sm:$0xff] %v4793_v25  ;;  %v4801_v39 = vsub.f32 %v634_v31, %v4759_v17  ;;  %v4817_v31 = vand.u32 4294901760, %v629_v27  ;;  %v6793_v25 = vand.u32 4294901760, %v6792_v34  ;;  %6796 = vst [vmem:[#allocation24_spill] sm:$0xff] %v4844_v26 }
 0x38b   : > { %1911 = vmatprep.subr.mxu1 %v6764_v38  ;;  %1708 = vmatpush2.msra.mxu0 %v6766_v51  ;;  %v4791_v51 = vand.u32 4294901760, %v631_v42  ;;  %v6780_v38 = vld [vmem:[#allocation70_spill] sm:$0xff]  ;;  %6784 = vst [vmem:[#allocation97_spill] sm:$0xff] %v4815_v43  ;;  %6790 = vst [vmem:[#allocation11_spill] sm:$0xff] %v4830_v33  ;;  %v6800_v34 = vand.u32 4294901760, %v4757_v41 }
 0x38c   : > { %1913 = vmatpush2.msra.mxu1 %v6769_v59  ;;  %1712 = vmatprep.subr.mxu0 %v6771_v44  ;;  %6778 = vst [vmem:[#allocation95_spill] sm:$0xff] %v4801_v39  ;;  %v4803_v44 = vand.u32 4294901760, %v630_v24  ;;  %6785 = vst [vmem:[#allocation98_spill] sm:$0xff] %v4817_v31  ;;  %v6786_v59 = vld [vmem:[#allocation72_spill] sm:$0xff] }
 0x38d   : > { %6773 = vst [vmem:[#allocation93_spill] sm:$0xff] %v4791_v51  ;;  %1915 = vmatprep.subr.mxu1 %v6775_v37  ;;  %1716 = vmatpush2.msra.mxu0 %v6777_v49  ;;  %v6783_v37 = vand.u32 4294901760, %v4727_v46  ;;  %v626_v49 = vld [vmem:[#allocation5 + $0x278] sm:$0xff] }
 0x38e   : > { %6779 = vst [vmem:[#allocation96_spill] sm:$0xff] %v4803_v44  ;;  %1917 = vmatpush2.msra.mxu1 %v6780_v38  ;;  %1720 = vmatprep.subr.mxu0 %v6782_v47  ;;  %v6788_v38 = vand.u32 4294901760, %v6787_v1  ;;  %v6789_v47 = vand.u32 4294901760, %v4736_v28  ;;  %v6794_v1 = vand.u32 4294901760, %v4746_v8 }
 0x38f   : > { %v4811_v13 = vsub.f32 %v4727_v46, %v6783_v37  ;;  %1919 = vmatprep.subr.mxu1 %v6786_v59  ;;  %v6791_v46 = vld [vmem:[#allocation74_spill] sm:$0xff] }
 0x390   : > { %1724 = vmatpush2.msra.mxu0 %v6788_v38  ;;  %v4826_v37 = vsub.f32 %v4736_v28, %v6789_v47  ;;  %1921 = vmatpush2.msra.mxu1 %v6791_v46  ;;  %v4838_v59 = vsub.f32 %v4746_v8, %v6794_v1  ;;  %v4842_v47 = vsub.f32 %v631_v42, %v4791_v51  ;;  %v6798_v28 = vld [vmem:[#allocation64_spill] sm:$0xff]  ;;  %v4858_v42 = vand.u32 4294901760, %v627_v45  ;;  %v6803_v8 = vld [vmem:[#allocation78_spill] sm:$0xff] }
 0x391   : > { %1728 = vmatprep.subr.mxu0 %v6793_v25  ;;  %1923 = vmatprep.subr.mxu1 %v6797_v6  ;;  %v6799_v46 = vand.u32 4294901760, %v6798_v28  ;;  %v4852_v25 = vsub.f32 %v4757_v41, %v6800_v34  ;;  %v4856_v38 = vsub.f32 %v630_v24, %v4803_v44  ;;  %v6804_v51 = vld [vmem:[#allocation66_spill] sm:$0xff]  ;;  %v6806_v6 = vand.u32 4294901760, %v4766_v55  ;;  %v6808_v24 = vld [vmem:[#allocation80_spill] sm:$0xff]  ;;  %v625_v34 = vld [vmem:[#allocation5 + $0x270] sm:$0xff] }
 0x392   : > { %6795 = vst [vmem:[#allocation14_spill] sm:$0xff] %v4842_v47  ;;  %6802 = vst [vmem:[#allocation25_spill] sm:$0xff] %v4858_v42  ;;  %1925 = vmatpush2.msra.mxu1 %v6803_v8  ;;  %v6805_v54 = vand.u32 4294901760, %v6804_v51  ;;  %v4871_v1 = vsub.f32 %v629_v27, %v4817_v31  ;;  %v6809_v41 = vand.u32 4294901760, %v6651_v57  ;;  %v4883_v28 = vand.u32 4294901760, %v626_v49 }
 0x393   : > { %1732 = vmatpush2.msra.mxu0 %v6799_v46  ;;  %6801 = vst [vmem:[#allocation15_spill] sm:$0xff] %v4856_v38  ;;  %v4867_v46 = vsub.f32 %v4766_v55, %v6806_v6  ;;  %1927 = vmatprep.subr.mxu1 %v6808_v24  ;;  %v6812_v55 = vld [vmem:[#allocation82_spill] sm:$0xff]  ;;  %v6813_v27 = vand.u32 4294901760, %v6653_v50  ;;  %v4896_v8 = vsub.f32 %v628_v35, %v4844_v26  ;;  %v623_v35 = vld [vmem:[#allocation5 + $0x260] sm:$0xff]  ;;  %v6837_v26 = vand.u32 4294901760, %v6663_v52 }
 0x394   : > { %1736 = vmatprep.subr.mxu0 %v6805_v54  ;;  %6807 = vst [vmem:[#allocation26_spill] sm:$0xff] %v4871_v1  ;;  %v6810_v54 = vand.u32 4294901760, %v4780_v9  ;;  %6811 = vst [vmem:[#allocation18_spill] sm:$0xff] %v4883_v28  ;;  %1929 = vmatpush2.msra.mxu1 %v6812_v55  ;;  %v624_v6 = vld [vmem:[#allocation5 + $0x268] sm:$0xff]  ;;  %v6817_v55 = vand.u32 4294901760, %v6655_v60 }
 0x395   : > { %1740 = vmatpush2.msra.mxu0 %v6809_v41  ;;  %v6814_v41 = vand.u32 4294901760, %v4789_v7  ;;  %6815 = vst [vmem:[#allocation27_spill] sm:$0xff] %v4896_v8  ;;  %v4935_v60 = vand.u32 4294901760, %v624_v6 }
 0x396   : > { %v4880_v51 = vsub.f32 %v4780_v9, %v6810_v54  ;;  %1744 = vmatprep.subr.mxu0 %v6813_v27  ;;  %v6816_v9 = vld [vmem:[#allocation84_spill] sm:$0xff]  ;;  %v6818_v27 = vand.u32 4294901760, %v4801_v39  ;;  %v4909_v54 = vsub.f32 %v627_v45, %v4858_v42  ;;  %v6825_v42 = vand.u32 4294901760, %v6659_v11 }
 0x397   : > { %v4892_v24 = vsub.f32 %v4789_v7, %v6814_v41  ;;  %1931 = vmatprep.subr.mxu1 %v6816_v9  ;;  %1748 = vmatpush2.msra.mxu0 %v6817_v55  ;;  %v6820_v7 = vld [vmem:[#allocation86_spill] sm:$0xff]  ;;  %v6821_v9 = vand.u32 4294901760, %v6657_v40  ;;  %v6822_v55 = vand.u32 4294901760, %v4815_v43  ;;  %v622_v41 = vld [vmem:[#allocation5 + $0x258] sm:$0xff]  ;;  %6828 = vst [vmem:[#allocation33_spill] sm:$0xff] %v4935_v60 }
 0x398   : > { %v4905_v57 = vsub.f32 %v4801_v39, %v6818_v27  ;;  %6819 = vst [vmem:[#allocation28_spill] sm:$0xff] %v4909_v54  ;;  %1933 = vmatpush2.msra.mxu1 %v6820_v7  ;;  %v4921_v39 = vand.u32 4294901760, %v625_v34  ;;  %v6824_v45 = vld [vmem:[#allocation88_spill] sm:$0xff]  ;;  %v6826_v7 = vand.u32 4294901760, %v4830_v33  ;;  %v621_v27 = vld [vmem:[#allocation5 + $0x250] sm:$0xff]  ;;  %v4959_v11 = vand.u32 4294901760, %v622_v41 }
 0x399   : > { %1752 = vmatprep.subr.mxu0 %v6821_v9  ;;  %v4918_v50 = vsub.f32 %v4815_v43, %v6822_v55  ;;  %1935 = vmatprep.subr.mxu1 %v6824_v45  ;;  %v4933_v55 = vsub.f32 %v626_v49, %v4883_v28  ;;  %v6829_v43 = vld [vmem:[#allocation90_spill] sm:$0xff]  ;;  %v6830_v45 = vand.u32 4294901760, %v6661_v15  ;;  %v6833_v28 = vand.u32 4294901760, %v6662_v62 }
 0x39a   : > { %6823 = vst [vmem:[#allocation29_spill] sm:$0xff] %v4921_v39  ;;  %1756 = vmatpush2.msra.mxu0 %v6825_v42  ;;  %v4930_v9 = vsub.f32 %v4830_v33, %v6826_v7  ;;  %1937 = vmatpush2.msra.mxu1 %v6829_v43  ;;  %v6831_v42 = vand.u32 4294901760, %v4842_v47  ;;  %v4947_v33 = vand.u32 4294901760, %v623_v35  ;;  %v620_v49 = vld [vmem:[#allocation5 + $0x248] sm:$0xff]  ;;  %v6834_v43 = vand.u32 4294901760, %v4856_v38  ;;  %6835 = vst [vmem:[#allocation37_spill] sm:$0xff] %v4959_v11 }
 0x39b   : > { %6827 = vst [vmem:[#allocation22_spill] sm:$0xff] %v4933_v55  ;;  %1760 = vmatprep.subr.mxu0 %v6830_v45  ;;  %1939 = vmatprep.subr.mxu1 %v4367_v58  ;;  %v619_v7 = vld [vmem:[#allocation5 + $0x240] sm:$0xff]  ;;  %v6838_v58 = vand.u32 4294901760, %v4871_v1  ;;  %v4973_v15 = vand.u32 4294901760, %v621_v27  ;;  %v4981_v62 = vsub.f32 %v624_v6, %v4935_v60 }
 0x39c   : > { %v4944_v40 = vsub.f32 %v4842_v47, %v6831_v42  ;;  %6832 = vst [vmem:[#allocation23_spill] sm:$0xff] %v4947_v33  ;;  %1764 = vmatpush2.msra.mxu0 %v6833_v28  ;;  %v4956_v45 = vsub.f32 %v4856_v38, %v6834_v43  ;;  %v6836_v47 = vld [vmem:[#allocation92_spill] sm:$0xff]  ;;  %v4971_v43 = vsub.f32 %v625_v34, %v4921_v39  ;;  %v6844_v34 = vld [vmem:[#allocation87_spill] sm:$0xff]  ;;  %v4997_v6 = vand.u32 4294901760, %v619_v7  ;;  %v6849_v60 = vld [vmem:[#allocation89_spill] sm:$0xff] }
 0x39d   : > { %1941 = vmatpush2.msra.mxu1 %v6836_v47  ;;  %1768 = vmatprep.subr.mxu0 %v6837_v26  ;;  %v4968_v28 = vsub.f32 %v4871_v1, %v6838_v58  ;;  %6840 = vst [vmem:[#allocation40_spill] sm:$0xff] %v4973_v15  ;;  %v618_v42 = vld [vmem:[#allocation5 + $0x238] sm:$0xff]  ;;  %v6841_v47 = vand.u32 4294901760, %v6664_v14  ;;  %6842 = vst [vmem:[#allocation31_spill] sm:$0xff] %v4981_v62  ;;  %v4983_v58 = vand.u32 4294901760, %v620_v49  ;;  %v617_v1 = vld [vmem:[#allocation5 + $0x230] sm:$0xff] }
 0x39e   : > { %6839 = vst [vmem:[#allocation30_spill] sm:$0xff] %v4971_v43  ;;  %1943 = vmatprep.subr.mxu1 %v4389_v16  ;;  %v6845_v38 = vand.u32 4294901760, %v6844_v34  ;;  %v6846_v14 = vand.u32 4294901760, %v4896_v8  ;;  %v4995_v52 = vsub.f32 %v623_v35, %v4947_v33  ;;  %6848 = vst [vmem:[#allocation42_spill] sm:$0xff] %v4997_v6  ;;  %v616_v26 = vld [vmem:[#allocation5 + $0x228] sm:$0xff]  ;;  %v6851_v34 = vand.u32 4294901760, %v4909_v54 }
 0x39f   : > { %1772 = vmatpush2.msra.mxu0 %v6841_v47  ;;  %6843 = vst [vmem:[#allocation41_spill] sm:$0xff] %v4983_v58  ;;  %1945 = vmatpush2.msra.mxu1 %v4393_v20  ;;  %v6850_v20 = vand.u32 4294901760, %v6849_v60  ;;  %v5011_v35 = vand.u32 4294901760, %v618_v42  ;;  %v6854_v33 = vld [vmem:[#allocation91_spill] sm:$0xff]  ;;  %v5033_v60 = vsub.f32 %v620_v49, %v4983_v58  ;;  %v6864_v39 = vand.u32 4294901760, %v4776_v4 }
 0x3a0   : > { %1776 = vmatprep.subr.mxu0 %v6845_v38  ;;  %v4992_v47 = vsub.f32 %v4896_v8, %v6846_v14  ;;  %6847 = vst [vmem:[#allocation32_spill] sm:$0xff] %v4995_v52  ;;  %1947 = vmatprep.subr.mxu1 %v4395_v56  ;;  %v5006_v16 = vsub.f32 %v4909_v54, %v6851_v34  ;;  %v615_v8 = vld [vmem:[#allocation5 + $0x220] sm:$0xff]  ;;  %v6855_v56 = vand.u32 4294901760, %v6854_v33  ;;  %v5021_v34 = vand.u32 4294901760, %v617_v1  ;;  %v614_v54 = vld [vmem:[#allocation5 + $0x218] sm:$0xff] }
 0x3a1   : > { %1780 = vmatpush2.msra.mxu0 %v6850_v20  ;;  %v5009_v14 = vsub.f32 %v622_v41, %v4959_v11  ;;  %6853 = vst [vmem:[#allocation43_spill] sm:$0xff] %v5011_v35  ;;  %1949 = vmatpush2.msra.mxu1 %v4401_v21  ;;  %v5019_v38 = vsub.f32 %v621_v27, %v4973_v15  ;;  %v6858_v41 = vld [vmem:[#allocation100_spill] sm:$0xff]  ;;  %v6859_v11 = vand.u32 4294901760, %v4754_v61  ;;  %v6860_v21 = vand.u32 4294901760, %v4933_v55  ;;  %v613_v20 = vld [vmem:[#allocation5 + $0x210] sm:$0xff]  ;;  %v612_v61 = vld [vmem:[#allocation5 + $0x208] sm:$0xff] }
 0x3a2   : > { %1784 = vmatprep.subr.mxu0 %v6855_v56  ;;  %6857 = vst [vmem:[#allocation44_spill] sm:$0xff] %v5021_v34  ;;  %1953 = vmatmul.mubr.f32.vlgmr.msra.gmra.mxu1 %v6858_v41  ;;  %6861 = vst [vmem:[#allocation36_spill] sm:$0xff] %v5033_v60  ;;  %v5035_v27 = vand.u32 4294901760, %v616_v26  ;;  %v6863_v15 = vand.u32 4294901760, %v4360_v53  ;;  %v5046_v56 = vand.u32 4294901760, %v615_v8  ;;  %v6867_v49 = vand.u32 4294901760, %v6668_v10 }
 0x3a3   : > { %6852 = vst [vmem:[#allocation34_spill] sm:$0xff] %v5009_v14  ;;  %6856 = vst [vmem:[#allocation35_spill] sm:$0xff] %v5019_v38  ;;  %2109 = vmatprep.subr.mxu1 %v6859_v11  ;;  %v5029_v33 = vsub.f32 %v4933_v55, %v6860_v21  ;;  %v5044_v21 = vsub.f32 %v619_v7, %v4997_v6  ;;  %2489 = vmatprep.mubr.f32.mxu1 %v4743_v2  ;;  %v6870_v7 = vand.u32 4294901760, %v4811_v13 }
 0x3a4   : > { %6862 = vst [vmem:[#allocation45_spill] sm:$0xff] %v5035_v27  ;;  %1788 = vmatpush2.msra.mxu0 %v6863_v15  ;;  %2115 = vmatpush1.msra.mxu1 %v6864_v39  ;;  %6866 = vst [vmem:[#allocation49_spill] sm:$0xff] %v5046_v56  ;;  %v5054_v4 = vsub.f32 %v618_v42, %v5011_v35  ;;  %v5056_v39 = vand.u32 4294901760, %v614_v54  ;;  %v6871_v11 = vand.u32 4294901760, %v6669_v48  ;;  %v6872_v2 = vand.u32 4294901760, %v4971_v43  ;;  %v611_v15 = vld [vmem:[#allocation5 + $0x200] sm:$0xff] }
 0x3a5   : > { %6865 = vst [vmem:[#allocation38_spill] sm:$0xff] %v5044_v21  ;;  %1792 = vmatprep.subr.mxu0 %v6867_v49  ;;  %2121 = vmatprep.subr.mxu1 %v6870_v7  ;;  %v5069_v53 = vsub.f32 %v617_v1, %v5021_v34  ;;  %v5071_v42 = vand.u32 4294901760, %v613_v20  ;;  %v6875_v55 = vand.u32 4294901760, %v4826_v37  ;;  %v6876_v13 = vand.u32 4294901760, %v6670_v0 }
 0x3a6   : > { %6868 = vst [vmem:[#allocation39_spill] sm:$0xff] %v5054_v4  ;;  %6869 = vst [vmem:[#allocation53_spill] sm:$0xff] %v5056_v39  ;;  %1796 = vmatpush2.msra.mxu0 %v6871_v11  ;;  %v5065_v10 = vsub.f32 %v4971_v43, %v6872_v2  ;;  %v6877_v11 = vand.u32 4294901760, %v4981_v62  ;;  %v5085_v1 = vsub.f32 %v616_v26, %v5035_v27  ;;  %v6879_v49 = vand.u32 4294901760, %v4838_v59  ;;  %v674_v26 = vld [vmem:[#allocation5 + $0x3f8] sm:$0xff] }
 0x3a7   : > { %6873 = vst [vmem:[#allocation46_spill] sm:$0xff] %v5069_v53  ;;  %6874 = vst [vmem:[#allocation56_spill] sm:$0xff] %v5071_v42  ;;  %2127 = vmatpush1.msra.mxu1 %v6875_v55  ;;  %1800 = vmatprep.subr.mxu0 %v6876_v13  ;;  %v6880_v37 = vand.u32 4294901760, %v6671_v5  ;;  %v6881_v0 = vand.u32 4294901760, %v4995_v52  ;;  %v5100_v48 = vand.u32 4294901760, %v612_v61  ;;  %v6884_v7 = vand.u32 4294901760, %v4852_v25 }
 0x3a8   : > { %v5081_v2 = vsub.f32 %v4981_v62, %v6877_v11  ;;  %6878 = vst [vmem:[#allocation47_spill] sm:$0xff] %v5085_v1  ;;  %2133 = vmatprep.subr.mxu1 %v6879_v49  ;;  %v5098_v11 = vsub.f32 %v615_v8, %v5046_v56  ;;  %v6885_v59 = vand.u32 4294901760, %v6672_v29  ;;  %v6886_v5 = vand.u32 4294901760, %v5009_v14  ;;  %v673_v29 = vld [vmem:[#allocation5 + $0x3f0] sm:$0xff] }
 0x3a9   : > { %1804 = vmatpush2.msra.mxu0 %v6880_v37  ;;  %v5094_v55 = vsub.f32 %v4995_v52, %v6881_v0  ;;  %6883 = vst [vmem:[#allocation48_spill] sm:$0xff] %v5100_v48  ;;  %2139 = vmatpush1.msra.mxu1 %v6884_v7  ;;  %v5113_v0 = vsub.f32 %v614_v54, %v5056_v39  ;;  %v5115_v8 = vand.u32 4294901760, %v611_v15  ;;  %v6889_v13 = vand.u32 4294901760, %v4867_v46 }
 0x3aa   : > { %6882 = vst [vmem:[#allocation57_spill] sm:$0xff] %v5098_v11  ;;  %1808 = vmatprep.subr.mxu0 %v6885_v59  ;;  %v5109_v49 = vsub.f32 %v5009_v14, %v6886_v5  ;;  %v6890_v25 = vand.u32 4294901760, %v6673_v30  ;;  %v6891_v7 = vand.u32 4294901760, %v5019_v38  ;;  %v5129_v54 = vsub.f32 %v613_v20, %v5071_v42 }
 0x3ab   : > { %6887 = vst [vmem:[#allocation58_spill] sm:$0xff] %v5113_v0  ;;  %6888 = vst [vmem:[#allocation50_spill] sm:$0xff] %v5115_v8  ;;  %2145 = vmatprep.subr.mxu1 %v6889_v13  ;;  %v6893_v37 = vand.u32 4294901760, %v4880_v51  ;;  %v6894_v46 = vand.u32 4294901760, %v5033_v60  ;;  %v6896_v20 = vand.u32 4294901760, %v4905_v57  ;;  %v5154_v30 = vsub.f32 %v612_v61, %v5100_v48  ;;  %v671_v61 = vld [vmem:[#allocation5 + $0x3e0] sm:$0xff] }
 0x3ac   : > { %1812 = vmatpush2.msra.mxu0 %v6890_v25  ;;  %v5125_v59 = vsub.f32 %v5019_v38, %v6891_v7  ;;  %6892 = vst [vmem:[#allocation62_spill] sm:$0xff] %v5129_v54  ;;  %v5141_v7 = vand.u32 4294901760, %v674_v26  ;;  %v672_v25 = vld [vmem:[#allocation5 + $0x3e8] sm:$0xff]  ;;  %v6899_v5 = vand.u32 4294901760, %v4892_v24  ;;  %v6912_v38 = vand.u32 4294901760, %v4956_v45 }
 0x3ad   : > { %2151 = vmatpush1.msra.mxu1 %v6893_v37  ;;  %1816 = vmatmul.mubr.f32.vlgmr.msra.gmra.mxu0 %v6858_v41  ;;  %v5138_v13 = vsub.f32 %v5033_v60, %v6894_v46  ;;  %v6897_v41 = vand.u32 4294901760, %v5044_v21  ;;  %6898 = vst [vmem:[#allocation63_spill] sm:$0xff] %v5154_v30  ;;  %v5167_v46 = vsub.f32 %v611_v15, %v5115_v8  ;;  %v6905_v15 = vand.u32 4294901760, %v4930_v9 }
 0x3ae   : > { %6895 = vst [vmem:[#allocation51_spill] sm:$0xff] %v5141_v7  ;;  %1960 = vmatprep.subr.mxu0 %v4680_v12  ;;  %2157 = vmatprep.subr.mxu1 %v6896_v20  ;;  %v6900_v20 = vand.u32 4294901760, %v5054_v4  ;;  %v6909_v60 = vand.u32 4294901760, %v4944_v40  ;;  %v6915_v14 = vand.u32 4294901760, %v4968_v28  ;;  %v6919_v52 = vand.u32 4294901760, %v4992_v47 }
 0x3af   : > { %v5150_v37 = vsub.f32 %v5044_v21, %v6897_v41  ;;  %1962 = vmatpush1.msra.mxu0 %v4688_v19  ;;  %2092 = vmatprep.mubr.f32.mxu0 %v6899_v5  ;;  %6901 = vst [vmem:[#allocation52_spill] sm:$0xff] %v5167_v46  ;;  %v6902_v21 = vand.u32 4294901760, %v4918_v50  ;;  %v6903_v5 = vand.u32 4294901760, %v5069_v53  ;;  %v670_v41 = vld [vmem:[#allocation5 + $0x3d8] sm:$0xff]  ;;  %v6926_v43 = vand.u32 4294901760, %v5029_v33  ;;  %v6931_v33 = vld [vmem:[#allocation83_spill] sm:$0xff] }
 0x3b0   : > { %v5163_v51 = vsub.f32 %v5054_v4, %v6900_v20  ;;  %1964 = vmatprep.subr.mxu0 %v4702_v3  ;;  %v5179_v4 = vand.u32 4294901760, %v673_v29  ;;  %v669_v20 = vld [vmem:[#allocation5 + $0x3d0] sm:$0xff] }
 0x3b1   : > { %2163 = vmatpush1.msra.mxu1 %v6902_v21  ;;  %v5176_v57 = vsub.f32 %v5069_v53, %v6903_v5  ;;  %1966 = vmatpush1.msra.mxu0 %v4710_v63  ;;  %v6906_v21 = vand.u32 4294901760, %v5085_v1  ;;  %v5191_v5 = vsub.f32 %v674_v26, %v5141_v7  ;;  %v5193_v53 = vand.u32 4294901760, %v672_v25  ;;  %v668_v26 = vld [vmem:[#allocation5 + $0x3c8] sm:$0xff] }
 0x3b2   : > { %6904 = vst [vmem:[#allocation65_spill] sm:$0xff] %v5179_v4  ;;  %2169 = vmatprep.subr.mxu1 %v6905_v15  ;;  %1968 = vmatprep.subr.mxu0 %v4715_v36  ;;  %v6910_v15 = vand.u32 4294901760, %v5098_v11 }
 0x3b3   : > { %v5188_v24 = vsub.f32 %v5085_v1, %v6906_v21  ;;  %6907 = vst [vmem:[#allocation54_spill] sm:$0xff] %v5191_v5  ;;  %6908 = vst [vmem:[#allocation67_spill] sm:$0xff] %v5193_v53  ;;  %2175 = vmatpush1.msra.mxu1 %v6909_v60  ;;  %v5205_v1 = vand.u32 4294901760, %v671_v61  ;;  %1970 = vmatpush1.msra.mxu0 %v4721_v18  ;;  %v6913_v60 = vand.u32 4294901760, %v5113_v0  ;;  %v667_v21 = vld [vmem:[#allocation5 + $0x3c0] sm:$0xff]  ;;  %v6955_v18 = vld [vmem:[#allocation18_spill] sm:$0xff] }
 0x3b4   : > { %v5202_v50 = vsub.f32 %v5098_v11, %v6910_v15  ;;  %2181 = vmatprep.subr.mxu1 %v6912_v38  ;;  %v5217_v11 = vand.u32 4294901760, %v670_v41  ;;  %1972 = vmatprep.subr.mxu0 %v4729_v22  ;;  %v6916_v38 = vand.u32 4294901760, %v5129_v54  ;;  %v666_v15 = vld [vmem:[#allocation5 + $0x3b8] sm:$0xff]  ;;  %v5239_v45 = vsub.f32 %v672_v25, %v5193_v53 }
 0x3b5   : > { %6911 = vst [vmem:[#allocation55_spill] sm:$0xff] %v5205_v1  ;;  %v5214_v9 = vsub.f32 %v5113_v0, %v6913_v60  ;;  %2187 = vmatpush1.msra.mxu1 %v6915_v14  ;;  %v5229_v60 = vsub.f32 %v673_v29, %v5179_v4  ;;  %v5231_v0 = vand.u32 4294901760, %v669_v20  ;;  %1974 = vmatpush1.msra.mxu0 %v4738_v32  ;;  %v6922_v29 = vand.u32 4294901760, %v5006_v16  ;;  %v664_v14 = vld [vmem:[#allocation5 + $0x3a8] sm:$0xff]  ;;  %v6935_v32 = vld [vmem:[#allocation93_spill] sm:$0xff] }
 0x3b6   : > { %6914 = vst [vmem:[#allocation70_spill] sm:$0xff] %v5217_v11  ;;  %v5226_v40 = vsub.f32 %v5129_v54, %v6916_v38  ;;  %2193 = vmatprep.subr.mxu1 %v6919_v52  ;;  %6920 = vst [vmem:[#allocation60_spill] sm:$0xff] %v5239_v45  ;;  %v5241_v38 = vand.u32 4294901760, %v668_v26  ;;  %v665_v54 = vld [vmem:[#allocation5 + $0x3b0] sm:$0xff]  ;;  %1976 = vmatprep.subr.mxu0 %v4759_v17  ;;  %v6923_v52 = vand.u32 4294901760, %v5154_v30  ;;  %v5255_v25 = vand.u32 4294901760, %v667_v21 }
 0x3b7   : > { %6917 = vst [vmem:[#allocation59_spill] sm:$0xff] %v5229_v60  ;;  %6918 = vst [vmem:[#allocation72_spill] sm:$0xff] %v5231_v0  ;;  %2199 = vmatpush1.msra.mxu1 %v6922_v29  ;;  %v5253_v28 = vsub.f32 %v671_v61, %v5205_v1  ;;  %1978 = vmatpush1.msra.mxu0 %v4768_v23  ;;  %v6927_v29 = vand.u32 4294901760, %v5167_v46  ;;  %v5269_v61 = vand.u32 4294901760, %v666_v15  ;;  %v6930_v17 = vand.u32 4294901760, %v5065_v10 }
 0x3b8   : > { %6921 = vst [vmem:[#allocation74_spill] sm:$0xff] %v5241_v38  ;;  %v5250_v62 = vsub.f32 %v5154_v30, %v6923_v52  ;;  %6925 = vst [vmem:[#allocation77_spill] sm:$0xff] %v5255_v25  ;;  %2205 = vmatprep.subr.mxu1 %v6926_v43  ;;  %v5267_v52 = vsub.f32 %v670_v41, %v5217_v11  ;;  %v663_v30 = vld [vmem:[#allocation5 + $0x3a0] sm:$0xff]  ;;  %1980 = vmatprep.subr.mxu0 %v6931_v33  ;;  %v6934_v41 = vand.u32 4294901760, %v5081_v2  ;;  %v661_v33 = vld [vmem:[#allocation5 + $0x390] sm:$0xff] }
 0x3b9   : > { %6924 = vst [vmem:[#allocation61_spill] sm:$0xff] %v5253_v28  ;;  %v5264_v47 = vsub.f32 %v5167_v46, %v6927_v29  ;;  %6929 = vst [vmem:[#allocation78_spill] sm:$0xff] %v5269_v61  ;;  %2211 = vmatpush1.msra.mxu1 %v6930_v17  ;;  %v5277_v23 = vsub.f32 %v669_v20, %v5231_v0  ;;  %v5279_v29 = vand.u32 4294901760, %v665_v54  ;;  %v662_v46 = vld [vmem:[#allocation5 + $0x398] sm:$0xff]  ;;  %1982 = vmatpush1.msra.mxu0 %v6935_v32 }
 0x3ba   : > { %6928 = vst [vmem:[#allocation64_spill] sm:$0xff] %v5267_v52  ;;  %2217 = vmatprep.subr.mxu1 %v6934_v41  ;;  %v6936_v10 = vand.u32 4294901760, %v5191_v5  ;;  %v5291_v16 = vsub.f32 %v668_v26, %v5241_v38  ;;  %v5293_v20 = vand.u32 4294901760, %v664_v14  ;;  %v6939_v22 = vand.u32 4294901760, %v5094_v55  ;;  %1984 = vmatprep.subr.mxu0 %v4803_v44  ;;  %v660_v41 = vld [vmem:[#allocation5 + $0x388] sm:$0xff]  ;;  %v6946_v44 = vld [vmem:[#allocation24_spill] sm:$0xff] }
 0x3bb   : > { %6932 = vst [vmem:[#allocation66_spill] sm:$0xff] %v5277_v23  ;;  %6933 = vst [vmem:[#allocation80_spill] sm:$0xff] %v5279_v29  ;;  %v6942_v26 = vand.u32 4294901760, %v5109_v49  ;;  %1986 = vmatpush1.msra.mxu0 %v4817_v31  ;;  %v5311_v55 = vsub.f32 %v666_v15, %v5269_v61  ;;  %v5313_v2 = vand.u32 4294901760, %v662_v46  ;;  %v6947_v49 = vand.u32 4294901760, %v5229_v60  ;;  %v659_v31 = vld [vmem:[#allocation5 + $0x380] sm:$0xff] }
 0x3bc   : > { %v5287_v17 = vsub.f32 %v5191_v5, %v6936_v10  ;;  %6937 = vst [vmem:[#allocation82_spill] sm:$0xff] %v5291_v16  ;;  %6938 = vst [vmem:[#allocation84_spill] sm:$0xff] %v5293_v20  ;;  %2223 = vmatpush1.msra.mxu1 %v6939_v22  ;;  %v5301_v10 = vsub.f32 %v667_v21, %v5255_v25  ;;  %v5303_v5 = vand.u32 4294901760, %v663_v30  ;;  %v6945_v21 = vand.u32 4294901760, %v5125_v59  ;;  %v6951_v59 = vld [vmem:[#allocation25_spill] sm:$0xff]  ;;  %v658_v43 = vld [vmem:[#allocation5 + $0x378] sm:$0xff] }
 0x3bd   : > { %2229 = vmatprep.subr.mxu1 %v6942_v26  ;;  %6943 = vst [vmem:[#allocation90_spill] sm:$0xff] %v5311_v55  ;;  %6944 = vst [vmem:[#allocation92_spill] sm:$0xff] %v5313_v2  ;;  %1988 = vmatprep.subr.mxu0 %v6946_v44  ;;  %v5321_v26 = vsub.f32 %v5229_v60, %v6947_v49  ;;  %v5325_v22 = vsub.f32 %v665_v54, %v5279_v29  ;;  %v5327_v15 = vand.u32 4294901760, %v661_v33 }
 0x3be   : > { %6940 = vst [vmem:[#allocation86_spill] sm:$0xff] %v5301_v10  ;;  %6941 = vst [vmem:[#allocation88_spill] sm:$0xff] %v5303_v5  ;;  %2235 = vmatpush1.msra.mxu1 %v6945_v21  ;;  %v6950_v32 = vand.u32 4294901760, %v5138_v13  ;;  %1990 = vmatpush1.msra.mxu0 %v6951_v59  ;;  %v6952_v44 = vand.u32 4294901760, %v5239_v45  ;;  %v5340_v54 = vsub.f32 %v664_v14, %v5293_v20  ;;  %v6954_v60 = vand.u32 4294901760, %v5150_v37  ;;  %v6960_v37 = vld [vmem:[#allocation29_spill] sm:$0xff] }
 0x3bf   : > { %6948 = vst [vmem:[#allocation87_spill] sm:$0xff] %v5325_v22  ;;  %6949 = vst [vmem:[#allocation89_spill] sm:$0xff] %v5327_v15  ;;  %1992 = vmatprep.subr.mxu0 %v6955_v18  ;;  %v6959_v14 = vand.u32 4294901760, %v5163_v51  ;;  %v5366_v21 = vsub.f32 %v662_v46, %v5313_v2  ;;  %v6965_v59 = vld [vmem:[#allocation33_spill] sm:$0xff]  ;;  %v2306_v51 = vand.u32 4294901760, %v5321_v26  ;;  %v6968_v46 = vand.u32 4294901760, %v5188_v24 }
 0x3c0   : > { %2241 = vmatprep.subr.mxu1 %v6950_v32  ;;  %v5336_v49 = vsub.f32 %v5239_v45, %v6952_v44  ;;  %6953 = vst [vmem:[#allocation91_spill] sm:$0xff] %v5340_v54  ;;  %v6956_v32 = vand.u32 4294901760, %v5253_v28  ;;  %v5352_v44 = vsub.f32 %v663_v30, %v5303_v5  ;;  %v5354_v45 = vand.u32 4294901760, %v660_v41  ;;  %1994 = vmatpush1.msra.mxu0 %v6960_v37 }
 0x3c1   : > { %2247 = vmatpush1.msra.mxu1 %v6954_v60  ;;  %v6961_v60 = vand.u32 4294901760, %v5267_v52  ;;  %6962 = vst [vmem:[#allocation102_spill] sm:$0xff] %v5366_v21  ;;  %v5368_v30 = vand.u32 4294901760, %v659_v31  ;;  %1996 = vmatprep.subr.mxu0 %v6965_v59  ;;  %v6973_v59 = vld [vmem:[#allocation37_spill] sm:$0xff] }
 0x3c2   : > { %v5348_v13 = vsub.f32 %v5253_v28, %v6956_v32  ;;  %6957 = vst [vmem:[#allocation100_spill] sm:$0xff] %v5352_v44  ;;  %6958 = vst [vmem:[#allocation101_spill] sm:$0xff] %v5354_v45  ;;  %2253 = vmatprep.subr.mxu1 %v6959_v14  ;;  %v6964_v28 = vand.u32 4294901760, %v5176_v57  ;;  %v6966_v14 = vand.u32 4294901760, %v5277_v23  ;;  %v5381_v32 = vsub.f32 %v661_v33, %v5327_v15 }
 0x3c3   : > { %v5362_v18 = vsub.f32 %v5267_v52, %v6961_v60  ;;  %6963 = vst [vmem:[#allocation103_spill] sm:$0xff] %v5368_v30  ;;  %v6969_v52 = vld [vmem:[#allocation23_spill] sm:$0xff]  ;;  %v2312_v57 = vand.u32 4294901760, %v5336_v49  ;;  %v6972_v33 = vand.u32 4294901760, %v5202_v50  ;;  %v6977_v50 = vld [vmem:[#allocation40_spill] sm:$0xff] }
 0x3c4   : > { %2259 = vmatpush1.msra.mxu1 %v6964_v28  ;;  %v5377_v37 = vsub.f32 %v5277_v23, %v6966_v14  ;;  %6967 = vst [vmem:[#allocation104_spill] sm:$0xff] %v5381_v32  ;;  %1998 = vmatpush1.msra.mxu0 %v6969_v52  ;;  %v6970_v28 = vand.u32 4294901760, %v5291_v16  ;;  %v5393_v23 = vand.u32 4294901760, %v658_v43  ;;  %v657_v60 = vld [vmem:[#allocation5 + $0x370] sm:$0xff]  ;;  %v2318_v24 = vand.u32 4294901760, %v5348_v13  ;;  %v656_v14 = vld [vmem:[#allocation5 + $0x368] sm:$0xff] }
 0x3c5   : > { %2265 = vmatprep.subr.mxu1 %v6968_v46  ;;  %2000 = vmatprep.subr.mxu0 %v6973_v59  ;;  %v6974_v46 = vand.u32 4294901760, %v5301_v10  ;;  %v6976_v52 = vand.u32 4294901760, %v5214_v9  ;;  %v6978_v13 = vand.u32 4294901760, %v5311_v55 }
 0x3c6   : > { %v5390_v26 = vsub.f32 %v5291_v16, %v6970_v28  ;;  %6971 = vst [vmem:[#allocation105_spill] sm:$0xff] %v5393_v23  ;;  %2271 = vmatpush1.msra.mxu1 %v6972_v33  ;;  %v5406_v16 = vsub.f32 %v660_v41, %v5354_v45  ;;  %2002 = vmatpush1.msra.mxu0 %v6977_v50  ;;  %v2324_v33 = vand.u32 4294901760, %v5362_v18  ;;  %v655_v41 = vld [vmem:[#allocation5 + $0x360] sm:$0xff]  ;;  %v2330_v9 = vand.u32 4294901760, %v5377_v37 }
 0x3c7   : > { %v5402_v49 = vsub.f32 %v5301_v10, %v6974_v46  ;;  %2277 = vmatprep.subr.mxu1 %v6976_v52  ;;  %v5415_v59 = vsub.f32 %v5311_v55, %v6978_v13  ;;  %v5419_v28 = vsub.f32 %v659_v31, %v5368_v30  ;;  %v6980_v10 = vand.u32 4294901760, %v5226_v40  ;;  %2004 = vmatprep.subr.mxu0 %v4983_v58  ;;  %v654_v46 = vld [vmem:[#allocation5 + $0x358] sm:$0xff]  ;;  %v653_v13 = vld [vmem:[#allocation5 + $0x350] sm:$0xff] }
 0x3c8   : > { %6975 = vst [vmem:[#allocation106_spill] sm:$0xff] %v5406_v16  ;;  %v6981_v18 = vand.u32 4294901760, %v5325_v22  ;;  %v5431_v55 = vand.u32 4294901760, %v657_v60  ;;  %v6983_v31 = vand.u32 4294901760, %v5250_v62  ;;  %2006 = vmatpush1.msra.mxu0 %v4997_v6  ;;  %v2336_v40 = vand.u32 4294901760, %v5390_v26 }
 0x3c9   : > { %6979 = vst [vmem:[#allocation107_spill] sm:$0xff] %v5419_v28  ;;  %2283 = vmatpush1.msra.mxu1 %v6980_v10  ;;  %v6984_v10 = vand.u32 4294901760, %v5340_v54  ;;  %v6987_v58 = vand.u32 4294901760, %v5264_v47  ;;  %2008 = vmatprep.subr.mxu0 %v5011_v35  ;;  %v2342_v62 = vand.u32 4294901760, %v5402_v49  ;;  %v6988_v26 = vand.u32 4294901760, %v5352_v44 }
 0x3ca   : > { %v5428_v52 = vsub.f32 %v5325_v22, %v6981_v18  ;;  %6982 = vst [vmem:[#allocation108_spill] sm:$0xff] %v5431_v55  ;;  %2289 = vmatprep.subr.mxu1 %v6983_v31  ;;  %v5443_v18 = vsub.f32 %v658_v43, %v5393_v23  ;;  %v5445_v22 = vand.u32 4294901760, %v656_v14  ;;  %v652_v43 = vld [vmem:[#allocation5 + $0x348] sm:$0xff]  ;;  %v6990_v6 = vand.u32 4294901760, %v5287_v17  ;;  %2010 = vmatpush1.msra.mxu0 %v5021_v34 }
 0x3cb   : > { %v5440_v37 = vsub.f32 %v5340_v54, %v6984_v10  ;;  %2295 = vmatpush1.msra.mxu1 %v6987_v58  ;;  %v5454_v31 = vsub.f32 %v5352_v44, %v6988_v26  ;;  %v5457_v54 = vand.u32 4294901760, %v655_v41  ;;  %v2348_v58 = vand.u32 4294901760, %v5415_v59  ;;  %v651_v10 = vld [vmem:[#allocation5 + $0x340] sm:$0xff]  ;;  %2012 = vmatprep.subr.mxu0 %v5035_v27 }
 0x3cc   : > { %6985 = vst [vmem:[#allocation109_spill] sm:$0xff] %v5443_v18  ;;  %6986 = vst [vmem:[#allocation110_spill] sm:$0xff] %v5445_v22  ;;  %2301 = vmatprep.subr.mxu1 %v6990_v6  ;;  %v6991_v47 = vand.u32 4294901760, %v5366_v21  ;;  %v5469_v44 = vand.u32 4294901760, %v654_v46  ;;  %v2354_v17 = vand.u32 4294901760, %v5428_v52  ;;  %v6993_v6 = vand.u32 4294901760, %v5381_v32  ;;  %2014 = vmatpush1.msra.mxu0 %v5046_v56 }
 0x3cd   : > { %6989 = vst [vmem:[#allocation111_spill] sm:$0xff] %v5457_v54  ;;  %2307 = vmatpush2.msra.mxu1 %v2306_v51  ;;  %v5479_v59 = vsub.f32 %v657_v60, %v5431_v55  ;;  %v2360_v51 = vand.u32 4294901760, %v5440_v37  ;;  %v5487_v52 = vsub.f32 %v656_v14, %v5445_v22  ;;  %v5489_v27 = vand.u32 4294901760, %v652_v43  ;;  %2016 = vmatprep.subr.mxu0 %v5056_v39  ;;  %v648_v14 = vld [vmem:[#allocation5 + $0x328] sm:$0xff] }
 0x3ce   : > { %v5466_v49 = vsub.f32 %v5366_v21, %v6991_v47  ;;  %6992 = vst [vmem:[#allocation112_spill] sm:$0xff] %v5469_v44  ;;  %v5476_v34 = vsub.f32 %v5381_v32, %v6993_v6  ;;  %v5481_v47 = vand.u32 4294901760, %v653_v13  ;;  %v650_v21 = vld [vmem:[#allocation5 + $0x338] sm:$0xff]  ;;  %2313 = vmatprep.subr.mxu1 %v2312_v57  ;;  %v649_v6 = vld [vmem:[#allocation5 + $0x330] sm:$0xff]  ;;  %v2366_v60 = vand.u32 4294901760, %v5454_v31  ;;  %2018 = vmatpush1.msra.mxu0 %v5071_v42 }
 0x3cf   : > { %6994 = vst [vmem:[#allocation113_spill] sm:$0xff] %v5479_v59  ;;  %6995 = vst [vmem:[#allocation114_spill] sm:$0xff] %v5487_v52  ;;  %2319 = vmatpush2.msra.mxu1 %v2318_v24  ;;  %v6996_v32 = vand.u32 4294901760, %v5406_v16  ;;  %v5499_v37 = vsub.f32 %v655_v41, %v5457_v54  ;;  %v5501_v26 = vand.u32 4294901760, %v651_v10  ;;  %v6997_v39 = vand.u32 4294901760, %v5419_v28  ;;  %v647_v41 = vld [vmem:[#allocation5 + $0x320] sm:$0xff]  ;;  %2020 = vmatprep.subr.mxu0 %v5100_v48 }
 0x3d0   : > { %2325 = vmatprep.subr.mxu1 %v2324_v33  ;;  %v2372_v24 = vand.u32 4294901760, %v5466_v49  ;;  %v5511_v56 = vsub.f32 %v654_v46, %v5469_v44  ;;  %v2378_v33 = vand.u32 4294901760, %v5476_v34  ;;  %v5519_v49 = vsub.f32 %v653_v13, %v5481_v47  ;;  %2022 = vmatpush1.msra.mxu0 %v5115_v8 }
 0x3d1   : > { %v5496_v57 = vsub.f32 %v5406_v16, %v6996_v32  ;;  %v5508_v31 = vsub.f32 %v5419_v28, %v6997_v39  ;;  %v5513_v32 = vand.u32 4294901760, %v650_v21  ;;  %2331 = vmatpush2.msra.mxu1 %v2330_v9  ;;  %v5521_v42 = vand.u32 4294901760, %v649_v6  ;;  %v646_v39 = vld [vmem:[#allocation5 + $0x318] sm:$0xff]  ;;  %v645_v16 = vld [vmem:[#allocation5 + $0x310] sm:$0xff]  ;;  %2024 = vmatprep.subr.mxu0 %v5141_v7 }
 0x3d2   : > { %2337 = vmatprep.subr.mxu1 %v2336_v40  ;;  %v6998_v46 = vand.u32 4294901760, %v5443_v18  ;;  %v5529_v48 = vsub.f32 %v652_v43, %v5489_v27  ;;  %v5531_v34 = vand.u32 4294901760, %v648_v14  ;;  %v5537_v8 = vsub.f32 %v651_v10, %v5501_v26  ;;  %2026 = vmatpush2.msra.mxu0 %v5179_v4 }
 0x3d3   : > { %2343 = vmatpush2.msra.mxu1 %v2342_v62  ;;  %v2384_v13 = vand.u32 4294901760, %v5496_v57  ;;  %v5539_v35 = vand.u32 4294901760, %v647_v41  ;;  %v2390_v43 = vand.u32 4294901760, %v5508_v31  ;;  %v5545_v62 = vsub.f32 %v650_v21, %v5513_v32  ;;  %v643_v57 = vld [vmem:[#allocation5 + $0x300] sm:$0xff]  ;;  %2028 = vmatprep.subr.mxu0 %v5193_v53 }
 0x3d4   : > { %v2395_v28 = vsub.f32 %v5443_v18, %v6998_v46  ;;  %6999 = vst [vmem:[#allocation115_spill] sm:$0xff] %v5531_v34  ;;  %v644_v46 = vld [vmem:[#allocation5 + $0x308] sm:$0xff]  ;;  %2349 = vmatprep.subr.mxu1 %v2348_v58  ;;  %v5547_v18 = vand.u32 4294901760, %v646_v39  ;;  %v7002_v10 = vand.u32 4294901760, %v5479_v59  ;;  %v5555_v4 = vsub.f32 %v649_v6, %v5521_v42  ;;  %2030 = vmatpush2.msra.mxu0 %v5205_v1 }
 0x3d5   : > { %7000 = vst [vmem:[#allocation116_spill] sm:$0xff] %v5539_v35  ;;  %7001 = vst [vmem:[#allocation117_spill] sm:$0xff] %v5545_v62  ;;  %2355 = vmatpush2.msra.mxu1 %v2354_v17  ;;  %v5557_v31 = vand.u32 4294901760, %v645_v16  ;;  %v7004_v21 = vand.u32 4294901760, %v5487_v52  ;;  %v5565_v53 = vsub.f32 %v648_v14, %v5531_v34  ;;  %2032 = vmatprep.subr.mxu0 %v5217_v11  ;;  %v7005_v6 = vand.u32 4294901760, %v5499_v37 }
 0x3d6   : > { %v2401_v40 = vsub.f32 %v5479_v59, %v7002_v10  ;;  %2361 = vmatprep.subr.mxu1 %v2360_v51  ;;  %v5567_v10 = vand.u32 4294901760, %v644_v46  ;;  %v5575_v59 = vsub.f32 %v647_v41, %v5539_v35  ;;  %2034 = vmatpush2.msra.mxu0 %v5231_v0  ;;  %v2396_v14 = vand.u32 4294901760, %v2395_v28 }
 0x3d7   : > { %7003 = vst [vmem:[#allocation118_spill] sm:$0xff] %v5557_v31  ;;  %v2407_v17 = vsub.f32 %v5487_v52, %v7004_v21  ;;  %2367 = vmatpush2.msra.mxu1 %v2366_v60  ;;  %v2413_v51 = vsub.f32 %v5499_v37, %v7005_v6  ;;  %v5577_v21 = vand.u32 4294901760, %v643_v57  ;;  %v7006_v9 = vand.u32 4294901760, %v5511_v56  ;;  %2036 = vmatprep.subr.mxu0 %v5241_v38 }
 0x3d8   : > { %2373 = vmatprep.subr.mxu1 %v2372_v24  ;;  %v5585_v11 = vsub.f32 %v646_v39, %v5547_v18  ;;  %v2402_v41 = vand.u32 4294901760, %v2401_v40  ;;  %v7007_v6 = vand.u32 4294901760, %v5519_v49  ;;  %v5593_v28 = vsub.f32 %v645_v16, %v5557_v31  ;;  %2038 = vmatpush2.msra.mxu0 %v5255_v25 }
 0x3d9   : > { %v2419_v60 = vsub.f32 %v5511_v56, %v7006_v9  ;;  %2379 = vmatpush2.msra.mxu1 %v2378_v33  ;;  %v2408_v9 = vand.u32 4294901760, %v2407_v17  ;;  %v7008_v39 = vand.u32 4294901760, %v5529_v48  ;;  %v5601_v40 = vsub.f32 %v644_v46, %v5567_v10  ;;  %2040 = vmatprep.subr.mxu0 %v5269_v61 }
 0x3da   : > { %v2425_v24 = vsub.f32 %v5519_v49, %v7007_v6  ;;  %2385 = vmatprep.subr.mxu1 %v2384_v13  ;;  %v2414_v6 = vand.u32 4294901760, %v2413_v51  ;;  %v7009_v16 = vand.u32 4294901760, %v5537_v8  ;;  %v5609_v17 = vsub.f32 %v643_v57, %v5577_v21  ;;  %2042 = vmatpush2.msra.mxu0 %v5279_v29 }
 0x3db   : > { %v2431_v33 = vsub.f32 %v5529_v48, %v7008_v39  ;;  %2391 = vmatpush2.msra.mxu1 %v2390_v43  ;;  %v2420_v39 = vand.u32 4294901760, %v2419_v60  ;;  %v7010_v46 = vand.u32 4294901760, %v5545_v62  ;;  %2044 = vmatprep.subr.mxu0 %v5293_v20  ;;  %v7012_v60 = vand.u32 4294901760, %v5565_v53 }
 0x3dc   : > { %v2437_v13 = vsub.f32 %v5537_v8, %v7009_v16  ;;  %2397 = vmatprep.subr.mxu1 %v2396_v14  ;;  %v2426_v51 = vand.u32 4294901760, %v2425_v24  ;;  %v7011_v16 = vand.u32 4294901760, %v5555_v4  ;;  %2046 = vmatpush2.msra.mxu0 %v5303_v5 }
 0x3dd   : > { %v2443_v43 = vsub.f32 %v5545_v62, %v7010_v46  ;;  %2403 = vmatpush2.msra.mxu1 %v2402_v41  ;;  %v2432_v14 = vand.u32 4294901760, %v2431_v33  ;;  %v2455_v46 = vsub.f32 %v5565_v53, %v7012_v60  ;;  %v7013_v41 = vld [vmem:[#allocation94_spill] sm:$0xff]  ;;  %2048 = vmatprep.subr.mxu0 %v5313_v2  ;;  %v7015_v60 = vand.u32 4294901760, %v5585_v11 }
 0x3de   : > { %v2449_v58 = vsub.f32 %v5555_v4, %v7011_v16  ;;  %2409 = vmatprep.subr.mxu1 %v2408_v9  ;;  %v545_v62 = vmul.f32 0.25, %v7013_v41  ;;  %v2438_v24 = vand.u32 4294901760, %v2437_v13  ;;  %v7014_v16 = vand.u32 4294901760, %v5575_v59  ;;  %2050 = vmatpush2.msra.mxu0 %v5327_v15 }
 0x3df   : > { %2415 = vmatpush2.msra.mxu1 %v2414_v6  ;;  %v2444_v33 = vand.u32 4294901760, %v2443_v43  ;;  %v2467_v52 = vsub.f32 %v5585_v11, %v7015_v60  ;;  %2052 = vmatprep.subr.mxu0 %v5354_v45  ;;  %v7016_v13 = vand.u32 4294901760, %v5593_v28 }
 0x3e0   : > { %v2461_v57 = vsub.f32 %v5575_v59, %v7014_v16  ;;  %2421 = vmatprep.subr.mxu1 %v2420_v39  ;;  %v2450_v6 = vand.u32 4294901760, %v2449_v58  ;;  %2054 = vmatpush2.msra.mxu0 %v5368_v30  ;;  %v2456_v16 = vand.u32 4294901760, %v2455_v46  ;;  %v7017_v39 = vand.u32 4294901760, %v5601_v40 }
 0x3e1   : > { %2427 = vmatpush2.msra.mxu1 %v2426_v51  ;;  %v2473_v41 = vsub.f32 %v5593_v28, %v7016_v13  ;;  %v5644_v9 = vand.u32 4294901760, %v545_v62  ;;  %2056 = vmatprep.subr.mxu0 %v5393_v23  ;;  %v7019_v58 = vand.u32 4294901760, %v5609_v17 }
 0x3e2   : > { %2433 = vmatprep.subr.mxu1 %v2432_v14  ;;  %v2479_v43 = vsub.f32 %v5601_v40, %v7017_v39  ;;  %v2462_v51 = vand.u32 4294901760, %v2461_v57  ;;  %2058 = vmatpush2.msra.mxu0 %v5431_v55  ;;  %v2468_v14 = vand.u32 4294901760, %v2467_v52  ;;  %v7023_v39 = vld [vmem:[#allocation16_spill] sm:$0xff] }
 0x3e3   : > { %7018 = vst [vmem:[#allocation94_spill] sm:$0xff] %v5644_v9  ;;  %2439 = vmatpush2.msra.mxu1 %v2438_v24  ;;  %v2485_v60 = vsub.f32 %v5609_v17, %v7019_v58  ;;  %2060 = vmatprep.subr.mxu0 %v5445_v22  ;;  %v2474_v46 = vand.u32 4294901760, %v2473_v41  ;;  %v5654_v24 = vsub.f32 %v545_v62, %v5644_v9  ;;  %v7020_v62 = vld [vmem:[#allocation85_spill] sm:$0xff]  ;;  %v7026_v58 = vld [vmem:[#allocation75_spill] sm:$0xff] }
 0x3e4   : > { %2445 = vmatprep.subr.mxu1 %v2444_v33  ;;  %2062 = vmatpush2.msra.mxu0 %v5457_v54  ;;  %v2480_v13 = vand.u32 4294901760, %v2479_v43  ;;  %v7021_v33 = vand.u32 4294901760, %v7020_v62  ;;  %v7022_v41 = vld [vmem:[#allocation13_spill] sm:$0xff]  ;;  %v7024_v43 = vld [vmem:[#allocation20_spill] sm:$0xff] }
 0x3e5   : > { %2451 = vmatpush2.msra.mxu1 %v2450_v6  ;;  %2064 = vmatprep.subr.mxu0 %v5469_v44  ;;  %v2486_v57 = vand.u32 4294901760, %v2485_v60  ;;  %v6452_v52 = vand.u32 4294901760, %v5654_v24  ;;  %v7027_v60 = vld [vmem:[#allocation17_spill] sm:$0xff] }
 0x3e6   : > { %2457 = vmatprep.subr.mxu1 %v2456_v16  ;;  %2066 = vmatpush2.msra.mxu0 %v5481_v47 }
 0x3e7   : > { %2463 = vmatpush2.msra.mxu1 %v2462_v51  ;;  %2068 = vmatprep.subr.mxu0 %v5489_v27  ;;  %v2096_v6 = vsub.f32 %v5654_v24, %v6452_v52  ;;  %v7025_v51 = vld [vmem:[#allocation12_spill] sm:$0xff]  ;;  %v7035_v52 = vld [vmem:[#allocation73_spill] sm:$0xff] }
 0x3e8   : > { %2469 = vmatprep.subr.mxu1 %v2468_v14  ;;  %2070 = vmatpush2.msra.mxu0 %v5501_v26  ;;  %v7028_v14 = vld [vmem:[#allocation79_spill] sm:$0xff] }
 0x3e9   : > { %2475 = vmatpush2.msra.mxu1 %v2474_v46  ;;  %2072 = vmatprep.subr.mxu0 %v5513_v32  ;;  %v2097_v16 = vand.u32 4294901760, %v2096_v6  ;;  %v7029_v46 = vld [vmem:[#allocation21_spill] sm:$0xff]  ;;  %v7033_v6 = vld [vmem:[#allocation71_spill] sm:$0xff] }
 0x3ea   : > { %2481 = vmatprep.subr.mxu1 %v2480_v13  ;;  %2074 = vmatpush2.msra.mxu0 %v5521_v42  ;;  %v7030_v13 = vld [vmem:[#allocation83_spill] sm:$0xff] }
 0x3eb   : > { %2487 = vmatpush2.msra.mxu1 %v2486_v57  ;;  %2076 = vmatprep.subr.mxu0 %v5531_v34  ;;  %v7031_v57 = vld [vmem:[#allocation19_spill] sm:$0xff] }
 0x3ec   : > { %2491 = vmatmul.mubr.f32.vlgmr.msra.gmra.mxu1 %v5644_v9  ;;  %2701 = vmatprep.subr.mxu1 %v4680_v12  ;;  %v7036_v9 = vld [vmem:[#allocation98_spill] sm:$0xff] }
 0x3ed   : > { %2703 = vmatpush1.msra.mxu1 %v4688_v19  ;;  %2831 = vmatprep.mubr.f32.mxu1 %v7021_v33  ;;  %v7032_v33 = vld [vmem:[#allocation93_spill] sm:$0xff] }
 0x3ee   : > { %2705 = vmatprep.subr.mxu1 %v4702_v3  ;;  %2078 = vmatpush2.msra.mxu0 %v5539_v35 }
 0x3ef   : > { %2707 = vmatpush1.msra.mxu1 %v4710_v63  ;;  %2080 = vmatprep.subr.mxu0 %v5547_v18 }
 0x3f0   : > { %2709 = vmatprep.subr.mxu1 %v4715_v36  ;;  %2082 = vmatpush2.msra.mxu0 %v5557_v31 }
 0x3f1   : > { %2711 = vmatpush1.msra.mxu1 %v7022_v41  ;;  %2084 = vmatprep.subr.mxu0 %v5567_v10 }
 0x3f2   : > { %2713 = vmatprep.subr.mxu1 %v7023_v39  ;;  %2086 = vmatpush2.msra.mxu0 %v5577_v21 }
 0x3f3   : > { %2715 = vmatpush1.msra.mxu1 %v7024_v43  ;;  %2098 = vmatmul.mubr.f32.vlgmr.msra.gmra.mxu0 %v2097_v16  ;;  %v7034_v16 = vld [vmem:[#allocation96_spill] sm:$0xff] }
 0x3f4   : > { %2499 = vmatprep.subr.mxu0 %v7025_v51  ;;  %2717 = vmatprep.subr.mxu1 %v7026_v58 }
 0x3f5   : > { %2502 = vmatpush1.msra.mxu0 %v7027_v60  ;;  %2691 = vmatprep.mubr.f32.mxu0 %v7020_v62  ;;  %v7037_v60 = vld [vmem:[#allocation76_spill] sm:$0xff] }
 0x3f6   : > { %2719 = vmatpush1.msra.mxu1 %v7028_v14  ;;  %2505 = vmatprep.subr.mxu0 %v7029_v46  ;;  %v7038_v62 = vld [vmem:[#allocation24_spill] sm:$0xff]  ;;  %v7039_v14 = vld [vmem:[#allocation81_spill] sm:$0xff] }
 0x3f7   : > { %2721 = vmatprep.subr.mxu1 %v7030_v13  ;;  %2508 = vmatpush1.msra.mxu0 %v7031_v57  ;;  %v7040_v46 = vld [vmem:[#allocation25_spill] sm:$0xff]  ;;  %v7041_v13 = vld [vmem:[#allocation95_spill] sm:$0xff]  ;;  %v7042_v57 = vld [vmem:[#allocation18_spill] sm:$0xff] }
 0x3f8   : > { %2723 = vmatpush1.msra.mxu1 %v7032_v33  ;;  %2511 = vmatprep.subr.mxu0 %v7033_v6  ;;  %v7043_v33 = vld [vmem:[#allocation97_spill] sm:$0xff] }
 0x3f9   : > { %2725 = vmatprep.subr.mxu1 %v7034_v16  ;;  %2514 = vmatpush1.msra.mxu0 %v7035_v52  ;;  %v7044_v6 = vld [vmem:[#allocation29_spill] sm:$0xff]  ;;  %v7045_v16 = vld [vmem:[#allocation11_spill] sm:$0xff] }
 0x3fa   : > { %2727 = vmatpush1.msra.mxu1 %v7036_v9  ;;  %2517 = vmatprep.subr.mxu0 %v7037_v60  ;;  %v7046_v52 = vld [vmem:[#allocation33_spill] sm:$0xff]  ;;  %v7047_v9 = vld [vmem:[#allocation14_spill] sm:$0xff]  ;;  %v7048_v60 = vld [vmem:[#allocation23_spill] sm:$0xff] }
 0x3fb   : > { %2729 = vmatprep.subr.mxu1 %v7038_v62  ;;  %2520 = vmatpush1.msra.mxu0 %v7039_v14  ;;  %v7049_v62 = vld [vmem:[#allocation15_spill] sm:$0xff]  ;;  %v7050_v14 = vld [vmem:[#allocation37_spill] sm:$0xff] }
 0x3fc   : > { %2731 = vmatpush1.msra.mxu1 %v7040_v46  ;;  %2523 = vmatprep.subr.mxu0 %v7041_v13  ;;  %v7051_v46 = vld [vmem:[#allocation26_spill] sm:$0xff] }
 0x3fd   : > { %2733 = vmatprep.subr.mxu1 %v7042_v57  ;;  %2526 = vmatpush1.msra.mxu0 %v7043_v33  ;;  %v7052_v57 = vld [vmem:[#allocation27_spill] sm:$0xff]  ;;  %v7053_v33 = vld [vmem:[#allocation41_spill] sm:$0xff] }
 0x3fe   : > { %2735 = vmatpush1.msra.mxu1 %v7044_v6  ;;  %2529 = vmatprep.subr.mxu0 %v7045_v16  ;;  %v7054_v6 = vld [vmem:[#allocation28_spill] sm:$0xff]  ;;  %v7055_v16 = vld [vmem:[#allocation42_spill] sm:$0xff] }
 0x3ff   : > { %2737 = vmatprep.subr.mxu1 %v7046_v52  ;;  %2532 = vmatpush1.msra.mxu0 %v7047_v9  ;;  %v7056_v52 = vld [vmem:[#allocation22_spill] sm:$0xff]  ;;  %v7057_v9 = vld [vmem:[#allocation43_spill] sm:$0xff] }
 0x400   : > { %2739 = vmatpush1.msra.mxu1 %v7048_v60  ;;  %2535 = vmatprep.subr.mxu0 %v7049_v62  ;;  %v7058_v60 = vld [vmem:[#allocation30_spill] sm:$0xff]  ;;  %v7059_v62 = vld [vmem:[#allocation44_spill] sm:$0xff] }
 0x401   : > { %2741 = vmatprep.subr.mxu1 %v7050_v14  ;;  %2538 = vmatpush1.msra.mxu0 %v7051_v46  ;;  %v7060_v14 = vld [vmem:[#allocation31_spill] sm:$0xff]  ;;  %v7061_v46 = vld [vmem:[#allocation45_spill] sm:$0xff] }
 0x402   : > { %2743 = vmatpush1.msra.mxu1 %v6977_v50  ;;  %2541 = vmatprep.subr.mxu0 %v7052_v57  ;;  %v7062_v50 = vld [vmem:[#allocation32_spill] sm:$0xff]  ;;  %v7063_v57 = vld [vmem:[#allocation49_spill] sm:$0xff] }
 0x403   : > { %2745 = vmatprep.subr.mxu1 %v7053_v33  ;;  %2544 = vmatpush1.msra.mxu0 %v7054_v6  ;;  %v7064_v33 = vld [vmem:[#allocation34_spill] sm:$0xff]  ;;  %v7065_v6 = vld [vmem:[#allocation53_spill] sm:$0xff] }
 0x404   : > { %2747 = vmatpush1.msra.mxu1 %v7055_v16  ;;  %2547 = vmatprep.subr.mxu0 %v7056_v52  ;;  %v7066_v16 = vld [vmem:[#allocation35_spill] sm:$0xff]  ;;  %v7067_v52 = vld [vmem:[#allocation56_spill] sm:$0xff] }
 0x405   : > { %2749 = vmatprep.subr.mxu1 %v7057_v9  ;;  %2550 = vmatpush1.msra.mxu0 %v7058_v60  ;;  %v7068_v9 = vld [vmem:[#allocation36_spill] sm:$0xff] }
 0x406   : > { %2751 = vmatpush1.msra.mxu1 %v7059_v62  ;;  %2553 = vmatprep.subr.mxu0 %v7060_v14  ;;  %v7069_v60 = vld [vmem:[#allocation48_spill] sm:$0xff]  ;;  %v7070_v62 = vld [vmem:[#allocation38_spill] sm:$0xff] }
 0x407   : > { %2753 = vmatprep.subr.mxu1 %v7061_v46  ;;  %2556 = vmatpush1.msra.mxu0 %v7062_v50  ;;  %v7071_v14 = vld [vmem:[#allocation50_spill] sm:$0xff]  ;;  %v7072_v46 = vld [vmem:[#allocation39_spill] sm:$0xff] }
 0x408   : > { %2755 = vmatpush1.msra.mxu1 %v7063_v57  ;;  %2559 = vmatprep.subr.mxu0 %v7064_v33  ;;  %v7073_v57 = vld [vmem:[#allocation46_spill] sm:$0xff]  ;;  %v7074_v33 = vld [vmem:[#allocation65_spill] sm:$0xff] }
 0x409   : > { %2757 = vmatprep.subr.mxu1 %v7065_v6  ;;  %2562 = vmatpush1.msra.mxu0 %v7066_v16  ;;  %v7075_v6 = vld [vmem:[#allocation47_spill] sm:$0xff] }
 0x40a   : > { %2759 = vmatpush1.msra.mxu1 %v7067_v52  ;;  %2565 = vmatprep.subr.mxu0 %v7068_v9  ;;  %v7076_v16 = vld [vmem:[#allocation67_spill] sm:$0xff]  ;;  %v7077_v52 = vld [vmem:[#allocation57_spill] sm:$0xff] }
 0x40b   : > { %2761 = vmatprep.subr.mxu1 %v7069_v60  ;;  %2568 = vmatpush1.msra.mxu0 %v7070_v62  ;;  %v7078_v60 = vld [vmem:[#allocation58_spill] sm:$0xff] }
 0x40c   : > { %2763 = vmatpush1.msra.mxu1 %v7071_v14  ;;  %2571 = vmatprep.subr.mxu0 %v7072_v46  ;;  %v7079_v62 = vld [vmem:[#allocation70_spill] sm:$0xff] }
 0x40d   : > { %2765 = vmatprep.subr.mxu1 %v5141_v7  ;;  %2574 = vmatpush1.msra.mxu0 %v7073_v57  ;;  %v7080_v14 = vld [vmem:[#allocation62_spill] sm:$0xff]  ;;  %v7081_v7 = vld [vmem:[#allocation63_spill] sm:$0xff] }
 0x40e   : > { %2767 = vmatpush2.msra.mxu1 %v7074_v33  ;;  %2577 = vmatprep.subr.mxu0 %v7075_v6  ;;  %v7082_v33 = vld [vmem:[#allocation52_spill] sm:$0xff] }
 0x40f   : > { %2769 = vmatprep.subr.mxu1 %v7076_v16  ;;  %2580 = vmatpush1.msra.mxu0 %v7077_v52  ;;  %v7083_v16 = vld [vmem:[#allocation54_spill] sm:$0xff] }
 0x410   : > { %2771 = vmatpush2.msra.mxu1 %v5205_v1  ;;  %2583 = vmatprep.subr.mxu0 %v7078_v60  ;;  %v7084_v1 = vld [vmem:[#allocation59_spill] sm:$0xff] }
 0x411   : > { %2773 = vmatprep.subr.mxu1 %v7079_v62  ;;  %2586 = vmatpush1.msra.mxu0 %v7080_v14  ;;  %v7085_v62 = vld [vmem:[#allocation60_spill] sm:$0xff] }
 0x412   : > { %2775 = vmatpush2.msra.mxu1 %v5231_v0  ;;  %2589 = vmatprep.subr.mxu0 %v7081_v7  ;;  %v7086_v0 = vld [vmem:[#allocation61_spill] sm:$0xff] }
 0x413   : > { %2777 = vmatprep.subr.mxu1 %v5241_v38  ;;  %2592 = vmatpush1.msra.mxu0 %v7082_v33  ;;  %v7087_v38 = vld [vmem:[#allocation64_spill] sm:$0xff] }
 0x414   : > { %2779 = vmatpush2.msra.mxu1 %v5255_v25  ;;  %2595 = vmatprep.subr.mxu0 %v7083_v16  ;;  %v7088_v25 = vld [vmem:[#allocation66_spill] sm:$0xff] }
 0x415   : > { %2781 = vmatprep.subr.mxu1 %v5269_v61  ;;  %2598 = vmatpush2.msra.mxu0 %v7084_v1  ;;  %v7089_v61 = vld [vmem:[#allocation82_spill] sm:$0xff] }
 0x416   : > { %2783 = vmatpush2.msra.mxu1 %v5279_v29  ;;  %2601 = vmatprep.subr.mxu0 %v7085_v62  ;;  %v7090_v29 = vld [vmem:[#allocation86_spill] sm:$0xff] }
 0x417   : > { %2785 = vmatprep.subr.mxu1 %v5293_v20  ;;  %2604 = vmatpush2.msra.mxu0 %v7086_v0  ;;  %v7091_v20 = vld [vmem:[#allocation90_spill] sm:$0xff] }
 0x418   : > { %2787 = vmatpush2.msra.mxu1 %v5303_v5  ;;  %2607 = vmatprep.subr.mxu0 %v7087_v38  ;;  %v7092_v5 = vld [vmem:[#allocation87_spill] sm:$0xff] }
 0x419   : > { %2789 = vmatprep.subr.mxu1 %v5313_v2  ;;  %2610 = vmatpush2.msra.mxu0 %v7088_v25  ;;  %v7093_v2 = vld [vmem:[#allocation91_spill] sm:$0xff] }
 0x41a   : > { %2791 = vmatpush2.msra.mxu1 %v5327_v15  ;;  %2613 = vmatprep.subr.mxu0 %v7089_v61  ;;  %v7094_v15 = vld [vmem:[#allocation100_spill] sm:$0xff] }
 0x41b   : > { %2793 = vmatprep.subr.mxu1 %v5354_v45  ;;  %2616 = vmatpush2.msra.mxu0 %v7090_v29  ;;  %v7095_v45 = vld [vmem:[#allocation102_spill] sm:$0xff] }
 0x41c   : > { %2795 = vmatpush2.msra.mxu1 %v5368_v30  ;;  %2619 = vmatprep.subr.mxu0 %v7091_v20  ;;  %v7096_v30 = vld [vmem:[#allocation104_spill] sm:$0xff] }
 0x41d   : > { %2797 = vmatprep.subr.mxu1 %v5393_v23  ;;  %2622 = vmatpush2.msra.mxu0 %v7092_v5  ;;  %v7097_v23 = vld [vmem:[#allocation106_spill] sm:$0xff] }
 0x41e   : > { %2799 = vmatpush2.msra.mxu1 %v5431_v55  ;;  %2625 = vmatprep.subr.mxu0 %v7093_v2  ;;  %v7098_v55 = vld [vmem:[#allocation107_spill] sm:$0xff] }
 0x41f   : > { %2801 = vmatprep.subr.mxu1 %v5445_v22  ;;  %2628 = vmatpush2.msra.mxu0 %v7094_v15  ;;  %v7099_v22 = vld [vmem:[#allocation109_spill] sm:$0xff] }
 0x420   : > { %2803 = vmatpush2.msra.mxu1 %v5457_v54  ;;  %2631 = vmatprep.subr.mxu0 %v7095_v45  ;;  %v7100_v54 = vld [vmem:[#allocation113_spill] sm:$0xff] }
 0x421   : > { %2805 = vmatprep.subr.mxu1 %v5469_v44  ;;  %2634 = vmatpush2.msra.mxu0 %v7096_v30  ;;  %v7101_v44 = vld [vmem:[#allocation114_spill] sm:$0xff] }
 0x422   : > { %2807 = vmatpush2.msra.mxu1 %v5481_v47  ;;  %2637 = vmatprep.subr.mxu0 %v7097_v23 }
 0x423   : > { %2809 = vmatprep.subr.mxu1 %v5489_v27  ;;  %2640 = vmatpush2.msra.mxu0 %v7098_v55 }
 0x424   : > { %2811 = vmatpush2.msra.mxu1 %v5501_v26  ;;  %2643 = vmatprep.subr.mxu0 %v7099_v22 }
 0x425   : > { %2813 = vmatprep.subr.mxu1 %v5513_v32  ;;  %2646 = vmatpush2.msra.mxu0 %v7100_v54 }
 0x426   : > { %2815 = vmatpush2.msra.mxu1 %v5521_v42  ;;  %2649 = vmatprep.subr.mxu0 %v7101_v44 }
 0x427   : > { %2817 = vmatprep.subr.mxu1 %v5531_v34  ;;  %2652 = vmatpush2.msra.mxu0 %v5499_v37  ;;  %v7102_v34 = vld [vmem:[#allocation117_spill] sm:$0xff] }
 0x428   : > { %2819 = vmatpush2.msra.mxu1 %v5539_v35  ;;  %2655 = vmatprep.subr.mxu0 %v5511_v56  ;;  %v7103_v35 = vand.u32 4294901760, %v5654_v24 }
 0x429   : > { %2821 = vmatprep.subr.mxu1 %v5547_v18  ;;  %2658 = vmatpush2.msra.mxu0 %v5519_v49 }
 0x42a   : > { %2823 = vmatpush2.msra.mxu1 %v5557_v31  ;;  %2661 = vmatprep.subr.mxu0 %v5529_v48  ;;  %v7104_v31 = vld [vmem:[#allocation69_spill] sm:$0xff] }
 0x42b   : > { %2825 = vmatprep.subr.mxu1 %v5567_v10  ;;  %2664 = vmatpush2.msra.mxu0 %v5537_v8 }
 0x42c   : > { %2827 = vmatpush2.msra.mxu1 %v5577_v21  ;;  %2667 = vmatprep.subr.mxu0 %v7102_v34 }
 0x42d   : > { %2835 = vmatmul.mubr.f32.vlgmr.msra.gmra.mxu1 %v7103_v35  ;;  %3107 = vmatprep.subr.mxu1 %v4680_v12  ;;  %v7105_v12 = vand.u32 4294901760, %v7025_v51  ;;  %v7115_v51 = vld [vmem:[#allocation71_spill] sm:$0xff] }
 0x42e   : > { %2670 = vmatpush2.msra.mxu0 %v5555_v4  ;;  %3109 = vmatpush1.msra.mxu1 %v4688_v19  ;;  %v7106_v19 = vld [vmem:[#allocation17_spill] sm:$0xff] }
 0x42f   : > { %3235 = vmatprep.mubr.f32.mxu1 %v7104_v31  ;;  %2673 = vmatprep.subr.mxu0 %v5565_v53 }
 0x430   : > { %3111 = vmatprep.subr.mxu1 %v4702_v3  ;;  %2676 = vmatpush2.msra.mxu0 %v5575_v59  ;;  %v7107_v3 = vand.u32 4294901760, %v7106_v19  ;;  %v7118_v19 = vld [vmem:[#allocation73_spill] sm:$0xff] }
 0x431   : > { %3113 = vmatpush1.msra.mxu1 %v4710_v63  ;;  %2679 = vmatprep.subr.mxu0 %v5585_v11  ;;  %v7108_v63 = vld [vmem:[#allocation79_spill] sm:$0xff] }
 0x432   : > { %3115 = vmatprep.subr.mxu1 %v4715_v36  ;;  %2682 = vmatpush2.msra.mxu0 %v5593_v28  ;;  %v7109_v36 = vld [vmem:[#allocation21_spill] sm:$0xff] }
 0x433   : > { %3117 = vmatpush1.msra.mxu1 %v7022_v41  ;;  %2685 = vmatprep.subr.mxu0 %v5601_v40  ;;  %v7110_v35 = vand.u32 4294901760, %v7109_v36  ;;  %v7111_v41 = vld [vmem:[#allocation83_spill] sm:$0xff] }
 0x434   : > { %3119 = vmatprep.subr.mxu1 %v7023_v39  ;;  %2688 = vmatpush2.msra.mxu0 %v5609_v17  ;;  %v7112_v39 = vld [vmem:[#allocation19_spill] sm:$0xff] }
 0x435   : > { %3121 = vmatpush1.msra.mxu1 %v7024_v43  ;;  %2694 = vmatmul.mubr.f32.vlgmr.msra.gmra.mxu0 %v5654_v24  ;;  %v7113_v43 = vand.u32 4294901760, %v7112_v39  ;;  %v7114_v24 = vld [vmem:[#allocation93_spill] sm:$0xff] }
 0x436   : > { %2844 = vmatprep.subr.mxu0 %v7105_v12  ;;  %3123 = vmatprep.subr.mxu1 %v7026_v58  ;;  %v7116_v12 = vand.u32 4294901760, %v7115_v51  ;;  %v7117_v58 = vld [vmem:[#allocation96_spill] sm:$0xff]  ;;  %v7128_v51 = vld [vmem:[#allocation18_spill] sm:$0xff] }
 0x437   : > { %2848 = vmatpush1.msra.mxu0 %v7107_v3  ;;  %3098 = vmatprep.mubr.f32.mxu0 %v7104_v31  ;;  %v7119_v3 = vand.u32 4294901760, %v7118_v19  ;;  %v7120_v31 = vld [vmem:[#allocation98_spill] sm:$0xff]  ;;  %v7131_v19 = vld [vmem:[#allocation29_spill] sm:$0xff] }
 0x438   : > { %3125 = vmatpush1.msra.mxu1 %v7108_v63  ;;  %2852 = vmatprep.subr.mxu0 %v7110_v35  ;;  %v7121_v63 = vld [vmem:[#allocation76_spill] sm:$0xff] }
 0x439   : > { %3127 = vmatprep.subr.mxu1 %v7111_v41  ;;  %2856 = vmatpush1.msra.mxu0 %v7113_v43  ;;  %v7122_v36 = vand.u32 4294901760, %v7121_v63  ;;  %v7123_v35 = vld [vmem:[#allocation24_spill] sm:$0xff]  ;;  %v7124_v41 = vld [vmem:[#allocation81_spill] sm:$0xff] }
 0x43a   : > { %3129 = vmatpush1.msra.mxu1 %v7114_v24  ;;  %2860 = vmatprep.subr.mxu0 %v7116_v12  ;;  %v7125_v39 = vand.u32 4294901760, %v7124_v41  ;;  %v7126_v43 = vld [vmem:[#allocation25_spill] sm:$0xff]  ;;  %v7127_v24 = vand.u32 4294901760, %v7041_v13  ;;  %v7137_v41 = vld [vmem:[#allocation23_spill] sm:$0xff] }
 0x43b   : > { %3131 = vmatprep.subr.mxu1 %v7117_v58  ;;  %2864 = vmatpush1.msra.mxu0 %v7119_v3  ;;  %v7129_v12 = vld [vmem:[#allocation97_spill] sm:$0xff]  ;;  %v7132_v3 = vld [vmem:[#allocation11_spill] sm:$0xff] }
 0x43c   : > { %3133 = vmatpush1.msra.mxu1 %v7120_v31  ;;  %2868 = vmatprep.subr.mxu0 %v7122_v36  ;;  %v7130_v58 = vand.u32 4294901760, %v7129_v12  ;;  %v7133_v31 = vand.u32 4294901760, %v7132_v3  ;;  %v7134_v63 = vld [vmem:[#allocation33_spill] sm:$0xff]  ;;  %v7135_v36 = vld [vmem:[#allocation14_spill] sm:$0xff]  ;;  %v7143_v12 = vld [vmem:[#allocation40_spill] sm:$0xff] }
 0x43d   : > { %3135 = vmatprep.subr.mxu1 %v7123_v35  ;;  %2872 = vmatpush1.msra.mxu0 %v7125_v39  ;;  %v7136_v35 = vand.u32 4294901760, %v7135_v36  ;;  %v7138_v39 = vld [vmem:[#allocation15_spill] sm:$0xff]  ;;  %v7146_v3 = vld [vmem:[#allocation41_spill] sm:$0xff]  ;;  %v7149_v36 = vld [vmem:[#allocation42_spill] sm:$0xff] }
 0x43e   : > { %3137 = vmatpush1.msra.mxu1 %v7126_v43  ;;  %2876 = vmatprep.subr.mxu0 %v7127_v24  ;;  %v7139_v13 = vand.u32 4294901760, %v7138_v39  ;;  %v7140_v43 = vld [vmem:[#allocation37_spill] sm:$0xff]  ;;  %v7141_v24 = vld [vmem:[#allocation26_spill] sm:$0xff]  ;;  %v7152_v39 = vld [vmem:[#allocation43_spill] sm:$0xff] }
 0x43f   : > { %3139 = vmatprep.subr.mxu1 %v7128_v51  ;;  %2880 = vmatpush1.msra.mxu0 %v7130_v58  ;;  %v7142_v51 = vand.u32 4294901760, %v7141_v24  ;;  %v7144_v58 = vld [vmem:[#allocation27_spill] sm:$0xff]  ;;  %v7155_v24 = vld [vmem:[#allocation44_spill] sm:$0xff] }
 0x440   : > { %3141 = vmatpush1.msra.mxu1 %v7131_v19  ;;  %2884 = vmatprep.subr.mxu0 %v7133_v31  ;;  %v7145_v19 = vand.u32 4294901760, %v7144_v58  ;;  %v7147_v31 = vld [vmem:[#allocation28_spill] sm:$0xff]  ;;  %v7158_v58 = vld [vmem:[#allocation45_spill] sm:$0xff] }
 0x441   : > { %3143 = vmatprep.subr.mxu1 %v7134_v63  ;;  %2888 = vmatpush1.msra.mxu0 %v7136_v35  ;;  %v7148_v63 = vand.u32 4294901760, %v7147_v31  ;;  %v7150_v35 = vld [vmem:[#allocation22_spill] sm:$0xff] }
 0x442   : > { %3145 = vmatpush1.msra.mxu1 %v7137_v41  ;;  %2892 = vmatprep.subr.mxu0 %v7139_v13  ;;  %v7151_v41 = vand.u32 4294901760, %v7150_v35  ;;  %v7153_v13 = vld [vmem:[#allocation30_spill] sm:$0xff]  ;;  %v7164_v35 = vld [vmem:[#allocation35_spill] sm:$0xff] }
 0x443   : > { %3147 = vmatprep.subr.mxu1 %v7140_v43  ;;  %2896 = vmatpush1.msra.mxu0 %v7142_v51  ;;  %v7154_v43 = vand.u32 4294901760, %v7153_v13  ;;  %v7156_v51 = vld [vmem:[#allocation31_spill] sm:$0xff]  ;;  %v7161_v31 = vld [vmem:[#allocation34_spill] sm:$0xff]  ;;  %v7167_v13 = vand.u32 4294901760, %v7068_v9  ;;  %v7176_v9 = vand.u32 4294901760, %v7075_v6  ;;  %v7184_v6 = vand.u32 4294901760, %v7081_v7 }
 0x444   : > { %3149 = vmatpush1.msra.mxu1 %v7143_v12  ;;  %2900 = vmatprep.subr.mxu0 %v7145_v19  ;;  %v7157_v12 = vand.u32 4294901760, %v7156_v51  ;;  %v7159_v19 = vand.u32 4294901760, %v7062_v50  ;;  %v7171_v51 = vld [vmem:[#allocation50_spill] sm:$0xff]  ;;  %v7192_v7 = vand.u32 4294901760, %v7085_v62  ;;  %v7200_v62 = vand.u32 4294901760, %v7089_v61 }
 0x445   : > { %3151 = vmatprep.subr.mxu1 %v7146_v3  ;;  %2904 = vmatpush1.msra.mxu0 %v7148_v63  ;;  %v7160_v3 = vld [vmem:[#allocation49_spill] sm:$0xff]  ;;  %v7162_v63 = vand.u32 4294901760, %v7161_v31  ;;  %v7177_v31 = vld [vmem:[#allocation67_spill] sm:$0xff]  ;;  %v7208_v61 = vand.u32 4294901760, %v7093_v2  ;;  %v7215_v2 = vand.u32 4294901760, %v7097_v23  ;;  %v7219_v23 = vand.u32 4294901760, %v7101_v44 }
 0x446   : > { %3153 = vmatpush1.msra.mxu1 %v7149_v36  ;;  %2908 = vmatprep.subr.mxu0 %v7151_v41  ;;  %v7163_v36 = vld [vmem:[#allocation53_spill] sm:$0xff]  ;;  %v7165_v41 = vand.u32 4294901760, %v7164_v35  ;;  %v7181_v35 = vld [vmem:[#allocation70_spill] sm:$0xff]  ;;  %v7227_v44 = vand.u32 4294901760, %v5537_v8  ;;  %v7234_v8 = vand.u32 4294901760, %v5593_v28 }
 0x447   : > { %3155 = vmatprep.subr.mxu1 %v7152_v39  ;;  %2912 = vmatpush1.msra.mxu0 %v7154_v43  ;;  %v7166_v39 = vld [vmem:[#allocation56_spill] sm:$0xff] }
 0x448   : > { %3157 = vmatpush1.msra.mxu1 %v7155_v24  ;;  %2916 = vmatprep.subr.mxu0 %v7157_v12  ;;  %v7168_v43 = vld [vmem:[#allocation48_spill] sm:$0xff]  ;;  %v7169_v24 = vld [vmem:[#allocation38_spill] sm:$0xff]  ;;  %v7172_v12 = vand.u32 4294901760, %v7072_v46  ;;  %v7180_v46 = vand.u32 4294901760, %v7078_v60  ;;  %v7188_v60 = vand.u32 4294901760, %v7083_v16  ;;  %v7196_v16 = vand.u32 4294901760, %v7087_v38 }
 0x449   : > { %3159 = vmatprep.subr.mxu1 %v7158_v58  ;;  %2920 = vmatpush1.msra.mxu0 %v7159_v19  ;;  %v7170_v50 = vand.u32 4294901760, %v7169_v24  ;;  %v7173_v58 = vld [vmem:[#allocation51_spill] sm:$0xff]  ;;  %v7174_v19 = vand.u32 4294901760, %v7073_v57  ;;  %v7182_v57 = vand.u32 4294901760, %v7080_v14  ;;  %v7190_v14 = vand.u32 4294901760, %v7084_v1  ;;  %v7191_v24 = vld [vmem:[#allocation80_spill] sm:$0xff] }
 0x44a   : > { %3161 = vmatpush1.msra.mxu1 %v7160_v3  ;;  %2924 = vmatprep.subr.mxu0 %v7162_v63  ;;  %v7175_v3 = vld [vmem:[#allocation65_spill] sm:$0xff]  ;;  %v7178_v63 = vand.u32 4294901760, %v7077_v52  ;;  %v7186_v52 = vand.u32 4294901760, %v7082_v33  ;;  %v7194_v33 = vand.u32 4294901760, %v7086_v0  ;;  %v7198_v1 = vand.u32 4294901760, %v7088_v25 }
 0x44b   : > { %3163 = vmatprep.subr.mxu1 %v7163_v36  ;;  %2928 = vmatpush1.msra.mxu0 %v7165_v41  ;;  %v7179_v36 = vld [vmem:[#allocation55_spill] sm:$0xff]  ;;  %v7183_v41 = vld [vmem:[#allocation72_spill] sm:$0xff]  ;;  %v7202_v0 = vand.u32 4294901760, %v7090_v29  ;;  %v7204_v38 = vand.u32 4294901760, %v7091_v20  ;;  %v7206_v25 = vand.u32 4294901760, %v7092_v5  ;;  %v7210_v29 = vand.u32 4294901760, %v7094_v15 }
 0x44c   : > { %3165 = vmatpush1.msra.mxu1 %v7166_v39  ;;  %2932 = vmatprep.subr.mxu0 %v7167_v13  ;;  %v7185_v39 = vld [vmem:[#allocation74_spill] sm:$0xff]  ;;  %v7187_v13 = vld [vmem:[#allocation77_spill] sm:$0xff]  ;;  %v7212_v20 = vand.u32 4294901760, %v7095_v45  ;;  %v7214_v5 = vand.u32 4294901760, %v7096_v30  ;;  %v7216_v15 = vand.u32 4294901760, %v7098_v55  ;;  %v7217_v45 = vand.u32 4294901760, %v7099_v22 }
 0x44d   : > { %3167 = vmatprep.subr.mxu1 %v7168_v43  ;;  %2936 = vmatpush1.msra.mxu0 %v7170_v50  ;;  %v7189_v43 = vld [vmem:[#allocation78_spill] sm:$0xff]  ;;  %v7193_v50 = vld [vmem:[#allocation84_spill] sm:$0xff]  ;;  %v7218_v30 = vand.u32 4294901760, %v7100_v54  ;;  %v7223_v22 = vand.u32 4294901760, %v5511_v56  ;;  %v7224_v54 = vand.u32 4294901760, %v5519_v49  ;;  %v7228_v56 = vand.u32 4294901760, %v7102_v34 }
 0x44e   : > { %3169 = vmatpush1.msra.mxu1 %v7171_v51  ;;  %2940 = vmatprep.subr.mxu0 %v7172_v12  ;;  %v7195_v51 = vld [vmem:[#allocation88_spill] sm:$0xff]  ;;  %v7233_v49 = vand.u32 4294901760, %v5585_v11  ;;  %v7235_v34 = vand.u32 4294901760, %v5601_v40 }
 0x44f   : > { %3171 = vmatprep.subr.mxu1 %v7173_v58  ;;  %2944 = vmatpush1.msra.mxu0 %v7174_v19  ;;  %v7197_v12 = vld [vmem:[#allocation92_spill] sm:$0xff]  ;;  %v7199_v58 = vld [vmem:[#allocation89_spill] sm:$0xff] }
 0x450   : > { %3173 = vmatpush2.msra.mxu1 %v7175_v3  ;;  %2948 = vmatprep.subr.mxu0 %v7176_v9  ;;  %v7201_v19 = vld [vmem:[#allocation101_spill] sm:$0xff]  ;;  %v7203_v3 = vld [vmem:[#allocation103_spill] sm:$0xff]  ;;  %v7222_v55 = vld [vmem:[#allocation116_spill] sm:$0xff] }
 0x451   : > { %3175 = vmatprep.subr.mxu1 %v7177_v31  ;;  %2952 = vmatpush1.msra.mxu0 %v7178_v63  ;;  %v7205_v9 = vld [vmem:[#allocation105_spill] sm:$0xff]  ;;  %v7207_v31 = vld [vmem:[#allocation108_spill] sm:$0xff]  ;;  %v7209_v63 = vld [vmem:[#allocation110_spill] sm:$0xff] }
 0x452   : > { %3177 = vmatpush2.msra.mxu1 %v7179_v36  ;;  %2956 = vmatprep.subr.mxu0 %v7180_v46  ;;  %v7211_v36 = vld [vmem:[#allocation111_spill] sm:$0xff]  ;;  %v7213_v46 = vld [vmem:[#allocation112_spill] sm:$0xff] }
 0x453   : > { %3179 = vmatprep.subr.mxu1 %v7181_v35  ;;  %2960 = vmatpush1.msra.mxu0 %v7182_v57 }
 0x454   : > { %3181 = vmatpush2.msra.mxu1 %v7183_v41  ;;  %2964 = vmatprep.subr.mxu0 %v7184_v6 }
 0x455   : > { %3183 = vmatprep.subr.mxu1 %v7185_v39  ;;  %2968 = vmatpush1.msra.mxu0 %v7186_v52 }
 0x456   : > { %3185 = vmatpush2.msra.mxu1 %v7187_v13  ;;  %2972 = vmatprep.subr.mxu0 %v7188_v60 }
 0x457   : > { %3187 = vmatprep.subr.mxu1 %v7189_v43  ;;  %2976 = vmatpush2.msra.mxu0 %v7190_v14 }
 0x458   : > { %3189 = vmatpush2.msra.mxu1 %v7191_v24  ;;  %2980 = vmatprep.subr.mxu0 %v7192_v7 }
 0x459   : > { %3191 = vmatprep.subr.mxu1 %v7193_v50  ;;  %2984 = vmatpush2.msra.mxu0 %v7194_v33 }
 0x45a   : > { %3193 = vmatpush2.msra.mxu1 %v7195_v51  ;;  %2988 = vmatprep.subr.mxu0 %v7196_v16 }
 0x45b   : > { %3195 = vmatprep.subr.mxu1 %v7197_v12  ;;  %2992 = vmatpush2.msra.mxu0 %v7198_v1 }
 0x45c   : > { %3197 = vmatpush2.msra.mxu1 %v7199_v58  ;;  %2996 = vmatprep.subr.mxu0 %v7200_v62 }
 0x45d   : > { %3199 = vmatprep.subr.mxu1 %v7201_v19  ;;  %3000 = vmatpush2.msra.mxu0 %v7202_v0 }
 0x45e   : > { %3201 = vmatpush2.msra.mxu1 %v7203_v3  ;;  %3004 = vmatprep.subr.mxu0 %v7204_v38 }
 0x45f   : > { %3203 = vmatprep.subr.mxu1 %v7205_v9  ;;  %3008 = vmatpush2.msra.mxu0 %v7206_v25 }
 0x460   : > { %3205 = vmatpush2.msra.mxu1 %v7207_v31  ;;  %3012 = vmatprep.subr.mxu0 %v7208_v61 }
 0x461   : > { %3207 = vmatprep.subr.mxu1 %v7209_v63  ;;  %3016 = vmatpush2.msra.mxu0 %v7210_v29 }
 0x462   : > { %3209 = vmatpush2.msra.mxu1 %v7211_v36  ;;  %3020 = vmatprep.subr.mxu0 %v7212_v20 }
 0x463   : > { %3211 = vmatprep.subr.mxu1 %v7213_v46  ;;  %3024 = vmatpush2.msra.mxu0 %v7214_v5 }
 0x464   : > { %3213 = vmatpush2.msra.mxu1 %v5481_v47  ;;  %3028 = vmatprep.subr.mxu0 %v7215_v2  ;;  %v7220_v47 = vld [vmem:[#allocation115_spill] sm:$0xff] }
 0x465   : > { %3215 = vmatprep.subr.mxu1 %v5489_v27  ;;  %3032 = vmatpush2.msra.mxu0 %v7216_v15  ;;  %v7221_v27 = vand.u32 4294901760, %v5499_v37  ;;  %v7229_v37 = vld [vmem:[#allocation94_spill] sm:$0xff] }
 0x466   : > { %3217 = vmatpush2.msra.mxu1 %v5501_v26  ;;  %3036 = vmatprep.subr.mxu0 %v7217_v45  ;;  %v7225_v26 = vld [vmem:[#allocation118_spill] sm:$0xff] }
 0x467   : > { %3219 = vmatprep.subr.mxu1 %v5513_v32  ;;  %3040 = vmatpush2.msra.mxu0 %v7218_v30  ;;  %v7231_v32 = vand.u32 4294901760, %v5565_v53  ;;  %v1208_v53 = vpop.f32.mrf.mxu1 }
 0x468   : > { %3221 = vmatpush2.msra.mxu1 %v5521_v42  ;;  %3044 = vmatprep.subr.mxu0 %v7219_v23  ;;  %v7226_v42 = vand.u32 4294901760, %v5529_v48  ;;  %v7232_v48 = vand.u32 4294901760, %v5575_v59 }
 0x469   : > { %3223 = vmatprep.subr.mxu1 %v7220_v47  ;;  %3048 = vmatpush2.msra.mxu0 %v7221_v27  ;;  %v1210_v59 = vpop.f32.mrf.mxu1 }
 0x46a   : > { %3225 = vmatpush2.msra.mxu1 %v7222_v55  ;;  %3052 = vmatprep.subr.mxu0 %v7223_v22 }
 0x46b   : > { %3227 = vmatprep.subr.mxu1 %v5547_v18  ;;  %3056 = vmatpush2.msra.mxu0 %v7224_v54  ;;  %v7230_v18 = vand.u32 4294901760, %v5555_v4  ;;  %v815_v4 = vpop.f32.mrf.mxu0  ;;  %v1552_v41 = vpop.f32.mrf.mxu1 }
 0x46c   : > { %3229 = vmatpush2.msra.mxu1 %v7225_v26  ;;  %3060 = vmatprep.subr.mxu0 %v7226_v42  ;;  %v1209_v57 = vadd.f32 %v1208_v53, %v815_v4 }
 0x46d   : > { %3231 = vmatprep.subr.mxu1 %v5567_v10  ;;  %3064 = vmatpush2.msra.mxu0 %v7227_v44  ;;  %v7236_v10 = vand.u32 4294901760, %v5609_v17  ;;  %v1554_v13 = vpop.f32.mrf.mxu1  ;;  %v7237_v44 = vld [vmem:[#allocation68_spill] sm:$0xff] }
 0x46e   : > { %3233 = vmatpush2.msra.mxu1 %v5577_v21  ;;  %3068 = vmatprep.subr.mxu0 %v7228_v56  ;;  %v817_v21 = vpop.f32.mrf.mxu0 }
 0x46f   : > { %3237 = vmatmul.mubr.f32.vlgmr.msra.gmra.mxu1 %v7229_v37  ;;  %3072 = vmatpush2.msra.mxu0 %v7230_v18  ;;  %v1211_v6 = vadd.f32 %v1210_v59, %v817_v21  ;;  %v1954_v60 = vpop.f32.mrf.mxu1 }
 0x470   : > { %3076 = vmatprep.subr.mxu0 %v7231_v32  ;;  %v1411_v35 = vpop.f32.mrf.mxu0  ;;  %v7238_v32 = vld [vmem:[#allocation99_spill] sm:$0xff] }
 0x471   : > { %3080 = vmatpush2.msra.mxu0 %v7232_v48  ;;  %v1412_v39 = vadd.f32 %v1411_v35, %v1209_v57  ;;  %v1956_v50 = vpop.f32.mrf.mxu1 }
 0x472   : > { %3084 = vmatprep.subr.mxu0 %v7233_v49  ;;  %v1413_v11 = vpop.f32.mrf.mxu0  ;;  %v3482_v49 = vld [vmem:[%s3763_s5] sm:$0xff] }
 0x473   : > { %3088 = vmatpush2.msra.mxu0 %v7234_v8  ;;  %v1414_v52 = vadd.f32 %v1413_v11, %v1211_v6  ;;  %v1553_v40 = vadd.f32 %v1552_v41, %v1412_v39 }
 0x474   : > { %3092 = vmatprep.subr.mxu0 %v7235_v34  ;;  %v1817_v28 = vpop.f32.mrf.mxu0 }
 0x475   : > { %3096 = vmatpush2.msra.mxu0 %v7236_v10  ;;  %v1818_v17 = vadd.f32 %v1817_v28, %v1553_v40  ;;  %v1555_v14 = vadd.f32 %v1554_v13, %v1414_v52 }
 0x476   : > { %3100 = vmatmul.mubr.f32.vlgmr.msra.gmra.mxu0 %v7229_v37  ;;  %v1819_v43 = vpop.f32.mrf.mxu0 }
 0x477   : > { %v1820_v7 = vadd.f32 %v1819_v43, %v1555_v14  ;;  %v1955_v33 = vadd.f32 %v1954_v60, %v1818_v17 }
 0x479   : > { %v1957_v1 = vadd.f32 %v1956_v50, %v1820_v7 }
 0x4ac   : > { %v2492_v51 = vpop.f32.mrf.mxu1 }
 0x4ae   : > { %v2494_v19 = vpop.f32.mrf.mxu1 }
 0x4b3   : > { %v2099_v24 = vpop.f32.mrf.mxu0 }
 0x4b4   : > { %v2100_v12 = vadd.f32 %v2099_v24, %v1955_v33 }
 0x4b5   : > { %v2101_v16 = vpop.f32.mrf.mxu0 }
 0x4b6   : > { %v2102_v62 = vadd.f32 %v2101_v16, %v1957_v1  ;;  %v2493_v0 = vadd.f32 %v2492_v51, %v2100_v12 }
 0x4b8   : > { %v2495_v25 = vadd.f32 %v2494_v19, %v2102_v62 }
 0x4ed   : > { %v2836_v3 = vpop.f32.mrf.mxu1 }
 0x4ef   : > { %v2838_v61 = vpop.f32.mrf.mxu1 }
 0x4f5   : > { %v2695_v58 = vpop.f32.mrf.mxu0 }
 0x4f6   : > { %v2696_v9 = vadd.f32 %v2695_v58, %v2493_v0 }
 0x4f7   : > { %v2697_v38 = vpop.f32.mrf.mxu0 }
 0x4f8   : > { %v2698_v31 = vadd.f32 %v2697_v38, %v2495_v25  ;;  %v2837_v63 = vadd.f32 %v2836_v3, %v2696_v9 }
 0x4fa   : > { %v2839_v46 = vadd.f32 %v2838_v61, %v2698_v31 }
 0x52f   : > { %v3238_v29 = vpop.f32.mrf.mxu1 }
 0x531   : > { %v3240_v45 = vpop.f32.mrf.mxu1 }
 0x536   : > { %v3101_v36 = vpop.f32.mrf.mxu0 }
 0x537   : > { %v3102_v20 = vadd.f32 %v3101_v36, %v2837_v63 }
 0x538   : > { %v3103_v5 = vpop.f32.mrf.mxu0 }
 0x539   : > { %v3239_v2 = vadd.f32 %v3238_v29, %v3102_v20  ;;  %v3104_v15 = vadd.f32 %v3103_v5, %v2839_v46 }
 0x53b   : > { %v3383_v30 = vmul.f32 -1.442695, %v3239_v2  ;;  %v3241_v23 = vadd.f32 %v3240_v45, %v3104_v15 }
 0x53d   : > { %3473 = vpow2.f32 %v3383_v30  ;;  %v3384_v47 = vmul.f32 -1.442695, %v3241_v23 }
 0x53f   : > { %3475 = vpow2.f32 %v3384_v47 }
 0x54a   : > { %v3474_v27 = vpop.eup %3473 }
 0x54b   : > { %v3249_v55 = vadd.f32 1.0, %v3474_v27 }
 0x54c   : > { %v3476_v22 = vpop.eup %3475 }
 0x54d   : > { %3477 = vrcp.f32 %v3249_v55  ;;  %v3250_v54 = vadd.f32 1.0, %v3476_v22 }
 0x54f   : > { %3479 = vrcp.f32 %v3250_v54 }
 0x55a   : > { %v3478_v26 = vpop.eup %3477 }
 0x55b   : > { %v3258_v56 = vrot.slane %v3478_v26, %v7237_v44 }
 0x55c   : > { %v3480_v42 = vpop.eup %3479 }
 0x55d   : > { %v3262_v37 = vrot.slane %v3480_v42, %v7237_v44 }
 0x55f   : > { %v3265_v18 = vcombine.low %v3258_v56, %v3262_v37 }
 0x561   : > { %v3267_v48 = vmul.f32 %v3265_v18, %v7238_v32 }
 0x563   : > { %v3268_v8 = vadd.f32 %v3482_v49, %v3267_v48 }
 0x565   : > { %3269 = vst [vmem:[%s282_s8] sm:$0xff] %v3268_v8 }
 0x566   : > { %3550 = shalt.err (!%p3547_p0)
}
 0x567   : > { %s3551_s5 = scalar_lea.hbm %s3283_s27, 128  ;;  %s3555_s13 = scalar_lea.hbm %s6050_s6, 256 }
 0x568   : > { %p3552_p5 = scmp.ne.s32.totalorder %s3283_s27, %s3551_s5  ;;  %p3556_p1 = scmp.lt.s32.totalorder %s3283_s27, %s6050_s6 }
 0x569   : > { %p3557_p4 = scmp.lt.s32.totalorder %s3555_s13, %s3551_s5 }
 0x56a   : > { %p3553_p9 = pnand %p3552_p5, %p7239_p3 }
 0x56b   : > { %p3558_p6 = por %p3557_p4, %p3556_p1 }
 0x56c   : > { %p3554_p12 = pneg %p3553_p9 }
 0x56e   : > { %p3559_p8 = pnand %p3558_p6, %p3554_p12 }
 0x570   : > { %3562 = shalt.err (!%p3559_p8)
}
 0x571   : > { %3412 = dma.vmem_to_hbm [thread:$0]  (%p7239_p3), %s3286_s19, 128, %s3283_s27, %s3271_s29  }
 0x572 PF: > { %s3297_s26 = sand.u32 1, %s3593_s21   ;;  %p7240_p11 = scmp.ne.s32.totalorder %s6479_s28, 0 }
 0x573   : > { %p7241_p7 = scmp.ge.s32.totalorder %s3605_s24, 2  ;;  %s3298_s8 = scalar_lea.sflag [#allocation4], %s3297_s26 }
 0x575   : > { %p3423_p10 = pnand %p7241_p7, %p7240_p11 }
 0x577   : > { %p3424_p2 = pneg %p3423_p10 }
 0x579   : > { %3588 = dma.done.wait (%p3424_p2), %s3298_s8, 128  }
 0x57a   : > { %3590 = vsyncadd (%p3424_p2), %s3298_s8, 4294967168  ;;  %p20_p13 = scmp.ge.s32.totalorder %s3704_s9, 4   ;;  %s7242_s21 = smov %s3597_s22 }
 0x57b   : > { %s7243_s22 = smov %s3601_s23  ;;  %s7244_s23 = smov %s3721_s17 }
 0x57c   : > { %s7245_s24 = smov %s3704_s9  ;;  %22 = sbr.rel (!%p20_p13) target bundleno = 8 (0x8), region = 93 }
 0x581   :  { %3303 = vsyncpa [#allocation3], 1 }
 0x582   :  { %3305 = vsyncpa [#allocation3 + $0x1], 1 }
 0x583   :  { %3306 = vsyncpa [#allocation6], 1 }
 0x584   :  { %3307 = vsyncpa [#allocation4], 1 }
 0x585   :  { %3309 = vsyncpa [#allocation4 + $0x1], 1 }

</bundles_post_ra>
